<compile_context>
chip_gen: v7x
topology: tpu7x:2x2x1
jax: 0.10.0
libtpu: 0.0.40
codegen_flags: <defaults>
</compile_context>

<pallas_src>
import jax
import jax.numpy as jnp
from jax.experimental import pallas as pl
from jax.experimental.pallas import tpu as pltpu

C_IN, C_OUT, KW, PAD = 3, 8, 6, 3


def conv_hardsig_kernel(x_ref, w_ref, o_ref):
    """Conv2d(3->8, kernel (1,6), pad (0,3)) fused with hard-sigmoid epilogue.

    x_ref : (C_IN, H, W + 2*PAD)  f32 VMEM  zero-padded conv input
    w_ref : (C_OUT*C_IN*KW,)      f32 SMEM  weights pre-scaled by 1/6
    o_ref : (C_OUT, H, Wo)        f32 VMEM  output
    """
    H = o_ref.shape[1]
    Wo = o_ref.shape[2]

    # 8 resident accumulators; the +0.5 of the folded epilogue is the init.
    accs = [jnp.full((H, Wo), 0.5, jnp.float32) for _ in range(C_OUT)]

    for c in range(C_IN):
        row = x_ref[c]                         # one (H, W+2*PAD) load per channel
        for kw in range(KW):
            tap = row[:, kw:kw + Wo]           # static in-register lane slice, reused 8x
            # Hoist the 8 SMEM scalar loads off the FMA dependency chain.
            ws = [w_ref[(o * C_IN + c) * KW + kw] for o in range(C_OUT)]
            for o in range(C_OUT):
                accs[o] = accs[o] + ws[o] * tap

    # ((v1 + 3).clamp(0, 6)) / 6  ==  clip(v1/6 + 0.5, 0, 1)
    for o in range(C_OUT):
        o_ref[o] = jnp.clip(accs[o], 0.0, 1.0)


@jax.jit
def model_forward(x1, conv_weight):
    """x1: (N, C, h, w) with h*w == 3; conv_weight: (8, 3, 1, 6)."""
    N, C = x1.shape[0], x1.shape[1]
    if x1.shape[2] * x1.shape[3] != C_IN:
        raise ValueError("forward requires h*w == 3 (conv runs unbatched on (3, N, C))")
    Wo = C + 2 * PAD - KW + 1
    if C_OUT * N * Wo != 8 * 14 * 14:
        raise ValueError("view(-1, 8, 14, 14) requires N * (C + 1) == 196")

    # v2 = x1.flatten(2).permute(2, 0, 1) -> (3, N, C), then zero-pad the conv
    # width dim.  This is a single fused producer; allow_input_fusion below
    # lets XLA fold it into the Pallas operand (no standalone HBM round trip).
    v2 = jnp.transpose(jnp.reshape(x1, (N, C, C_IN)), (2, 0, 1)).astype(jnp.float32)
    v2p = jnp.pad(v2, ((0, 0), (0, 0), (PAD, PAD)))          # (3, N, C + 2*PAD)

    # Fold the /6 of the epilogue into the weights (one-time 144-element op).
    w_flat = (conv_weight[:, :, 0, :].astype(jnp.float32) * (1.0 / 6.0)).reshape(-1)

    out = pl.pallas_call(
        conv_hardsig_kernel,
        out_shape=jax.ShapeDtypeStruct((C_OUT, N, Wo), jnp.float32),
        in_specs=[
            pl.BlockSpec(memory_space=pltpu.MemorySpace.VMEM),
            pl.BlockSpec(memory_space=pltpu.MemorySpace.SMEM),
        ],
        out_specs=pl.BlockSpec(memory_space=pltpu.MemorySpace.VMEM),
        compiler_params=pltpu.CompilerParams(
            # Allow the transpose+pad producer of operand 0 to fuse into the
            # Pallas custom call; keep the tiny SMEM weight operand separate.
            allow_input_fusion=[True, False],
        ),
    )(v2p, w_flat)

    # v4.view(-1, 8, 14, 14)
    return jnp.reshape(out, (-1, 8, 14, 14))


def reference_forward(x1, conv_weight):
    """Pure-jnp reference (unscaled weights, original (+3, clamp, /6) epilogue)."""
    N, C = x1.shape[0], x1.shape[1]
    v2 = jnp.transpose(jnp.reshape(x1, (N, C, -1)), (2, 0, 1)).astype(jnp.float32)
    x_pad = jnp.pad(v2, ((0, 0), (0, 0), (PAD, PAD)))
    W = v2.shape[2]
    Wo = W + 2 * PAD - KW + 1
    w = conv_weight[:, :, 0, :].astype(jnp.float32)                          # (8, 3, 6)
    cols = jnp.stack([x_pad[:, :, kw:kw + Wo] for kw in range(KW)], axis=1)  # (3,6,H,Wo)
    v1 = jnp.einsum('ock,ckhw->ohw', w, cols)
    v4 = jnp.clip(v1 + 3.0, 0.0, 6.0) / 6.0
    return jnp.reshape(v4, (-1, 8, 14, 14))


if __name__ == "__main__":
    key = jax.random.PRNGKey(0)
    k_x, k_w, k_bnw, k_bnb = jax.random.split(key, 4)

    # Small shape consistent with the module's forward: h*w = 3 (the 3 conv
    # in-channels after flatten/permute) and N*(C+1) = 14*14 so the final
    # view(-1, 8, 14, 14) works.
    x1 = jax.random.normal(k_x, (14, 13, 1, 3), dtype=jnp.float32)
    conv_weight = jax.random.normal(k_w, (8, 3, 1, 6), dtype=jnp.float32)

    # self.bn / self.bias are assigned in forward but never applied -> unused.
    bn_weight = jax.random.normal(k_bnw, (8,), dtype=jnp.float32)
    bn_bias = jax.random.normal(k_bnb, (8,), dtype=jnp.float32)
    del bn_weight, bn_bias

    out = jax.block_until_ready(model_forward(x1, conv_weight))
    ref = jax.block_until_ready(reference_forward(x1, conv_weight))

    assert out.shape == (1, 8, 14, 14), out.shape
    assert jnp.allclose(out, ref, atol=1e-5, rtol=1e-5), float(jnp.max(jnp.abs(out - ref)))
    print("KERNEL_OK")
</pallas_src>

<mosaic_0001>
module attributes {stable_mosaic.version = 11 : i64} {
  func.func @conv_hardsig_kernel(%arg0: memref<3x14x19xf32, #tpu.memory_space<vmem>>, %arg1: memref<144xf32, #tpu.memory_space<smem>>, %arg2: memref<8x14x14xf32, #tpu.memory_space<vmem>>) attributes {dimension_semantics = [], scalar_prefetch = 0 : i64, scratch_operands = 0 : i64, tpu.core_type = #tpu.core_type<tc>} {
    %cst = arith.constant 5.000000e-01 : f32
    %0 = vector.broadcast %cst : f32 to vector<14x14xf32>
    %cst_0 = arith.constant 5.000000e-01 : f32
    %1 = vector.broadcast %cst_0 : f32 to vector<14x14xf32>
    %cst_1 = arith.constant 5.000000e-01 : f32
    %2 = vector.broadcast %cst_1 : f32 to vector<14x14xf32>
    %cst_2 = arith.constant 5.000000e-01 : f32
    %3 = vector.broadcast %cst_2 : f32 to vector<14x14xf32>
    %cst_3 = arith.constant 5.000000e-01 : f32
    %4 = vector.broadcast %cst_3 : f32 to vector<14x14xf32>
    %cst_4 = arith.constant 5.000000e-01 : f32
    %5 = vector.broadcast %cst_4 : f32 to vector<14x14xf32>
    %cst_5 = arith.constant 5.000000e-01 : f32
    %6 = vector.broadcast %cst_5 : f32 to vector<14x14xf32>
    %cst_6 = arith.constant 5.000000e-01 : f32
    %7 = vector.broadcast %cst_6 : f32 to vector<14x14xf32>
    %c0 = arith.constant 0 : index
    %c0_7 = arith.constant 0 : index
    %c0_8 = arith.constant 0 : index
    %8 = vector.load %arg0[%c0, %c0_7, %c0_8] : memref<3x14x19xf32, #tpu.memory_space<vmem>>, vector<1x14x19xf32>
    %9 = vector.shape_cast %8 : vector<1x14x19xf32> to vector<14x19xf32>
    %10 = vector.extract_strided_slice %9 {offsets = [0, 0], sizes = [14, 14], strides = [1, 1]} : vector<14x19xf32> to vector<14x14xf32>
    %c0_9 = arith.constant 0 : index
    %11 = memref.load %arg1[%c0_9] : memref<144xf32, #tpu.memory_space<smem>>
    %c18 = arith.constant 18 : index
    %12 = memref.load %arg1[%c18] : memref<144xf32, #tpu.memory_space<smem>>
    %c36 = arith.constant 36 : index
    %13 = memref.load %arg1[%c36] : memref<144xf32, #tpu.memory_space<smem>>
    %c54 = arith.constant 54 : index
    %14 = memref.load %arg1[%c54] : memref<144xf32, #tpu.memory_space<smem>>
    %c72 = arith.constant 72 : index
    %15 = memref.load %arg1[%c72] : memref<144xf32, #tpu.memory_space<smem>>
    %c90 = arith.constant 90 : index
    %16 = memref.load %arg1[%c90] : memref<144xf32, #tpu.memory_space<smem>>
    %c108 = arith.constant 108 : index
    %17 = memref.load %arg1[%c108] : memref<144xf32, #tpu.memory_space<smem>>
    %c126 = arith.constant 126 : index
    %18 = memref.load %arg1[%c126] : memref<144xf32, #tpu.memory_space<smem>>
    %19 = vector.broadcast %11 : f32 to vector<14x14xf32>
    %20 = arith.mulf %19, %10 : vector<14x14xf32>
    %21 = arith.addf %0, %20 : vector<14x14xf32>
    %22 = vector.broadcast %12 : f32 to vector<14x14xf32>
    %23 = arith.mulf %22, %10 : vector<14x14xf32>
    %24 = arith.addf %1, %23 : vector<14x14xf32>
    %25 = vector.broadcast %13 : f32 to vector<14x14xf32>
    %26 = arith.mulf %25, %10 : vector<14x14xf32>
    %27 = arith.addf %2, %26 : vector<14x14xf32>
    %28 = vector.broadcast %14 : f32 to vector<14x14xf32>
    %29 = arith.mulf %28, %10 : vector<14x14xf32>
    %30 = arith.addf %3, %29 : vector<14x14xf32>
    %31 = vector.broadcast %15 : f32 to vector<14x14xf32>
    %32 = arith.mulf %31, %10 : vector<14x14xf32>
    %33 = arith.addf %4, %32 : vector<14x14xf32>
    %34 = vector.broadcast %16 : f32 to vector<14x14xf32>
    %35 = arith.mulf %34, %10 : vector<14x14xf32>
    %36 = arith.addf %5, %35 : vector<14x14xf32>
    %37 = vector.broadcast %17 : f32 to vector<14x14xf32>
    %38 = arith.mulf %37, %10 : vector<14x14xf32>
    %39 = arith.addf %6, %38 : vector<14x14xf32>
    %40 = vector.broadcast %18 : f32 to vector<14x14xf32>
    %41 = arith.mulf %40, %10 : vector<14x14xf32>
    %42 = arith.addf %7, %41 : vector<14x14xf32>
    %43 = vector.extract_strided_slice %9 {offsets = [0, 1], sizes = [14, 14], strides = [1, 1]} : vector<14x19xf32> to vector<14x14xf32>
    %c1 = arith.constant 1 : index
    %44 = memref.load %arg1[%c1] : memref<144xf32, #tpu.memory_space<smem>>
    %c19 = arith.constant 19 : index
    %45 = memref.load %arg1[%c19] : memref<144xf32, #tpu.memory_space<smem>>
    %c37 = arith.constant 37 : index
    %46 = memref.load %arg1[%c37] : memref<144xf32, #tpu.memory_space<smem>>
    %c55 = arith.constant 55 : index
    %47 = memref.load %arg1[%c55] : memref<144xf32, #tpu.memory_space<smem>>
    %c73 = arith.constant 73 : index
    %48 = memref.load %arg1[%c73] : memref<144xf32, #tpu.memory_space<smem>>
    %c91 = arith.constant 91 : index
    %49 = memref.load %arg1[%c91] : memref<144xf32, #tpu.memory_space<smem>>
    %c109 = arith.constant 109 : index
    %50 = memref.load %arg1[%c109] : memref<144xf32, #tpu.memory_space<smem>>
    %c127 = arith.constant 127 : index
    %51 = memref.load %arg1[%c127] : memref<144xf32, #tpu.memory_space<smem>>
    %52 = vector.broadcast %44 : f32 to vector<14x14xf32>
    %53 = arith.mulf %52, %43 : vector<14x14xf32>
    %54 = arith.addf %21, %53 : vector<14x14xf32>
    %55 = vector.broadcast %45 : f32 to vector<14x14xf32>
    %56 = arith.mulf %55, %43 : vector<14x14xf32>
    %57 = arith.addf %24, %56 : vector<14x14xf32>
    %58 = vector.broadcast %46 : f32 to vector<14x14xf32>
    %59 = arith.mulf %58, %43 : vector<14x14xf32>
    %60 = arith.addf %27, %59 : vector<14x14xf32>
    %61 = vector.broadcast %47 : f32 to vector<14x14xf32>
    %62 = arith.mulf %61, %43 : vector<14x14xf32>
    %63 = arith.addf %30, %62 : vector<14x14xf32>
    %64 = vector.broadcast %48 : f32 to vector<14x14xf32>
    %65 = arith.mulf %64, %43 : vector<14x14xf32>
    %66 = arith.addf %33, %65 : vector<14x14xf32>
    %67 = vector.broadcast %49 : f32 to vector<14x14xf32>
    %68 = arith.mulf %67, %43 : vector<14x14xf32>
    %69 = arith.addf %36, %68 : vector<14x14xf32>
    %70 = vector.broadcast %50 : f32 to vector<14x14xf32>
    %71 = arith.mulf %70, %43 : vector<14x14xf32>
    %72 = arith.addf %39, %71 : vector<14x14xf32>
    %73 = vector.broadcast %51 : f32 to vector<14x14xf32>
    %74 = arith.mulf %73, %43 : vector<14x14xf32>
    %75 = arith.addf %42, %74 : vector<14x14xf32>
    %76 = vector.extract_strided_slice %9 {offsets = [0, 2], sizes = [14, 14], strides = [1, 1]} : vector<14x19xf32> to vector<14x14xf32>
    %c2 = arith.constant 2 : index
    %77 = memref.load %arg1[%c2] : memref<144xf32, #tpu.memory_space<smem>>
    %c20 = arith.constant 20 : index
    %78 = memref.load %arg1[%c20] : memref<144xf32, #tpu.memory_space<smem>>
    %c38 = arith.constant 38 : index
    %79 = memref.load %arg1[%c38] : memref<144xf32, #tpu.memory_space<smem>>
    %c56 = arith.constant 56 : index
    %80 = memref.load %arg1[%c56] : memref<144xf32, #tpu.memory_space<smem>>
    %c74 = arith.constant 74 : index
    %81 = memref.load %arg1[%c74] : memref<144xf32, #tpu.memory_space<smem>>
    %c92 = arith.constant 92 : index
    %82 = memref.load %arg1[%c92] : memref<144xf32, #tpu.memory_space<smem>>
    %c110 = arith.constant 110 : index
    %83 = memref.load %arg1[%c110] : memref<144xf32, #tpu.memory_space<smem>>
    %c128 = arith.constant 128 : index
    %84 = memref.load %arg1[%c128] : memref<144xf32, #tpu.memory_space<smem>>
    %85 = vector.broadcast %77 : f32 to vector<14x14xf32>
    %86 = arith.mulf %85, %76 : vector<14x14xf32>
    %87 = arith.addf %54, %86 : vector<14x14xf32>
    %88 = vector.broadcast %78 : f32 to vector<14x14xf32>
    %89 = arith.mulf %88, %76 : vector<14x14xf32>
    %90 = arith.addf %57, %89 : vector<14x14xf32>
    %91 = vector.broadcast %79 : f32 to vector<14x14xf32>
    %92 = arith.mulf %91, %76 : vector<14x14xf32>
    %93 = arith.addf %60, %92 : vector<14x14xf32>
    %94 = vector.broadcast %80 : f32 to vector<14x14xf32>
    %95 = arith.mulf %94, %76 : vector<14x14xf32>
    %96 = arith.addf %63, %95 : vector<14x14xf32>
    %97 = vector.broadcast %81 : f32 to vector<14x14xf32>
    %98 = arith.mulf %97, %76 : vector<14x14xf32>
    %99 = arith.addf %66, %98 : vector<14x14xf32>
    %100 = vector.broadcast %82 : f32 to vector<14x14xf32>
    %101 = arith.mulf %100, %76 : vector<14x14xf32>
    %102 = arith.addf %69, %101 : vector<14x14xf32>
    %103 = vector.broadcast %83 : f32 to vector<14x14xf32>
    %104 = arith.mulf %103, %76 : vector<14x14xf32>
    %105 = arith.addf %72, %104 : vector<14x14xf32>
    %106 = vector.broadcast %84 : f32 to vector<14x14xf32>
    %107 = arith.mulf %106, %76 : vector<14x14xf32>
    %108 = arith.addf %75, %107 : vector<14x14xf32>
    %109 = vector.extract_strided_slice %9 {offsets = [0, 3], sizes = [14, 14], strides = [1, 1]} : vector<14x19xf32> to vector<14x14xf32>
    %c3 = arith.constant 3 : index
    %110 = memref.load %arg1[%c3] : memref<144xf32, #tpu.memory_space<smem>>
    %c21 = arith.constant 21 : index
    %111 = memref.load %arg1[%c21] : memref<144xf32, #tpu.memory_space<smem>>
    %c39 = arith.constant 39 : index
    %112 = memref.load %arg1[%c39] : memref<144xf32, #tpu.memory_space<smem>>
    %c57 = arith.constant 57 : index
    %113 = memref.load %arg1[%c57] : memref<144xf32, #tpu.memory_space<smem>>
    %c75 = arith.constant 75 : index
    %114 = memref.load %arg1[%c75] : memref<144xf32, #tpu.memory_space<smem>>
    %c93 = arith.constant 93 : index
    %115 = memref.load %arg1[%c93] : memref<144xf32, #tpu.memory_space<smem>>
    %c111 = arith.constant 111 : index
    %116 = memref.load %arg1[%c111] : memref<144xf32, #tpu.memory_space<smem>>
    %c129 = arith.constant 129 : index
    %117 = memref.load %arg1[%c129] : memref<144xf32, #tpu.memory_space<smem>>
    %118 = vector.broadcast %110 : f32 to vector<14x14xf32>
    %119 = arith.mulf %118, %109 : vector<14x14xf32>
    %120 = arith.addf %87, %119 : vector<14x14xf32>
    %121 = vector.broadcast %111 : f32 to vector<14x14xf32>
    %122 = arith.mulf %121, %109 : vector<14x14xf32>
    %123 = arith.addf %90, %122 : vector<14x14xf32>
    %124 = vector.broadcast %112 : f32 to vector<14x14xf32>
    %125 = arith.mulf %124, %109 : vector<14x14xf32>
    %126 = arith.addf %93, %125 : vector<14x14xf32>
    %127 = vector.broadcast %113 : f32 to vector<14x14xf32>
    %128 = arith.mulf %127, %109 : vector<14x14xf32>
    %129 = arith.addf %96, %128 : vector<14x14xf32>
    %130 = vector.broadcast %114 : f32 to vector<14x14xf32>
    %131 = arith.mulf %130, %109 : vector<14x14xf32>
    %132 = arith.addf %99, %131 : vector<14x14xf32>
    %133 = vector.broadcast %115 : f32 to vector<14x14xf32>
    %134 = arith.mulf %133, %109 : vector<14x14xf32>
    %135 = arith.addf %102, %134 : vector<14x14xf32>
    %136 = vector.broadcast %116 : f32 to vector<14x14xf32>
    %137 = arith.mulf %136, %109 : vector<14x14xf32>
    %138 = arith.addf %105, %137 : vector<14x14xf32>
    %139 = vector.broadcast %117 : f32 to vector<14x14xf32>
    %140 = arith.mulf %139, %109 : vector<14x14xf32>
    %141 = arith.addf %108, %140 : vector<14x14xf32>
    %142 = vector.extract_strided_slice %9 {offsets = [0, 4], sizes = [14, 14], strides = [1, 1]} : vector<14x19xf32> to vector<14x14xf32>
    %c4 = arith.constant 4 : index
    %143 = memref.load %arg1[%c4] : memref<144xf32, #tpu.memory_space<smem>>
    %c22 = arith.constant 22 : index
    %144 = memref.load %arg1[%c22] : memref<144xf32, #tpu.memory_space<smem>>
    %c40 = arith.constant 40 : index
    %145 = memref.load %arg1[%c40] : memref<144xf32, #tpu.memory_space<smem>>
    %c58 = arith.constant 58 : index
    %146 = memref.load %arg1[%c58] : memref<144xf32, #tpu.memory_space<smem>>
    %c76 = arith.constant 76 : index
    %147 = memref.load %arg1[%c76] : memref<144xf32, #tpu.memory_space<smem>>
    %c94 = arith.constant 94 : index
    %148 = memref.load %arg1[%c94] : memref<144xf32, #tpu.memory_space<smem>>
    %c112 = arith.constant 112 : index
    %149 = memref.load %arg1[%c112] : memref<144xf32, #tpu.memory_space<smem>>
    %c130 = arith.constant 130 : index
    %150 = memref.load %arg1[%c130] : memref<144xf32, #tpu.memory_space<smem>>
    %151 = vector.broadcast %143 : f32 to vector<14x14xf32>
    %152 = arith.mulf %151, %142 : vector<14x14xf32>
    %153 = arith.addf %120, %152 : vector<14x14xf32>
    %154 = vector.broadcast %144 : f32 to vector<14x14xf32>
    %155 = arith.mulf %154, %142 : vector<14x14xf32>
    %156 = arith.addf %123, %155 : vector<14x14xf32>
    %157 = vector.broadcast %145 : f32 to vector<14x14xf32>
    %158 = arith.mulf %157, %142 : vector<14x14xf32>
    %159 = arith.addf %126, %158 : vector<14x14xf32>
    %160 = vector.broadcast %146 : f32 to vector<14x14xf32>
    %161 = arith.mulf %160, %142 : vector<14x14xf32>
    %162 = arith.addf %129, %161 : vector<14x14xf32>
    %163 = vector.broadcast %147 : f32 to vector<14x14xf32>
    %164 = arith.mulf %163, %142 : vector<14x14xf32>
    %165 = arith.addf %132, %164 : vector<14x14xf32>
    %166 = vector.broadcast %148 : f32 to vector<14x14xf32>
    %167 = arith.mulf %166, %142 : vector<14x14xf32>
    %168 = arith.addf %135, %167 : vector<14x14xf32>
    %169 = vector.broadcast %149 : f32 to vector<14x14xf32>
    %170 = arith.mulf %169, %142 : vector<14x14xf32>
    %171 = arith.addf %138, %170 : vector<14x14xf32>
    %172 = vector.broadcast %150 : f32 to vector<14x14xf32>
    %173 = arith.mulf %172, %142 : vector<14x14xf32>
    %174 = arith.addf %141, %173 : vector<14x14xf32>
    %175 = vector.extract_strided_slice %9 {offsets = [0, 5], sizes = [14, 14], strides = [1, 1]} : vector<14x19xf32> to vector<14x14xf32>
    %c5 = arith.constant 5 : index
    %176 = memref.load %arg1[%c5] : memref<144xf32, #tpu.memory_space<smem>>
    %c23 = arith.constant 23 : index
    %177 = memref.load %arg1[%c23] : memref<144xf32, #tpu.memory_space<smem>>
    %c41 = arith.constant 41 : index
    %178 = memref.load %arg1[%c41] : memref<144xf32, #tpu.memory_space<smem>>
    %c59 = arith.constant 59 : index
    %179 = memref.load %arg1[%c59] : memref<144xf32, #tpu.memory_space<smem>>
    %c77 = arith.constant 77 : index
    %180 = memref.load %arg1[%c77] : memref<144xf32, #tpu.memory_space<smem>>
    %c95 = arith.constant 95 : index
    %181 = memref.load %arg1[%c95] : memref<144xf32, #tpu.memory_space<smem>>
    %c113 = arith.constant 113 : index
    %182 = memref.load %arg1[%c113] : memref<144xf32, #tpu.memory_space<smem>>
    %c131 = arith.constant 131 : index
    %183 = memref.load %arg1[%c131] : memref<144xf32, #tpu.memory_space<smem>>
    %184 = vector.broadcast %176 : f32 to vector<14x14xf32>
    %185 = arith.mulf %184, %175 : vector<14x14xf32>
    %186 = arith.addf %153, %185 : vector<14x14xf32>
    %187 = vector.broadcast %177 : f32 to vector<14x14xf32>
    %188 = arith.mulf %187, %175 : vector<14x14xf32>
    %189 = arith.addf %156, %188 : vector<14x14xf32>
    %190 = vector.broadcast %178 : f32 to vector<14x14xf32>
    %191 = arith.mulf %190, %175 : vector<14x14xf32>
    %192 = arith.addf %159, %191 : vector<14x14xf32>
    %193 = vector.broadcast %179 : f32 to vector<14x14xf32>
    %194 = arith.mulf %193, %175 : vector<14x14xf32>
    %195 = arith.addf %162, %194 : vector<14x14xf32>
    %196 = vector.broadcast %180 : f32 to vector<14x14xf32>
    %197 = arith.mulf %196, %175 : vector<14x14xf32>
    %198 = arith.addf %165, %197 : vector<14x14xf32>
    %199 = vector.broadcast %181 : f32 to vector<14x14xf32>
    %200 = arith.mulf %199, %175 : vector<14x14xf32>
    %201 = arith.addf %168, %200 : vector<14x14xf32>
    %202 = vector.broadcast %182 : f32 to vector<14x14xf32>
    %203 = arith.mulf %202, %175 : vector<14x14xf32>
    %204 = arith.addf %171, %203 : vector<14x14xf32>
    %205 = vector.broadcast %183 : f32 to vector<14x14xf32>
    %206 = arith.mulf %205, %175 : vector<14x14xf32>
    %207 = arith.addf %174, %206 : vector<14x14xf32>
    %c1_10 = arith.constant 1 : index
    %c0_11 = arith.constant 0 : index
    %c0_12 = arith.constant 0 : index
    %208 = vector.load %arg0[%c1_10, %c0_11, %c0_12] : memref<3x14x19xf32, #tpu.memory_space<vmem>>, vector<1x14x19xf32>
    %209 = vector.shape_cast %208 : vector<1x14x19xf32> to vector<14x19xf32>
    %210 = vector.extract_strided_slice %209 {offsets = [0, 0], sizes = [14, 14], strides = [1, 1]} : vector<14x19xf32> to vector<14x14xf32>
    %c6 = arith.constant 6 : index
    %211 = memref.load %arg1[%c6] : memref<144xf32, #tpu.memory_space<smem>>
    %c24 = arith.constant 24 : index
    %212 = memref.load %arg1[%c24] : memref<144xf32, #tpu.memory_space<smem>>
    %c42 = arith.constant 42 : index
    %213 = memref.load %arg1[%c42] : memref<144xf32, #tpu.memory_space<smem>>
    %c60 = arith.constant 60 : index
    %214 = memref.load %arg1[%c60] : memref<144xf32, #tpu.memory_space<smem>>
    %c78 = arith.constant 78 : index
    %215 = memref.load %arg1[%c78] : memref<144xf32, #tpu.memory_space<smem>>
    %c96 = arith.constant 96 : index
    %216 = memref.load %arg1[%c96] : memref<144xf32, #tpu.memory_space<smem>>
    %c114 = arith.constant 114 : index
    %217 = memref.load %arg1[%c114] : memref<144xf32, #tpu.memory_space<smem>>
    %c132 = arith.constant 132 : index
    %218 = memref.load %arg1[%c132] : memref<144xf32, #tpu.memory_space<smem>>
    %219 = vector.broadcast %211 : f32 to vector<14x14xf32>
    %220 = arith.mulf %219, %210 : vector<14x14xf32>
    %221 = arith.addf %186, %220 : vector<14x14xf32>
    %222 = vector.broadcast %212 : f32 to vector<14x14xf32>
    %223 = arith.mulf %222, %210 : vector<14x14xf32>
    %224 = arith.addf %189, %223 : vector<14x14xf32>
    %225 = vector.broadcast %213 : f32 to vector<14x14xf32>
    %226 = arith.mulf %225, %210 : vector<14x14xf32>
    %227 = arith.addf %192, %226 : vector<14x14xf32>
    %228 = vector.broadcast %214 : f32 to vector<14x14xf32>
    %229 = arith.mulf %228, %210 : vector<14x14xf32>
    %230 = arith.addf %195, %229 : vector<14x14xf32>
    %231 = vector.broadcast %215 : f32 to vector<14x14xf32>
    %232 = arith.mulf %231, %210 : vector<14x14xf32>
    %233 = arith.addf %198, %232 : vector<14x14xf32>
    %234 = vector.broadcast %216 : f32 to vector<14x14xf32>
    %235 = arith.mulf %234, %210 : vector<14x14xf32>
    %236 = arith.addf %201, %235 : vector<14x14xf32>
    %237 = vector.broadcast %217 : f32 to vector<14x14xf32>
    %238 = arith.mulf %237, %210 : vector<14x14xf32>
    %239 = arith.addf %204, %238 : vector<14x14xf32>
    %240 = vector.broadcast %218 : f32 to vector<14x14xf32>
    %241 = arith.mulf %240, %210 : vector<14x14xf32>
    %242 = arith.addf %207, %241 : vector<14x14xf32>
    %243 = vector.extract_strided_slice %209 {offsets = [0, 1], sizes = [14, 14], strides = [1, 1]} : vector<14x19xf32> to vector<14x14xf32>
    %c7 = arith.constant 7 : index
    %244 = memref.load %arg1[%c7] : memref<144xf32, #tpu.memory_space<smem>>
    %c25 = arith.constant 25 : index
    %245 = memref.load %arg1[%c25] : memref<144xf32, #tpu.memory_space<smem>>
    %c43 = arith.constant 43 : index
    %246 = memref.load %arg1[%c43] : memref<144xf32, #tpu.memory_space<smem>>
    %c61 = arith.constant 61 : index
    %247 = memref.load %arg1[%c61] : memref<144xf32, #tpu.memory_space<smem>>
    %c79 = arith.constant 79 : index
    %248 = memref.load %arg1[%c79] : memref<144xf32, #tpu.memory_space<smem>>
    %c97 = arith.constant 97 : index
    %249 = memref.load %arg1[%c97] : memref<144xf32, #tpu.memory_space<smem>>
    %c115 = arith.constant 115 : index
    %250 = memref.load %arg1[%c115] : memref<144xf32, #tpu.memory_space<smem>>
    %c133 = arith.constant 133 : index
    %251 = memref.load %arg1[%c133] : memref<144xf32, #tpu.memory_space<smem>>
    %252 = vector.broadcast %244 : f32 to vector<14x14xf32>
    %253 = arith.mulf %252, %243 : vector<14x14xf32>
    %254 = arith.addf %221, %253 : vector<14x14xf32>
    %255 = vector.broadcast %245 : f32 to vector<14x14xf32>
    %256 = arith.mulf %255, %243 : vector<14x14xf32>
    %257 = arith.addf %224, %256 : vector<14x14xf32>
    %258 = vector.broadcast %246 : f32 to vector<14x14xf32>
    %259 = arith.mulf %258, %243 : vector<14x14xf32>
    %260 = arith.addf %227, %259 : vector<14x14xf32>
    %261 = vector.broadcast %247 : f32 to vector<14x14xf32>
    %262 = arith.mulf %261, %243 : vector<14x14xf32>
    %263 = arith.addf %230, %262 : vector<14x14xf32>
    %264 = vector.broadcast %248 : f32 to vector<14x14xf32>
    %265 = arith.mulf %264, %243 : vector<14x14xf32>
    %266 = arith.addf %233, %265 : vector<14x14xf32>
    %267 = vector.broadcast %249 : f32 to vector<14x14xf32>
    %268 = arith.mulf %267, %243 : vector<14x14xf32>
    %269 = arith.addf %236, %268 : vector<14x14xf32>
    %270 = vector.broadcast %250 : f32 to vector<14x14xf32>
    %271 = arith.mulf %270, %243 : vector<14x14xf32>
    %272 = arith.addf %239, %271 : vector<14x14xf32>
    %273 = vector.broadcast %251 : f32 to vector<14x14xf32>
    %274 = arith.mulf %273, %243 : vector<14x14xf32>
    %275 = arith.addf %242, %274 : vector<14x14xf32>
    %276 = vector.extract_strided_slice %209 {offsets = [0, 2], sizes = [14, 14], strides = [1, 1]} : vector<14x19xf32> to vector<14x14xf32>
    %c8 = arith.constant 8 : index
    %277 = memref.load %arg1[%c8] : memref<144xf32, #tpu.memory_space<smem>>
    %c26 = arith.constant 26 : index
    %278 = memref.load %arg1[%c26] : memref<144xf32, #tpu.memory_space<smem>>
    %c44 = arith.constant 44 : index
    %279 = memref.load %arg1[%c44] : memref<144xf32, #tpu.memory_space<smem>>
    %c62 = arith.constant 62 : index
    %280 = memref.load %arg1[%c62] : memref<144xf32, #tpu.memory_space<smem>>
    %c80 = arith.constant 80 : index
    %281 = memref.load %arg1[%c80] : memref<144xf32, #tpu.memory_space<smem>>
    %c98 = arith.constant 98 : index
    %282 = memref.load %arg1[%c98] : memref<144xf32, #tpu.memory_space<smem>>
    %c116 = arith.constant 116 : index
    %283 = memref.load %arg1[%c116] : memref<144xf32, #tpu.memory_space<smem>>
    %c134 = arith.constant 134 : index
    %284 = memref.load %arg1[%c134] : memref<144xf32, #tpu.memory_space<smem>>
    %285 = vector.broadcast %277 : f32 to vector<14x14xf32>
    %286 = arith.mulf %285, %276 : vector<14x14xf32>
    %287 = arith.addf %254, %286 : vector<14x14xf32>
    %288 = vector.broadcast %278 : f32 to vector<14x14xf32>
    %289 = arith.mulf %288, %276 : vector<14x14xf32>
    %290 = arith.addf %257, %289 : vector<14x14xf32>
    %291 = vector.broadcast %279 : f32 to vector<14x14xf32>
    %292 = arith.mulf %291, %276 : vector<14x14xf32>
    %293 = arith.addf %260, %292 : vector<14x14xf32>
    %294 = vector.broadcast %280 : f32 to vector<14x14xf32>
    %295 = arith.mulf %294, %276 : vector<14x14xf32>
    %296 = arith.addf %263, %295 : vector<14x14xf32>
    %297 = vector.broadcast %281 : f32 to vector<14x14xf32>
    %298 = arith.mulf %297, %276 : vector<14x14xf32>
    %299 = arith.addf %266, %298 : vector<14x14xf32>
    %300 = vector.broadcast %282 : f32 to vector<14x14xf32>
    %301 = arith.mulf %300, %276 : vector<14x14xf32>
    %302 = arith.addf %269, %301 : vector<14x14xf32>
    %303 = vector.broadcast %283 : f32 to vector<14x14xf32>
    %304 = arith.mulf %303, %276 : vector<14x14xf32>
    %305 = arith.addf %272, %304 : vector<14x14xf32>
    %306 = vector.broadcast %284 : f32 to vector<14x14xf32>
    %307 = arith.mulf %306, %276 : vector<14x14xf32>
    %308 = arith.addf %275, %307 : vector<14x14xf32>
    %309 = vector.extract_strided_slice %209 {offsets = [0, 3], sizes = [14, 14], strides = [1, 1]} : vector<14x19xf32> to vector<14x14xf32>
    %c9 = arith.constant 9 : index
    %310 = memref.load %arg1[%c9] : memref<144xf32, #tpu.memory_space<smem>>
    %c27 = arith.constant 27 : index
    %311 = memref.load %arg1[%c27] : memref<144xf32, #tpu.memory_space<smem>>
    %c45 = arith.constant 45 : index
    %312 = memref.load %arg1[%c45] : memref<144xf32, #tpu.memory_space<smem>>
    %c63 = arith.constant 63 : index
    %313 = memref.load %arg1[%c63] : memref<144xf32, #tpu.memory_space<smem>>
    %c81 = arith.constant 81 : index
    %314 = memref.load %arg1[%c81] : memref<144xf32, #tpu.memory_space<smem>>
    %c99 = arith.constant 99 : index
    %315 = memref.load %arg1[%c99] : memref<144xf32, #tpu.memory_space<smem>>
    %c117 = arith.constant 117 : index
    %316 = memref.load %arg1[%c117] : memref<144xf32, #tpu.memory_space<smem>>
    %c135 = arith.constant 135 : index
    %317 = memref.load %arg1[%c135] : memref<144xf32, #tpu.memory_space<smem>>
    %318 = vector.broadcast %310 : f32 to vector<14x14xf32>
    %319 = arith.mulf %318, %309 : vector<14x14xf32>
    %320 = arith.addf %287, %319 : vector<14x14xf32>
    %321 = vector.broadcast %311 : f32 to vector<14x14xf32>
    %322 = arith.mulf %321, %309 : vector<14x14xf32>
    %323 = arith.addf %290, %322 : vector<14x14xf32>
    %324 = vector.broadcast %312 : f32 to vector<14x14xf32>
    %325 = arith.mulf %324, %309 : vector<14x14xf32>
    %326 = arith.addf %293, %325 : vector<14x14xf32>
    %327 = vector.broadcast %313 : f32 to vector<14x14xf32>
    %328 = arith.mulf %327, %309 : vector<14x14xf32>
    %329 = arith.addf %296, %328 : vector<14x14xf32>
    %330 = vector.broadcast %314 : f32 to vector<14x14xf32>
    %331 = arith.mulf %330, %309 : vector<14x14xf32>
    %332 = arith.addf %299, %331 : vector<14x14xf32>
    %333 = vector.broadcast %315 : f32 to vector<14x14xf32>
    %334 = arith.mulf %333, %309 : vector<14x14xf32>
    %335 = arith.addf %302, %334 : vector<14x14xf32>
    %336 = vector.broadcast %316 : f32 to vector<14x14xf32>
    %337 = arith.mulf %336, %309 : vector<14x14xf32>
    %338 = arith.addf %305, %337 : vector<14x14xf32>
    %339 = vector.broadcast %317 : f32 to vector<14x14xf32>
    %340 = arith.mulf %339, %309 : vector<14x14xf32>
    %341 = arith.addf %308, %340 : vector<14x14xf32>
    %342 = vector.extract_strided_slice %209 {offsets = [0, 4], sizes = [14, 14], strides = [1, 1]} : vector<14x19xf32> to vector<14x14xf32>
    %c10 = arith.constant 10 : index
    %343 = memref.load %arg1[%c10] : memref<144xf32, #tpu.memory_space<smem>>
    %c28 = arith.constant 28 : index
    %344 = memref.load %arg1[%c28] : memref<144xf32, #tpu.memory_space<smem>>
    %c46 = arith.constant 46 : index
    %345 = memref.load %arg1[%c46] : memref<144xf32, #tpu.memory_space<smem>>
    %c64 = arith.constant 64 : index
    %346 = memref.load %arg1[%c64] : memref<144xf32, #tpu.memory_space<smem>>
    %c82 = arith.constant 82 : index
    %347 = memref.load %arg1[%c82] : memref<144xf32, #tpu.memory_space<smem>>
    %c100 = arith.constant 100 : index
    %348 = memref.load %arg1[%c100] : memref<144xf32, #tpu.memory_space<smem>>
    %c118 = arith.constant 118 : index
    %349 = memref.load %arg1[%c118] : memref<144xf32, #tpu.memory_space<smem>>
    %c136 = arith.constant 136 : index
    %350 = memref.load %arg1[%c136] : memref<144xf32, #tpu.memory_space<smem>>
    %351 = vector.broadcast %343 : f32 to vector<14x14xf32>
    %352 = arith.mulf %351, %342 : vector<14x14xf32>
    %353 = arith.addf %320, %352 : vector<14x14xf32>
    %354 = vector.broadcast %344 : f32 to vector<14x14xf32>
    %355 = arith.mulf %354, %342 : vector<14x14xf32>
    %356 = arith.addf %323, %355 : vector<14x14xf32>
    %357 = vector.broadcast %345 : f32 to vector<14x14xf32>
    %358 = arith.mulf %357, %342 : vector<14x14xf32>
    %359 = arith.addf %326, %358 : vector<14x14xf32>
    %360 = vector.broadcast %346 : f32 to vector<14x14xf32>
    %361 = arith.mulf %360, %342 : vector<14x14xf32>
    %362 = arith.addf %329, %361 : vector<14x14xf32>
    %363 = vector.broadcast %347 : f32 to vector<14x14xf32>
    %364 = arith.mulf %363, %342 : vector<14x14xf32>
    %365 = arith.addf %332, %364 : vector<14x14xf32>
    %366 = vector.broadcast %348 : f32 to vector<14x14xf32>
    %367 = arith.mulf %366, %342 : vector<14x14xf32>
    %368 = arith.addf %335, %367 : vector<14x14xf32>
    %369 = vector.broadcast %349 : f32 to vector<14x14xf32>
    %370 = arith.mulf %369, %342 : vector<14x14xf32>
    %371 = arith.addf %338, %370 : vector<14x14xf32>
    %372 = vector.broadcast %350 : f32 to vector<14x14xf32>
    %373 = arith.mulf %372, %342 : vector<14x14xf32>
    %374 = arith.addf %341, %373 : vector<14x14xf32>
    %375 = vector.extract_strided_slice %209 {offsets = [0, 5], sizes = [14, 14], strides = [1, 1]} : vector<14x19xf32> to vector<14x14xf32>
    %c11 = arith.constant 11 : index
    %376 = memref.load %arg1[%c11] : memref<144xf32, #tpu.memory_space<smem>>
    %c29 = arith.constant 29 : index
    %377 = memref.load %arg1[%c29] : memref<144xf32, #tpu.memory_space<smem>>
    %c47 = arith.constant 47 : index
    %378 = memref.load %arg1[%c47] : memref<144xf32, #tpu.memory_space<smem>>
    %c65 = arith.constant 65 : index
    %379 = memref.load %arg1[%c65] : memref<144xf32, #tpu.memory_space<smem>>
    %c83 = arith.constant 83 : index
    %380 = memref.load %arg1[%c83] : memref<144xf32, #tpu.memory_space<smem>>
    %c101 = arith.constant 101 : index
    %381 = memref.load %arg1[%c101] : memref<144xf32, #tpu.memory_space<smem>>
    %c119 = arith.constant 119 : index
    %382 = memref.load %arg1[%c119] : memref<144xf32, #tpu.memory_space<smem>>
    %c137 = arith.constant 137 : index
    %383 = memref.load %arg1[%c137] : memref<144xf32, #tpu.memory_space<smem>>
    %384 = vector.broadcast %376 : f32 to vector<14x14xf32>
    %385 = arith.mulf %384, %375 : vector<14x14xf32>
    %386 = arith.addf %353, %385 : vector<14x14xf32>
    %387 = vector.broadcast %377 : f32 to vector<14x14xf32>
    %388 = arith.mulf %387, %375 : vector<14x14xf32>
    %389 = arith.addf %356, %388 : vector<14x14xf32>
    %390 = vector.broadcast %378 : f32 to vector<14x14xf32>
    %391 = arith.mulf %390, %375 : vector<14x14xf32>
    %392 = arith.addf %359, %391 : vector<14x14xf32>
    %393 = vector.broadcast %379 : f32 to vector<14x14xf32>
    %394 = arith.mulf %393, %375 : vector<14x14xf32>
    %395 = arith.addf %362, %394 : vector<14x14xf32>
    %396 = vector.broadcast %380 : f32 to vector<14x14xf32>
    %397 = arith.mulf %396, %375 : vector<14x14xf32>
    %398 = arith.addf %365, %397 : vector<14x14xf32>
    %399 = vector.broadcast %381 : f32 to vector<14x14xf32>
    %400 = arith.mulf %399, %375 : vector<14x14xf32>
    %401 = arith.addf %368, %400 : vector<14x14xf32>
    %402 = vector.broadcast %382 : f32 to vector<14x14xf32>
    %403 = arith.mulf %402, %375 : vector<14x14xf32>
    %404 = arith.addf %371, %403 : vector<14x14xf32>
    %405 = vector.broadcast %383 : f32 to vector<14x14xf32>
    %406 = arith.mulf %405, %375 : vector<14x14xf32>
    %407 = arith.addf %374, %406 : vector<14x14xf32>
    %c2_13 = arith.constant 2 : index
    %c0_14 = arith.constant 0 : index
    %c0_15 = arith.constant 0 : index
    %408 = vector.load %arg0[%c2_13, %c0_14, %c0_15] : memref<3x14x19xf32, #tpu.memory_space<vmem>>, vector<1x14x19xf32>
    %409 = vector.shape_cast %408 : vector<1x14x19xf32> to vector<14x19xf32>
    %410 = vector.extract_strided_slice %409 {offsets = [0, 0], sizes = [14, 14], strides = [1, 1]} : vector<14x19xf32> to vector<14x14xf32>
    %c12 = arith.constant 12 : index
    %411 = memref.load %arg1[%c12] : memref<144xf32, #tpu.memory_space<smem>>
    %c30 = arith.constant 30 : index
    %412 = memref.load %arg1[%c30] : memref<144xf32, #tpu.memory_space<smem>>
    %c48 = arith.constant 48 : index
    %413 = memref.load %arg1[%c48] : memref<144xf32, #tpu.memory_space<smem>>
    %c66 = arith.constant 66 : index
    %414 = memref.load %arg1[%c66] : memref<144xf32, #tpu.memory_space<smem>>
    %c84 = arith.constant 84 : index
    %415 = memref.load %arg1[%c84] : memref<144xf32, #tpu.memory_space<smem>>
    %c102 = arith.constant 102 : index
    %416 = memref.load %arg1[%c102] : memref<144xf32, #tpu.memory_space<smem>>
    %c120 = arith.constant 120 : index
    %417 = memref.load %arg1[%c120] : memref<144xf32, #tpu.memory_space<smem>>
    %c138 = arith.constant 138 : index
    %418 = memref.load %arg1[%c138] : memref<144xf32, #tpu.memory_space<smem>>
    %419 = vector.broadcast %411 : f32 to vector<14x14xf32>
    %420 = arith.mulf %419, %410 : vector<14x14xf32>
    %421 = arith.addf %386, %420 : vector<14x14xf32>
    %422 = vector.broadcast %412 : f32 to vector<14x14xf32>
    %423 = arith.mulf %422, %410 : vector<14x14xf32>
    %424 = arith.addf %389, %423 : vector<14x14xf32>
    %425 = vector.broadcast %413 : f32 to vector<14x14xf32>
    %426 = arith.mulf %425, %410 : vector<14x14xf32>
    %427 = arith.addf %392, %426 : vector<14x14xf32>
    %428 = vector.broadcast %414 : f32 to vector<14x14xf32>
    %429 = arith.mulf %428, %410 : vector<14x14xf32>
    %430 = arith.addf %395, %429 : vector<14x14xf32>
    %431 = vector.broadcast %415 : f32 to vector<14x14xf32>
    %432 = arith.mulf %431, %410 : vector<14x14xf32>
    %433 = arith.addf %398, %432 : vector<14x14xf32>
    %434 = vector.broadcast %416 : f32 to vector<14x14xf32>
    %435 = arith.mulf %434, %410 : vector<14x14xf32>
    %436 = arith.addf %401, %435 : vector<14x14xf32>
    %437 = vector.broadcast %417 : f32 to vector<14x14xf32>
    %438 = arith.mulf %437, %410 : vector<14x14xf32>
    %439 = arith.addf %404, %438 : vector<14x14xf32>
    %440 = vector.broadcast %418 : f32 to vector<14x14xf32>
    %441 = arith.mulf %440, %410 : vector<14x14xf32>
    %442 = arith.addf %407, %441 : vector<14x14xf32>
    %443 = vector.extract_strided_slice %409 {offsets = [0, 1], sizes = [14, 14], strides = [1, 1]} : vector<14x19xf32> to vector<14x14xf32>
    %c13 = arith.constant 13 : index
    %444 = memref.load %arg1[%c13] : memref<144xf32, #tpu.memory_space<smem>>
    %c31 = arith.constant 31 : index
    %445 = memref.load %arg1[%c31] : memref<144xf32, #tpu.memory_space<smem>>
    %c49 = arith.constant 49 : index
    %446 = memref.load %arg1[%c49] : memref<144xf32, #tpu.memory_space<smem>>
    %c67 = arith.constant 67 : index
    %447 = memref.load %arg1[%c67] : memref<144xf32, #tpu.memory_space<smem>>
    %c85 = arith.constant 85 : index
    %448 = memref.load %arg1[%c85] : memref<144xf32, #tpu.memory_space<smem>>
    %c103 = arith.constant 103 : index
    %449 = memref.load %arg1[%c103] : memref<144xf32, #tpu.memory_space<smem>>
    %c121 = arith.constant 121 : index
    %450 = memref.load %arg1[%c121] : memref<144xf32, #tpu.memory_space<smem>>
    %c139 = arith.constant 139 : index
    %451 = memref.load %arg1[%c139] : memref<144xf32, #tpu.memory_space<smem>>
    %452 = vector.broadcast %444 : f32 to vector<14x14xf32>
    %453 = arith.mulf %452, %443 : vector<14x14xf32>
    %454 = arith.addf %421, %453 : vector<14x14xf32>
    %455 = vector.broadcast %445 : f32 to vector<14x14xf32>
    %456 = arith.mulf %455, %443 : vector<14x14xf32>
    %457 = arith.addf %424, %456 : vector<14x14xf32>
    %458 = vector.broadcast %446 : f32 to vector<14x14xf32>
    %459 = arith.mulf %458, %443 : vector<14x14xf32>
    %460 = arith.addf %427, %459 : vector<14x14xf32>
    %461 = vector.broadcast %447 : f32 to vector<14x14xf32>
    %462 = arith.mulf %461, %443 : vector<14x14xf32>
    %463 = arith.addf %430, %462 : vector<14x14xf32>
    %464 = vector.broadcast %448 : f32 to vector<14x14xf32>
    %465 = arith.mulf %464, %443 : vector<14x14xf32>
    %466 = arith.addf %433, %465 : vector<14x14xf32>
    %467 = vector.broadcast %449 : f32 to vector<14x14xf32>
    %468 = arith.mulf %467, %443 : vector<14x14xf32>
    %469 = arith.addf %436, %468 : vector<14x14xf32>
    %470 = vector.broadcast %450 : f32 to vector<14x14xf32>
    %471 = arith.mulf %470, %443 : vector<14x14xf32>
    %472 = arith.addf %439, %471 : vector<14x14xf32>
    %473 = vector.broadcast %451 : f32 to vector<14x14xf32>
    %474 = arith.mulf %473, %443 : vector<14x14xf32>
    %475 = arith.addf %442, %474 : vector<14x14xf32>
    %476 = vector.extract_strided_slice %409 {offsets = [0, 2], sizes = [14, 14], strides = [1, 1]} : vector<14x19xf32> to vector<14x14xf32>
    %c14 = arith.constant 14 : index
    %477 = memref.load %arg1[%c14] : memref<144xf32, #tpu.memory_space<smem>>
    %c32 = arith.constant 32 : index
    %478 = memref.load %arg1[%c32] : memref<144xf32, #tpu.memory_space<smem>>
    %c50 = arith.constant 50 : index
    %479 = memref.load %arg1[%c50] : memref<144xf32, #tpu.memory_space<smem>>
    %c68 = arith.constant 68 : index
    %480 = memref.load %arg1[%c68] : memref<144xf32, #tpu.memory_space<smem>>
    %c86 = arith.constant 86 : index
    %481 = memref.load %arg1[%c86] : memref<144xf32, #tpu.memory_space<smem>>
    %c104 = arith.constant 104 : index
    %482 = memref.load %arg1[%c104] : memref<144xf32, #tpu.memory_space<smem>>
    %c122 = arith.constant 122 : index
    %483 = memref.load %arg1[%c122] : memref<144xf32, #tpu.memory_space<smem>>
    %c140 = arith.constant 140 : index
    %484 = memref.load %arg1[%c140] : memref<144xf32, #tpu.memory_space<smem>>
    %485 = vector.broadcast %477 : f32 to vector<14x14xf32>
    %486 = arith.mulf %485, %476 : vector<14x14xf32>
    %487 = arith.addf %454, %486 : vector<14x14xf32>
    %488 = vector.broadcast %478 : f32 to vector<14x14xf32>
    %489 = arith.mulf %488, %476 : vector<14x14xf32>
    %490 = arith.addf %457, %489 : vector<14x14xf32>
    %491 = vector.broadcast %479 : f32 to vector<14x14xf32>
    %492 = arith.mulf %491, %476 : vector<14x14xf32>
    %493 = arith.addf %460, %492 : vector<14x14xf32>
    %494 = vector.broadcast %480 : f32 to vector<14x14xf32>
    %495 = arith.mulf %494, %476 : vector<14x14xf32>
    %496 = arith.addf %463, %495 : vector<14x14xf32>
    %497 = vector.broadcast %481 : f32 to vector<14x14xf32>
    %498 = arith.mulf %497, %476 : vector<14x14xf32>
    %499 = arith.addf %466, %498 : vector<14x14xf32>
    %500 = vector.broadcast %482 : f32 to vector<14x14xf32>
    %501 = arith.mulf %500, %476 : vector<14x14xf32>
    %502 = arith.addf %469, %501 : vector<14x14xf32>
    %503 = vector.broadcast %483 : f32 to vector<14x14xf32>
    %504 = arith.mulf %503, %476 : vector<14x14xf32>
    %505 = arith.addf %472, %504 : vector<14x14xf32>
    %506 = vector.broadcast %484 : f32 to vector<14x14xf32>
    %507 = arith.mulf %506, %476 : vector<14x14xf32>
    %508 = arith.addf %475, %507 : vector<14x14xf32>
    %509 = vector.extract_strided_slice %409 {offsets = [0, 3], sizes = [14, 14], strides = [1, 1]} : vector<14x19xf32> to vector<14x14xf32>
    %c15 = arith.constant 15 : index
    %510 = memref.load %arg1[%c15] : memref<144xf32, #tpu.memory_space<smem>>
    %c33 = arith.constant 33 : index
    %511 = memref.load %arg1[%c33] : memref<144xf32, #tpu.memory_space<smem>>
    %c51 = arith.constant 51 : index
    %512 = memref.load %arg1[%c51] : memref<144xf32, #tpu.memory_space<smem>>
    %c69 = arith.constant 69 : index
    %513 = memref.load %arg1[%c69] : memref<144xf32, #tpu.memory_space<smem>>
    %c87 = arith.constant 87 : index
    %514 = memref.load %arg1[%c87] : memref<144xf32, #tpu.memory_space<smem>>
    %c105 = arith.constant 105 : index
    %515 = memref.load %arg1[%c105] : memref<144xf32, #tpu.memory_space<smem>>
    %c123 = arith.constant 123 : index
    %516 = memref.load %arg1[%c123] : memref<144xf32, #tpu.memory_space<smem>>
    %c141 = arith.constant 141 : index
    %517 = memref.load %arg1[%c141] : memref<144xf32, #tpu.memory_space<smem>>
    %518 = vector.broadcast %510 : f32 to vector<14x14xf32>
    %519 = arith.mulf %518, %509 : vector<14x14xf32>
    %520 = arith.addf %487, %519 : vector<14x14xf32>
    %521 = vector.broadcast %511 : f32 to vector<14x14xf32>
    %522 = arith.mulf %521, %509 : vector<14x14xf32>
    %523 = arith.addf %490, %522 : vector<14x14xf32>
    %524 = vector.broadcast %512 : f32 to vector<14x14xf32>
    %525 = arith.mulf %524, %509 : vector<14x14xf32>
    %526 = arith.addf %493, %525 : vector<14x14xf32>
    %527 = vector.broadcast %513 : f32 to vector<14x14xf32>
    %528 = arith.mulf %527, %509 : vector<14x14xf32>
    %529 = arith.addf %496, %528 : vector<14x14xf32>
    %530 = vector.broadcast %514 : f32 to vector<14x14xf32>
    %531 = arith.mulf %530, %509 : vector<14x14xf32>
    %532 = arith.addf %499, %531 : vector<14x14xf32>
    %533 = vector.broadcast %515 : f32 to vector<14x14xf32>
    %534 = arith.mulf %533, %509 : vector<14x14xf32>
    %535 = arith.addf %502, %534 : vector<14x14xf32>
    %536 = vector.broadcast %516 : f32 to vector<14x14xf32>
    %537 = arith.mulf %536, %509 : vector<14x14xf32>
    %538 = arith.addf %505, %537 : vector<14x14xf32>
    %539 = vector.broadcast %517 : f32 to vector<14x14xf32>
    %540 = arith.mulf %539, %509 : vector<14x14xf32>
    %541 = arith.addf %508, %540 : vector<14x14xf32>
    %542 = vector.extract_strided_slice %409 {offsets = [0, 4], sizes = [14, 14], strides = [1, 1]} : vector<14x19xf32> to vector<14x14xf32>
    %c16 = arith.constant 16 : index
    %543 = memref.load %arg1[%c16] : memref<144xf32, #tpu.memory_space<smem>>
    %c34 = arith.constant 34 : index
    %544 = memref.load %arg1[%c34] : memref<144xf32, #tpu.memory_space<smem>>
    %c52 = arith.constant 52 : index
    %545 = memref.load %arg1[%c52] : memref<144xf32, #tpu.memory_space<smem>>
    %c70 = arith.constant 70 : index
    %546 = memref.load %arg1[%c70] : memref<144xf32, #tpu.memory_space<smem>>
    %c88 = arith.constant 88 : index
    %547 = memref.load %arg1[%c88] : memref<144xf32, #tpu.memory_space<smem>>
    %c106 = arith.constant 106 : index
    %548 = memref.load %arg1[%c106] : memref<144xf32, #tpu.memory_space<smem>>
    %c124 = arith.constant 124 : index
    %549 = memref.load %arg1[%c124] : memref<144xf32, #tpu.memory_space<smem>>
    %c142 = arith.constant 142 : index
    %550 = memref.load %arg1[%c142] : memref<144xf32, #tpu.memory_space<smem>>
    %551 = vector.broadcast %543 : f32 to vector<14x14xf32>
    %552 = arith.mulf %551, %542 : vector<14x14xf32>
    %553 = arith.addf %520, %552 : vector<14x14xf32>
    %554 = vector.broadcast %544 : f32 to vector<14x14xf32>
    %555 = arith.mulf %554, %542 : vector<14x14xf32>
    %556 = arith.addf %523, %555 : vector<14x14xf32>
    %557 = vector.broadcast %545 : f32 to vector<14x14xf32>
    %558 = arith.mulf %557, %542 : vector<14x14xf32>
    %559 = arith.addf %526, %558 : vector<14x14xf32>
    %560 = vector.broadcast %546 : f32 to vector<14x14xf32>
    %561 = arith.mulf %560, %542 : vector<14x14xf32>
    %562 = arith.addf %529, %561 : vector<14x14xf32>
    %563 = vector.broadcast %547 : f32 to vector<14x14xf32>
    %564 = arith.mulf %563, %542 : vector<14x14xf32>
    %565 = arith.addf %532, %564 : vector<14x14xf32>
    %566 = vector.broadcast %548 : f32 to vector<14x14xf32>
    %567 = arith.mulf %566, %542 : vector<14x14xf32>
    %568 = arith.addf %535, %567 : vector<14x14xf32>
    %569 = vector.broadcast %549 : f32 to vector<14x14xf32>
    %570 = arith.mulf %569, %542 : vector<14x14xf32>
    %571 = arith.addf %538, %570 : vector<14x14xf32>
    %572 = vector.broadcast %550 : f32 to vector<14x14xf32>
    %573 = arith.mulf %572, %542 : vector<14x14xf32>
    %574 = arith.addf %541, %573 : vector<14x14xf32>
    %575 = vector.extract_strided_slice %409 {offsets = [0, 5], sizes = [14, 14], strides = [1, 1]} : vector<14x19xf32> to vector<14x14xf32>
    %c17 = arith.constant 17 : index
    %576 = memref.load %arg1[%c17] : memref<144xf32, #tpu.memory_space<smem>>
    %c35 = arith.constant 35 : index
    %577 = memref.load %arg1[%c35] : memref<144xf32, #tpu.memory_space<smem>>
    %c53 = arith.constant 53 : index
    %578 = memref.load %arg1[%c53] : memref<144xf32, #tpu.memory_space<smem>>
    %c71 = arith.constant 71 : index
    %579 = memref.load %arg1[%c71] : memref<144xf32, #tpu.memory_space<smem>>
    %c89 = arith.constant 89 : index
    %580 = memref.load %arg1[%c89] : memref<144xf32, #tpu.memory_space<smem>>
    %c107 = arith.constant 107 : index
    %581 = memref.load %arg1[%c107] : memref<144xf32, #tpu.memory_space<smem>>
    %c125 = arith.constant 125 : index
    %582 = memref.load %arg1[%c125] : memref<144xf32, #tpu.memory_space<smem>>
    %c143 = arith.constant 143 : index
    %583 = memref.load %arg1[%c143] : memref<144xf32, #tpu.memory_space<smem>>
    %584 = vector.broadcast %576 : f32 to vector<14x14xf32>
    %585 = arith.mulf %584, %575 : vector<14x14xf32>
    %586 = arith.addf %553, %585 : vector<14x14xf32>
    %587 = vector.broadcast %577 : f32 to vector<14x14xf32>
    %588 = arith.mulf %587, %575 : vector<14x14xf32>
    %589 = arith.addf %556, %588 : vector<14x14xf32>
    %590 = vector.broadcast %578 : f32 to vector<14x14xf32>
    %591 = arith.mulf %590, %575 : vector<14x14xf32>
    %592 = arith.addf %559, %591 : vector<14x14xf32>
    %593 = vector.broadcast %579 : f32 to vector<14x14xf32>
    %594 = arith.mulf %593, %575 : vector<14x14xf32>
    %595 = arith.addf %562, %594 : vector<14x14xf32>
    %596 = vector.broadcast %580 : f32 to vector<14x14xf32>
    %597 = arith.mulf %596, %575 : vector<14x14xf32>
    %598 = arith.addf %565, %597 : vector<14x14xf32>
    %599 = vector.broadcast %581 : f32 to vector<14x14xf32>
    %600 = arith.mulf %599, %575 : vector<14x14xf32>
    %601 = arith.addf %568, %600 : vector<14x14xf32>
    %602 = vector.broadcast %582 : f32 to vector<14x14xf32>
    %603 = arith.mulf %602, %575 : vector<14x14xf32>
    %604 = arith.addf %571, %603 : vector<14x14xf32>
    %605 = vector.broadcast %583 : f32 to vector<14x14xf32>
    %606 = arith.mulf %605, %575 : vector<14x14xf32>
    %607 = arith.addf %574, %606 : vector<14x14xf32>
    %cst_16 = arith.constant 0.000000e+00 : f32
    %cst_17 = arith.constant 1.000000e+00 : f32
    %608 = vector.broadcast %cst_16 : f32 to vector<14x14xf32>
    %609 = arith.maximumf %608, %586 : vector<14x14xf32>
    %610 = vector.broadcast %cst_17 : f32 to vector<14x14xf32>
    %611 = arith.minimumf %610, %609 : vector<14x14xf32>
    %c0_18 = arith.constant 0 : index
    %c0_19 = arith.constant 0 : index
    %c0_20 = arith.constant 0 : index
    %612 = vector.load %arg2[%c0_18, %c0_19, %c0_20] : memref<8x14x14xf32, #tpu.memory_space<vmem>>, vector<1x14x14xf32>
    %613 = vector.shape_cast %612 : vector<1x14x14xf32> to vector<14x14xf32>
    %614 = vector.shape_cast %611 : vector<14x14xf32> to vector<1x14x14xf32>
    tpu.vector_store %arg2[%c0_18, %c0_19, %c0_20], %614 {strides = array<i32>} : memref<8x14x14xf32, #tpu.memory_space<vmem>>, vector<1x14x14xf32>,
    %cst_21 = arith.constant 0.000000e+00 : f32
    %cst_22 = arith.constant 1.000000e+00 : f32
    %615 = vector.broadcast %cst_21 : f32 to vector<14x14xf32>
    %616 = arith.maximumf %615, %589 : vector<14x14xf32>
    %617 = vector.broadcast %cst_22 : f32 to vector<14x14xf32>
    %618 = arith.minimumf %617, %616 : vector<14x14xf32>
    %c1_23 = arith.constant 1 : index
    %c0_24 = arith.constant 0 : index
    %c0_25 = arith.constant 0 : index
    %619 = vector.load %arg2[%c1_23, %c0_24, %c0_25] : memref<8x14x14xf32, #tpu.memory_space<vmem>>, vector<1x14x14xf32>
    %620 = vector.shape_cast %619 : vector<1x14x14xf32> to vector<14x14xf32>
    %621 = vector.shape_cast %618 : vector<14x14xf32> to vector<1x14x14xf32>
    tpu.vector_store %arg2[%c1_23, %c0_24, %c0_25], %621 {strides = array<i32>} : memref<8x14x14xf32, #tpu.memory_space<vmem>>, vector<1x14x14xf32>,
    %cst_26 = arith.constant 0.000000e+00 : f32
    %cst_27 = arith.constant 1.000000e+00 : f32
    %622 = vector.broadcast %cst_26 : f32 to vector<14x14xf32>
    %623 = arith.maximumf %622, %592 : vector<14x14xf32>
    %624 = vector.broadcast %cst_27 : f32 to vector<14x14xf32>
    %625 = arith.minimumf %624, %623 : vector<14x14xf32>
    %c2_28 = arith.constant 2 : index
    %c0_29 = arith.constant 0 : index
    %c0_30 = arith.constant 0 : index
    %626 = vector.load %arg2[%c2_28, %c0_29, %c0_30] : memref<8x14x14xf32, #tpu.memory_space<vmem>>, vector<1x14x14xf32>
    %627 = vector.shape_cast %626 : vector<1x14x14xf32> to vector<14x14xf32>
    %628 = vector.shape_cast %625 : vector<14x14xf32> to vector<1x14x14xf32>
    tpu.vector_store %arg2[%c2_28, %c0_29, %c0_30], %628 {strides = array<i32>} : memref<8x14x14xf32, #tpu.memory_space<vmem>>, vector<1x14x14xf32>,
    %cst_31 = arith.constant 0.000000e+00 : f32
    %cst_32 = arith.constant 1.000000e+00 : f32
    %629 = vector.broadcast %cst_31 : f32 to vector<14x14xf32>
    %630 = arith.maximumf %629, %595 : vector<14x14xf32>
    %631 = vector.broadcast %cst_32 : f32 to vector<14x14xf32>
    %632 = arith.minimumf %631, %630 : vector<14x14xf32>
    %c3_33 = arith.constant 3 : index
    %c0_34 = arith.constant 0 : index
    %c0_35 = arith.constant 0 : index
    %633 = vector.load %arg2[%c3_33, %c0_34, %c0_35] : memref<8x14x14xf32, #tpu.memory_space<vmem>>, vector<1x14x14xf32>
    %634 = vector.shape_cast %633 : vector<1x14x14xf32> to vector<14x14xf32>
    %635 = vector.shape_cast %632 : vector<14x14xf32> to vector<1x14x14xf32>
    tpu.vector_store %arg2[%c3_33, %c0_34, %c0_35], %635 {strides = array<i32>} : memref<8x14x14xf32, #tpu.memory_space<vmem>>, vector<1x14x14xf32>,
    %cst_36 = arith.constant 0.000000e+00 : f32
    %cst_37 = arith.constant 1.000000e+00 : f32
    %636 = vector.broadcast %cst_36 : f32 to vector<14x14xf32>
    %637 = arith.maximumf %636, %598 : vector<14x14xf32>
    %638 = vector.broadcast %cst_37 : f32 to vector<14x14xf32>
    %639 = arith.minimumf %638, %637 : vector<14x14xf32>
    %c4_38 = arith.constant 4 : index
    %c0_39 = arith.constant 0 : index
    %c0_40 = arith.constant 0 : index
    %640 = vector.load %arg2[%c4_38, %c0_39, %c0_40] : memref<8x14x14xf32, #tpu.memory_space<vmem>>, vector<1x14x14xf32>
    %641 = vector.shape_cast %640 : vector<1x14x14xf32> to vector<14x14xf32>
    %642 = vector.shape_cast %639 : vector<14x14xf32> to vector<1x14x14xf32>
    tpu.vector_store %arg2[%c4_38, %c0_39, %c0_40], %642 {strides = array<i32>} : memref<8x14x14xf32, #tpu.memory_space<vmem>>, vector<1x14x14xf32>,
    %cst_41 = arith.constant 0.000000e+00 : f32
    %cst_42 = arith.constant 1.000000e+00 : f32
    %643 = vector.broadcast %cst_41 : f32 to vector<14x14xf32>
    %644 = arith.maximumf %643, %601 : vector<14x14xf32>
    %645 = vector.broadcast %cst_42 : f32 to vector<14x14xf32>
    %646 = arith.minimumf %645, %644 : vector<14x14xf32>
    %c5_43 = arith.constant 5 : index
    %c0_44 = arith.constant 0 : index
    %c0_45 = arith.constant 0 : index
    %647 = vector.load %arg2[%c5_43, %c0_44, %c0_45] : memref<8x14x14xf32, #tpu.memory_space<vmem>>, vector<1x14x14xf32>
    %648 = vector.shape_cast %647 : vector<1x14x14xf32> to vector<14x14xf32>
    %649 = vector.shape_cast %646 : vector<14x14xf32> to vector<1x14x14xf32>
    tpu.vector_store %arg2[%c5_43, %c0_44, %c0_45], %649 {strides = array<i32>} : memref<8x14x14xf32, #tpu.memory_space<vmem>>, vector<1x14x14xf32>,
    %cst_46 = arith.constant 0.000000e+00 : f32
    %cst_47 = arith.constant 1.000000e+00 : f32
    %650 = vector.broadcast %cst_46 : f32 to vector<14x14xf32>
    %651 = arith.maximumf %650, %604 : vector<14x14xf32>
    %652 = vector.broadcast %cst_47 : f32 to vector<14x14xf32>
    %653 = arith.minimumf %652, %651 : vector<14x14xf32>
    %c6_48 = arith.constant 6 : index
    %c0_49 = arith.constant 0 : index
    %c0_50 = arith.constant 0 : index
    %654 = vector.load %arg2[%c6_48, %c0_49, %c0_50] : memref<8x14x14xf32, #tpu.memory_space<vmem>>, vector<1x14x14xf32>
    %655 = vector.shape_cast %654 : vector<1x14x14xf32> to vector<14x14xf32>
    %656 = vector.shape_cast %653 : vector<14x14xf32> to vector<1x14x14xf32>
    tpu.vector_store %arg2[%c6_48, %c0_49, %c0_50], %656 {strides = array<i32>} : memref<8x14x14xf32, #tpu.memory_space<vmem>>, vector<1x14x14xf32>,
    %cst_51 = arith.constant 0.000000e+00 : f32
    %cst_52 = arith.constant 1.000000e+00 : f32
    %657 = vector.broadcast %cst_51 : f32 to vector<14x14xf32>
    %658 = arith.maximumf %657, %607 : vector<14x14xf32>
    %659 = vector.broadcast %cst_52 : f32 to vector<14x14xf32>
    %660 = arith.minimumf %659, %658 : vector<14x14xf32>
    %c7_53 = arith.constant 7 : index
    %c0_54 = arith.constant 0 : index
    %c0_55 = arith.constant 0 : index
    %661 = vector.load %arg2[%c7_53, %c0_54, %c0_55] : memref<8x14x14xf32, #tpu.memory_space<vmem>>, vector<1x14x14xf32>
    %662 = vector.shape_cast %661 : vector<1x14x14xf32> to vector<14x14xf32>
    %663 = vector.shape_cast %660 : vector<14x14xf32> to vector<1x14x14xf32>
    tpu.vector_store %arg2[%c7_53, %c0_54, %c0_55], %663 {strides = array<i32>} : memref<8x14x14xf32, #tpu.memory_space<vmem>>, vector<1x14x14xf32>,
    return
  }
}

</mosaic_0001>

<bundles_post_ra>
// kernel: model_forward.2
= control target key start
LH: loop header
LB: loop body
LE: loop exit
PB: predicated region body
PF: predicated region fallthrough
CT: control target
= control target key end

     0   :  { %s4269_s0 = inlined_call_operand.vmem [shape: f32[144], index: 0, kind: input, shape index: {}]   ;;  %s4270_s1 = inlined_call_operand.vmem [shape: f32[3,14,13], index: 1, kind: input, shape index: {}]   ;;  %s4271_s2 = inlined_call_operand.<no memory space> [shape: f32[], index: 2, kind: input, shape index: {}]   ;;  %s4272_s3 = inlined_call_operand.vmem [shape: f32[8,14,14], index: 3, kind: output, shape index: {}]  }
   0x1   :  { %4314 = sst [smem:[#allocation118_spill]] %s4272_s3  ;;  %v8_v0 = vstv %s4271_s2 }
   0x2   :  { %9 = vsyncpa [#allocation8], 0  ;;  %s28_s16 = sshll.u32 %s4269_s0, 4  ;;  %s29_s16 = int_to_ptr.vmem [resolvable:$true] %s28_s16 }
   0x3   :  { %s2275_s17 = scalar_lea.vmem %s29_s16, 32  ;;  %p2280_p1 = scmp.lt.s32.totalorder %s29_s16, %s29_s16 }
   0x4   :  { %p2276_p0 = scmp.ne.s32.totalorder %s29_s16, %s2275_s17  ;;  %p2281_p2 = scmp.lt.s32.totalorder %s2275_s17, %s2275_s17 }
   0x6   :  { %p2282_p3 = por %p2281_p2, %p2280_p1 }
   0x8   :  { %p2283_p4 = pnand %p2282_p3, %p2276_p0 }
   0xa   :  { %2286 = shalt.err (!%p2283_p4)
}
   0xb   :  { %s2289_s18 = smov [#allocation7]  }
   0xc   :  { %31 = dma.vmem_to_smem %s29_s16, 32, %s2289_s18, [#allocation8]  }
   0xd   :  { %2287 = dma.done.wait [#allocation8], 32  }
   0xe   :  { %2288 = vsyncadd [#allocation8], 4294967264 }
   0xf   :  { %35 = sfence }
  0x10   :  { %v62_v1 = vlaneseq  ;;  %v56_v4 = vld [vmem:[%s4270_s1] sm:$0xff]  ;;  %v2101_v8 = vld [vmem:[%s4270_s1 + $0x10] sm:$0xff]  ;;  %v2100_v9 = vld [vmem:[%s4270_s1 + $0x8] sm:$0xff]  ;;  %s2290_s29 = smov 3   ;;  %s2354_s30 = sld [smem:[#allocation7 + $0x13]]  ;;  %vm2036_vm3 = vcmask 113664  }
  0x11   :  { %v2103_v6 = vld [vmem:[%s4270_s1 + $0x20] sm:$0xff]  ;;  %v2102_v10 = vld [vmem:[%s4270_s1 + $0x18] sm:$0xff]  ;;  %v2104_v11 = vld [vmem:[%s4270_s1 + $0x28] sm:$0xff]  ;;  %s2352_s1 = sld [smem:[#allocation7 + $0x1]]  ;;  %s2357_s4 = sld [smem:[#allocation7 + $0x25]]  ;;  %vm2038_vm4 = vcmask 111616  }
  0x12   :  { %v63_v2 = vand.u32 127, %v62_v1  ;;  %v82_v3 = vshrl.u32 %v62_v1, 7  ;;  %s2367_s5 = sld [smem:[#allocation7 + $0x37]]  ;;  %s2291_s6 = smov 127  }
  0x13   :  { %s2372_s7 = sld [smem:[#allocation7 + $0x49]]  ;;  %s2377_s8 = sld [smem:[#allocation7 + $0x5b]] }
  0x14   :  { %v64_v5 = vadd.s32 128, %v63_v2  ;;  %v83_v7 = vadd.s32 8, %v82_v3  ;;  %vm69_vm0 = vcmp.lt.s32.totalorder %v63_v2, 125  ;;  %s2382_s9 = sld [smem:[#allocation7 + $0x6d]]  ;;  %s2390_s10 = sld [smem:[#allocation7 + $0x7f]] }
  0x15   :  { %s2397_s11 = sld [smem:[#allocation7 + $0x2]]  ;;  %s2404_s12 = sld [smem:[#allocation7 + $0x14]] }
  0x16   :  { %vm65_vm1 = vcmp.lt.s32.totalorder %v64_v5, 141  ;;  %vm84_vm2 = vcmp.lt.s32.totalorder %v83_v7, 14  ;;  %v271_v31 = vstv %s2354_s30  ;;  %s2411_s13 = sld [smem:[#allocation7 + $0x26]]  ;;  %s2418_s14 = sld [smem:[#allocation7 + $0x38]] }
  0x17   :  { %v66_v12 = vsel %vm65_vm1, %v56_v4, %v8_v0  ;;  %v165_v13 = vsel %vm65_vm1, %v2103_v6, %v8_v0  ;;  %v115_v14 = vsel %vm65_vm1, %v2101_v8, %v8_v0  ;;  %v85_v16 = vsel %vm84_vm2, %v2100_v9, %v8_v0  ;;  %s4305_s15 = smov 126   ;;  %s2425_s16 = sld [smem:[#allocation7 + $0x4a]] }
  0x18   :  { %v70_v15 = vsel %vm69_vm0, %v66_v12, %v8_v0  ;;  %v119_v17 = vsel %vm69_vm0, %v115_v14, %v8_v0  ;;  %v135_v18 = vsel %vm84_vm2, %v2102_v10, %v8_v0  ;;  %v185_v19 = vsel %vm84_vm2, %v2104_v11, %v8_v0  ;;  %s2432_s17 = sld [smem:[#allocation7 + $0x5c]]  ;;  %s2439_s18 = sld [smem:[#allocation7 + $0x6e]] }
  0x19   :  { %71 = vrot.lane.b32.xlu0 %v70_v15, %s2290_s29  ;;  %120 = vrot.lane.b32.xlu1 %v119_v17, %s2290_s29  ;;  %v169_v20 = vsel %vm69_vm0, %v165_v13, %v8_v0  ;;  %v140_v21 = vsel %vm65_vm1, %v135_v18, %v8_v0  ;;  %v90_v22 = vsel %vm65_vm1, %v85_v16, %v8_v0  ;;  %v258_v27 = vstv %s2352_s1  ;;  %s2446_s2 = sld [smem:[#allocation7 + $0x80]]  ;;  %s2453_s19 = sld [smem:[#allocation7 + $0x3]] }
  0x1a   :  { %v144_v23 = vsel %vm69_vm0, %v140_v21, %v8_v0  ;;  %v190_v24 = vsel %vm65_vm1, %v185_v19, %v8_v0  ;;  %v94_v25 = vsel %vm69_vm0, %v90_v22, %v8_v0  ;;  %v284_v35 = vstv %s2357_s4  ;;  %s2460_s0 = sld [smem:[#allocation7 + $0x15]]  ;;  %s2467_s20 = sld [smem:[#allocation7 + $0x27]] }
  0x1b   :  { %v194_v26 = vsel %vm69_vm0, %v190_v24, %v8_v0  ;;  %v297_v39 = vstv %s2367_s5  ;;  %v310_v41 = vstv %s2372_s7  ;;  %v323_v45 = vstv %s2377_s8  ;;  %s2474_s21 = sld [smem:[#allocation7 + $0x39]]  ;;  %s4296_s22 = smov 125  }
  0x1c   :  { %v336_v48 = vstv %s2382_s9  ;;  %v349_v51 = vstv %s2390_s10  ;;  %v370_v54 = vstv %s2397_s11  ;;  %v383_v57 = vstv %s2404_s12  ;;  %s2481_s23 = sld [smem:[#allocation7 + $0x4b]]  ;;  %s2488_s24 = sld [smem:[#allocation7 + $0x5d]] }
  0x1d   :  { %170 = vrot.lane.b32.xlu0 %v169_v20, %s2290_s29  ;;  %145 = vrot.lane.b32.xlu1 %v144_v23, %s2290_s29  ;;  %v396_v60 = vstv %s2411_s13  ;;  %v409_v63 = vstv %s2418_s14  ;;  %s2495_s25 = sld [smem:[#allocation7 + $0x6f]]  ;;  %s2502_s26 = sld [smem:[#allocation7 + $0x81]] }
  0x1e   :  { %v422_v2 = vstv %s2425_s16  ;;  %v435_v5 = vstv %s2432_s17  ;;  %v448_v8 = vstv %s2439_s18  ;;  %s2509_s27 = sld [smem:[#allocation7 + $0x4]]  ;;  %s2516_s28 = sld [smem:[#allocation7 + $0x16]] }
  0x1f   :  { %v461_v11 = vstv %s2446_s2  ;;  %v482_v14 = vstv %s2453_s19  ;;  %s2530_s1 = sld [smem:[#allocation7 + $0x3a]]  ;;  %s4294_s30 = smov 124  }
  0x20   :  { %v495_v17 = vstv %s2460_s0  ;;  %v508_v20 = vstv %s2467_s20  ;;  %s2537_s4 = sld [smem:[#allocation7 + $0x4c]]  ;;  %s2544_s5 = sld [smem:[#allocation7 + $0x5e]] }
  0x21   :  { %95 = vrot.lane.b32.xlu0 %v94_v25, %s2290_s29  ;;  %195 = vrot.lane.b32.xlu1 %v194_v26, %s2290_s29  ;;  %v521_v23 = vstv %s2474_s21  ;;  %s2523_s29 = sld [smem:[#allocation7 + $0x28]]  ;;  %s2558_s8 = sld [smem:[#allocation7 + $0x82]] }
  0x22   :  { %v534_v26 = vstv %s2481_s23  ;;  %s2551_s7 = sld [smem:[#allocation7 + $0x70]]  ;;  %s2567_s9 = sld [smem:[#allocation7 + $0x5]] }
  0x23   :  { %s2576_s10 = sld [smem:[#allocation7 + $0x17]]  ;;  %s2585_s11 = sld [smem:[#allocation7 + $0x29]] }
  0x24   :  { %s2594_s12 = sld [smem:[#allocation7 + $0x3b]]  ;;  %s4292_s13 = smov 123  }
  0x25   :  { %s2605_s14 = sld [smem:[#allocation7 + $0x4d]]  ;;  %s2616_s16 = sld [smem:[#allocation7 + $0x5f]] }
  0x26   :  { %s2627_s17 = sld [smem:[#allocation7 + $0x71]]  ;;  %s2638_s18 = sld [smem:[#allocation7 + $0x83]] }
  0x27   :  { %s2649_s2 = sld [smem:[#allocation7 + $0x7]]  ;;  %s2660_s19 = sld [smem:[#allocation7 + $0x19]] }
  0x28   :  { %s2671_s0 = sld [smem:[#allocation7 + $0x2b]]  ;;  %s2682_s20 = sld [smem:[#allocation7 + $0x3d]] }
  0x29   :  { %s2693_s21 = sld [smem:[#allocation7 + $0x4f]]  ;;  %s2704_s23 = sld [smem:[#allocation7 + $0x61]] }
  0x2a   :  { %s4399_s3 = smov 125  }
  0x8b   :  { %v2359_v28 = vpop.permute.xlu0 %71  ;;  %v2361_v29 = vpop.permute.xlu1 %120 }
  0x8c   :  { %74 = vst [vmem:[#allocation9] sm:$0xff] %v2359_v28  ;;  %v259_v30 = vmul.f32 %v258_v27, %v2359_v28  ;;  %124 = vst [vmem:[#allocation9 + $0x10] sm:$0xff] %v2361_v29  ;;  %v272_v34 = vmul.f32 %v271_v31, %v2359_v28  ;;  %v285_v38 = vmul.f32 %v284_v35, %v2359_v28 }
  0x8d   :  { %v298_v40 = vmul.f32 %v297_v39, %v2359_v28  ;;  %v311_v44 = vmul.f32 %v310_v41, %v2359_v28  ;;  %v324_v47 = vmul.f32 %v323_v45, %v2359_v28  ;;  %v337_v50 = vmul.f32 %v336_v48, %v2359_v28 }
  0x8e   :  { %263 = vrot.lane.b32.xlu0 %v259_v30, %s2291_s6  ;;  %v350_v53 = vmul.f32 %v349_v51, %v2359_v28  ;;  %v371_v56 = vmul.f32 %v370_v54, %v2359_v28  ;;  %v384_v59 = vmul.f32 %v383_v57, %v2359_v28  ;;  %v397_v62 = vmul.f32 %v396_v60, %v2359_v28 }
  0x8f   :  { %v171_v32 = vpop.permute.xlu0 %170  ;;  %v146_v33 = vpop.permute.xlu1 %145  ;;  %v410_v1 = vmul.f32 %v409_v63, %v2359_v28  ;;  %v423_v4 = vmul.f32 %v422_v2, %v2359_v28  ;;  %v436_v7 = vmul.f32 %v435_v5, %v2359_v28  ;;  %v449_v10 = vmul.f32 %v448_v8, %v2359_v28 }
  0x90   :  { %174 = vst [vmem:[#allocation9 + $0x20] sm:$0xff] %v171_v32  ;;  %149 = vst [vmem:[#allocation9 + $0x18] sm:$0xff] %v146_v33  ;;  %v462_v13 = vmul.f32 %v461_v11, %v2359_v28  ;;  %v483_v16 = vmul.f32 %v482_v14, %v2359_v28  ;;  %v496_v19 = vmul.f32 %v495_v17, %v2359_v28 }
  0x91   :  { %v509_v22 = vmul.f32 %v508_v20, %v2359_v28  ;;  %v522_v25 = vmul.f32 %v521_v23, %v2359_v28  ;;  %v535_v30 = vmul.f32 %v534_v26, %v2359_v28 }
  0x92   :  { %276 = vrot.lane.b32.xlu0 %v272_v34, %s2291_s6  ;;  %v560_v34 = vstv %s2495_s25  ;;  %s2728_s25 = sld [smem:[#allocation7 + $0x85]] }
  0x93   :  { %v96_v36 = vpop.permute.xlu0 %95  ;;  %v196_v37 = vpop.permute.xlu1 %195 }
  0x94   :  { %99 = vst [vmem:[#allocation9 + $0x8] sm:$0xff] %v96_v36  ;;  %199 = vst [vmem:[#allocation9 + $0x28] sm:$0xff] %v196_v37  ;;  %v561_v36 = vmul.f32 %v560_v34, %v2359_v28  ;;  %v573_v37 = vstv %s2502_s26  ;;  %s2739_s26 = sld [smem:[#allocation7 + $0x8]] }
  0x96   :  { %289 = vrot.lane.b32.xlu0 %v285_v38, %s2291_s6 }
  0x9a   :  { %302 = vrot.lane.b32.xlu0 %v298_v40, %s2291_s6  ;;  %v594_v40 = vstv %s2509_s27  ;;  %s2750_s27 = sld [smem:[#allocation7 + $0x1a]] }
  0x9b   :  { %v2385_v42 = vld [vmem:[#allocation9 + $0x8] sm:$0x3f] }
  0x9c   :  { %v260_v43 = vmul.f32 %v258_v27, %v2385_v42  ;;  %v273_v46 = vmul.f32 %v271_v31, %v2385_v42  ;;  %v286_v49 = vmul.f32 %v284_v35, %v2385_v42  ;;  %v299_v52 = vmul.f32 %v297_v39, %v2385_v42 }
  0x9d   :  { %v312_v55 = vmul.f32 %v310_v41, %v2385_v42  ;;  %v325_v58 = vmul.f32 %v323_v45, %v2385_v42  ;;  %v338_v61 = vmul.f32 %v336_v48, %v2385_v42  ;;  %v351_v0 = vmul.f32 %v349_v51, %v2385_v42 }
  0x9e   :  { %265 = vrot.lane.b32.xlu1 %v260_v43, %s2291_s6  ;;  %315 = vrot.lane.b32.xlu0 %v311_v44, %s2291_s6  ;;  %v372_v3 = vmul.f32 %v370_v54, %v2385_v42  ;;  %v385_v6 = vmul.f32 %v383_v57, %v2385_v42  ;;  %v398_v9 = vmul.f32 %v396_v60, %v2385_v42  ;;  %v547_v31 = vstv %s2488_s24  ;;  %s2717_s24 = sld [smem:[#allocation7 + $0x73]] }
  0x9f   :  { %v411_v12 = vmul.f32 %v409_v63, %v2385_v42  ;;  %v424_v15 = vmul.f32 %v422_v2, %v2385_v42  ;;  %v437_v18 = vmul.f32 %v435_v5, %v2385_v42  ;;  %v450_v21 = vmul.f32 %v448_v8, %v2385_v42 }
  0xa0   :  { %v463_v24 = vmul.f32 %v461_v11, %v2385_v42  ;;  %v484_v27 = vmul.f32 %v482_v14, %v2385_v42  ;;  %v497_v32 = vmul.f32 %v495_v17, %v2385_v42  ;;  %v548_v33 = vmul.f32 %v547_v31, %v2359_v28 }
  0xa1   :  { %v510_v35 = vmul.f32 %v508_v20, %v2385_v42  ;;  %v523_v38 = vmul.f32 %v521_v23, %v2385_v42  ;;  %v574_v39 = vmul.f32 %v573_v37, %v2359_v28  ;;  %v536_v41 = vmul.f32 %v534_v26, %v2385_v42 }
  0xa2   :  { %278 = vrot.lane.b32.xlu1 %v273_v46, %s2291_s6  ;;  %328 = vrot.lane.b32.xlu0 %v324_v47, %s2291_s6  ;;  %v595_v43 = vmul.f32 %v594_v40, %v2359_v28  ;;  %v607_v44 = vstv %s2516_s28  ;;  %v549_v45 = vmul.f32 %v547_v31, %v2385_v42  ;;  %v620_v47 = vstv %s2523_s29  ;;  %s2761_s28 = sld [smem:[#allocation7 + $0x2c]]  ;;  %s2772_s29 = sld [smem:[#allocation7 + $0x3e]] }
  0xa3   :  { %v608_v46 = vmul.f32 %v607_v44, %v2359_v28  ;;  %v562_v48 = vmul.f32 %v560_v34, %v2385_v42  ;;  %v575_v51 = vmul.f32 %v573_v37, %v2385_v42  ;;  %v596_v54 = vmul.f32 %v594_v40, %v2385_v42 }
  0xa4   :  { %v609_v57 = vmul.f32 %v607_v44, %v2385_v42  ;;  %v672_v60 = vstv %s2551_s7  ;;  %v719_v8 = vstv %s2576_s10  ;;  %v758_v23 = vstv %s2605_s14  ;;  %s2816_s7 = sld [smem:[#allocation7 + $0x86]]  ;;  %s2849_s10 = sld [smem:[#allocation7 + $0x2d]] }
  0xa5   :  { %v673_v63 = vmul.f32 %v672_v60, %v2359_v28  ;;  %v797_v40 = vstv %s2638_s18  ;;  %s2882_s14 = sld [smem:[#allocation7 + $0x63]]  ;;  %s2906_s18 = sld [smem:[#allocation7 + $0x87]] }
  0xa6   :  { %291 = vrot.lane.b32.xlu1 %v286_v49, %s2291_s6  ;;  %341 = vrot.lane.b32.xlu0 %v337_v50, %s2291_s6  ;;  %v621_v49 = vmul.f32 %v620_v47, %v2359_v28  ;;  %v633_v50 = vstv %s2530_s1  ;;  %s2783_s1 = sld [smem:[#allocation7 + $0x50]] }
  0xaa   :  { %304 = vrot.lane.b32.xlu1 %v299_v52, %s2291_s6  ;;  %354 = vrot.lane.b32.xlu0 %v350_v53, %s2291_s6  ;;  %v634_v52 = vmul.f32 %v633_v50, %v2359_v28  ;;  %v646_v53 = vstv %s2537_s4  ;;  %s2794_s4 = sld [smem:[#allocation7 + $0x62]] }
  0xab   :  { %v648_v5 = vmul.f32 %v646_v53, %v2385_v42 }
  0xae   :  { %317 = vrot.lane.b32.xlu1 %v312_v55, %s2291_s6  ;;  %375 = vrot.lane.b32.xlu0 %v371_v56, %s4305_s15  ;;  %v647_v55 = vmul.f32 %v646_v53, %v2359_v28  ;;  %v659_v56 = vstv %s2544_s5  ;;  %s2805_s5 = sld [smem:[#allocation7 + $0x74]] }
  0xb2   :  { %330 = vrot.lane.b32.xlu1 %v325_v58, %s2291_s6  ;;  %388 = vrot.lane.b32.xlu0 %v384_v59, %s4305_s15  ;;  %v660_v59 = vmul.f32 %v659_v56, %v2359_v28 }
  0xb6   :  { %343 = vrot.lane.b32.xlu1 %v338_v61, %s2291_s6  ;;  %401 = vrot.lane.b32.xlu0 %v397_v62, %s4305_s15  ;;  %v622_v61 = vmul.f32 %v620_v47, %v2385_v42 }
  0xba   :  { %356 = vrot.lane.b32.xlu1 %v351_v0, %s2291_s6  ;;  %414 = vrot.lane.b32.xlu0 %v410_v1, %s4305_s15  ;;  %v685_v0 = vstv %s2558_s8  ;;  %v635_v1 = vmul.f32 %v633_v50, %v2385_v42  ;;  %s2827_s8 = sld [smem:[#allocation7 + $0x9]] }
  0xbb   :  { %v687_v20 = vmul.f32 %v685_v0, %v2385_v42 }
  0xbe   :  { %377 = vrot.lane.b32.xlu1 %v372_v3, %s4305_s15  ;;  %427 = vrot.lane.b32.xlu0 %v423_v4, %s4305_s15  ;;  %v686_v3 = vmul.f32 %v685_v0, %v2359_v28  ;;  %v706_v4 = vstv %s2567_s9  ;;  %v799_v0 = vmul.f32 %v797_v40, %v2385_v42  ;;  %s2838_s9 = sld [smem:[#allocation7 + $0x1b]] }
  0xc2   :  { %390 = vrot.lane.b32.xlu1 %v385_v6, %s4305_s15  ;;  %440 = vrot.lane.b32.xlu0 %v436_v7, %s4305_s15  ;;  %v707_v7 = vmul.f32 %v706_v4, %v2359_v28 }
  0xc6   :  { %403 = vrot.lane.b32.xlu1 %v398_v9, %s4305_s15  ;;  %453 = vrot.lane.b32.xlu0 %v449_v10, %s4305_s15  ;;  %v661_v10 = vmul.f32 %v659_v56, %v2385_v42 }
  0xca   :  { %416 = vrot.lane.b32.xlu1 %v411_v12, %s4305_s15  ;;  %466 = vrot.lane.b32.xlu0 %v462_v13, %s4305_s15  ;;  %v720_v12 = vmul.f32 %v719_v8, %v2359_v28  ;;  %v732_v13 = vstv %s2585_s11  ;;  %s2860_s11 = sld [smem:[#allocation7 + $0x3f]] }
  0xcb   :  { %v733_v17 = vmul.f32 %v732_v13, %v2359_v28  ;;  %v734_v37 = vmul.f32 %v732_v13, %v2385_v42  ;;  %v934_v13 = vstv %s2704_s23  ;;  %s2945_s23 = sld [smem:[#allocation7 + $0x48]] }
  0xce   :  { %429 = vrot.lane.b32.xlu1 %v424_v15, %s4305_s15  ;;  %487 = vrot.lane.b32.xlu0 %v483_v16, %s4296_s22  ;;  %v674_v15 = vmul.f32 %v672_v60, %v2385_v42 }
  0xd2   :  { %442 = vrot.lane.b32.xlu1 %v437_v18, %s4305_s15  ;;  %500 = vrot.lane.b32.xlu0 %v496_v19, %s4296_s22  ;;  %v745_v18 = vstv %s2594_s12  ;;  %s2871_s12 = sld [smem:[#allocation7 + $0x51]] }
  0xd6   :  { %455 = vrot.lane.b32.xlu1 %v450_v21, %s4305_s15  ;;  %513 = vrot.lane.b32.xlu0 %v509_v22, %s4296_s22  ;;  %v746_v22 = vmul.f32 %v745_v18, %v2359_v28 }
  0xda   :  { %468 = vrot.lane.b32.xlu1 %v463_v24, %s4305_s15  ;;  %526 = vrot.lane.b32.xlu0 %v522_v25, %s4296_s22  ;;  %v708_v25 = vmul.f32 %v706_v4, %v2385_v42  ;;  %v2714_v4 = vld [vmem:[#allocation9 + $0x18] sm:$0x3f] }
  0xde   :  { %489 = vrot.lane.b32.xlu1 %v484_v27, %s4296_s22  ;;  %539 = vrot.lane.b32.xlu0 %v535_v30, %s4296_s22  ;;  %v759_v27 = vmul.f32 %v758_v23, %v2359_v28  ;;  %v771_v30 = vstv %s2616_s16  ;;  %s2893_s16 = sld [smem:[#allocation7 + $0x75]] }
  0xdf   :  { %v772_v34 = vmul.f32 %v771_v30, %v2359_v28 }
  0xe2   :  { %502 = vrot.lane.b32.xlu1 %v497_v32, %s4296_s22  ;;  %552 = vrot.lane.b32.xlu0 %v548_v33, %s4296_s22  ;;  %v721_v32 = vmul.f32 %v719_v8, %v2385_v42 }
  0xe6   :  { %515 = vrot.lane.b32.xlu1 %v510_v35, %s4296_s22  ;;  %565 = vrot.lane.b32.xlu0 %v561_v36, %s4296_s22  ;;  %v784_v35 = vstv %s2627_s17  ;;  %s2895_s17 = sld [smem:[#allocation7]] }
  0xea   :  { %528 = vrot.lane.b32.xlu1 %v523_v38, %s4296_s22  ;;  %578 = vrot.lane.b32.xlu0 %v574_v39, %s4296_s22  ;;  %v785_v39 = vmul.f32 %v784_v35, %v2359_v28 }
  0xee   :  { %541 = vrot.lane.b32.xlu1 %v536_v41, %s4296_s22  ;;  %599 = vrot.lane.b32.xlu0 %v595_v43, %s4294_s30  ;;  %v747_v43 = vmul.f32 %v745_v18, %v2385_v42 }
  0xf2   :  { %554 = vrot.lane.b32.xlu1 %v549_v45, %s4296_s22  ;;  %612 = vrot.lane.b32.xlu0 %v608_v46, %s4294_s30  ;;  %v798_v45 = vmul.f32 %v797_v40, %v2359_v28  ;;  %v869_v46 = vstv %s2649_s2  ;;  %v981_v40 = vstv %s2739_s26  ;;  %s2908_s2 = sld [smem:[#allocation7 + $0x12]] }
  0xf3   :  { %v870_v50 = vmul.f32 %v869_v46, %v2361_v29  ;;  %v871_v8 = vmul.f32 %v869_v46, %v2714_v4  ;;  %s2967_s26 = sld [smem:[#allocation7 + $0x5a]] }
  0xf6   :  { %567 = vrot.lane.b32.xlu1 %v562_v48, %s4296_s22  ;;  %625 = vrot.lane.b32.xlu0 %v621_v49, %s4294_s30  ;;  %v760_v48 = vmul.f32 %v758_v23, %v2385_v42 }
  0xfa   :  { %580 = vrot.lane.b32.xlu1 %v575_v51, %s4296_s22  ;;  %638 = vrot.lane.b32.xlu0 %v634_v52, %s4294_s30  ;;  %v882_v51 = vstv %s2660_s19  ;;  %v773_v52 = vmul.f32 %v771_v30, %v2385_v42  ;;  %s2921_s19 = sld [smem:[#allocation7 + $0xa]] }
  0xfe   :  { %601 = vrot.lane.b32.xlu1 %v596_v54, %s4294_s30  ;;  %651 = vrot.lane.b32.xlu0 %v647_v55, %s4294_s30  ;;  %v883_v54 = vmul.f32 %v882_v51, %v2361_v29  ;;  %v895_v55 = vstv %s2671_s0  ;;  %s2924_s0 = sld [smem:[#allocation7 + $0x24]] }
  0xff   :  { %v896_v60 = vmul.f32 %v895_v55, %v2361_v29 }
 0x100   :  { %v2563_v58 = vpop.permute.xlu0 %263 }
 0x102   :  { %614 = vrot.lane.b32.xlu1 %v609_v57, %s4294_s30  ;;  %664 = vrot.lane.b32.xlu0 %v660_v59, %s4294_s30  ;;  %v786_v57 = vmul.f32 %v784_v35, %v2385_v42 }
 0x104   :  { %v2572_v62 = vpop.permute.xlu0 %276 }
 0x106   :  { %627 = vrot.lane.b32.xlu1 %v622_v61, %s4294_s30  ;;  %677 = vrot.lane.b32.xlu0 %v673_v63, %s4294_s30  ;;  %v908_v61 = vstv %s2682_s20  ;;  %s2940_s20 = sld [smem:[#allocation7 + $0x1c]] }
 0x107   :  { %v910_v35 = vmul.f32 %v908_v61, %v2714_v4 }
 0x108   :  { %v2581_v2 = vpop.permute.xlu0 %289 }
 0x10a   :  { %640 = vrot.lane.b32.xlu1 %v635_v1, %s4294_s30  ;;  %690 = vrot.lane.b32.xlu0 %v686_v3, %s4294_s30  ;;  %v909_v3 = vmul.f32 %v908_v61, %v2361_v29 }
 0x10c   :  { %v2590_v6 = vpop.permute.xlu0 %302 }
 0x10e   :  { %653 = vrot.lane.b32.xlu1 %v648_v5, %s4294_s30  ;;  %711 = vrot.lane.b32.xlu0 %v707_v7, %s4292_s13  ;;  %v921_v5 = vstv %s2693_s21  ;;  %s2943_s21 = sld [smem:[#allocation7 + $0x36]] }
 0x110   :  { %v2598_v9 = vpop.permute.xlu1 %265  ;;  %v2601_v11 = vpop.permute.xlu0 %315 }
 0x112   :  { %666 = vrot.lane.b32.xlu1 %v661_v10, %s4294_s30  ;;  %724 = vrot.lane.b32.xlu0 %v720_v12, %s4292_s13  ;;  %v922_v12 = vmul.f32 %v921_v5, %v2361_v29 }
 0x114   :  { %v2609_v14 = vpop.permute.xlu1 %278  ;;  %v2612_v16 = vpop.permute.xlu0 %328 }
 0x116   :  { %679 = vrot.lane.b32.xlu1 %v674_v15, %s4294_s30  ;;  %737 = vrot.lane.b32.xlu0 %v733_v17, %s4292_s13  ;;  %v884_v17 = vmul.f32 %v882_v51, %v2714_v4 }
 0x118   :  { %v2620_v19 = vpop.permute.xlu1 %291  ;;  %v2623_v21 = vpop.permute.xlu0 %341 }
 0x11a   :  { %692 = vrot.lane.b32.xlu1 %v687_v20, %s4294_s30  ;;  %750 = vrot.lane.b32.xlu0 %v746_v22, %s4292_s13  ;;  %v935_v20 = vmul.f32 %v934_v13, %v2361_v29  ;;  %v947_v22 = vstv %s2717_s24  ;;  %s2960_s24 = sld [smem:[#allocation7 + $0x2e]] }
 0x11b   :  { %v948_v30 = vmul.f32 %v947_v22, %v2361_v29  ;;  %v949_v61 = vmul.f32 %v947_v22, %v2714_v4 }
 0x11c   :  { %v2631_v24 = vpop.permute.xlu1 %304  ;;  %v2634_v26 = vpop.permute.xlu0 %354 }
 0x11e   :  { %713 = vrot.lane.b32.xlu1 %v708_v25, %s4292_s13  ;;  %763 = vrot.lane.b32.xlu0 %v759_v27, %s4292_s13  ;;  %v897_v25 = vmul.f32 %v895_v55, %v2714_v4 }
 0x120   :  { %v2642_v31 = vpop.permute.xlu1 %317  ;;  %v2645_v33 = vpop.permute.xlu0 %375 }
 0x122   :  { %726 = vrot.lane.b32.xlu1 %v721_v32, %s4292_s13  ;;  %776 = vrot.lane.b32.xlu0 %v772_v34, %s4292_s13  ;;  %v960_v32 = vstv %s2728_s25  ;;  %s2962_s25 = sld [smem:[#allocation7 + $0x6]] }
 0x124   :  { %v2653_v36 = vpop.permute.xlu1 %330  ;;  %v2656_v38 = vpop.permute.xlu0 %388 }
 0x126   :  { %739 = vrot.lane.b32.xlu1 %v734_v37, %s4292_s13  ;;  %789 = vrot.lane.b32.xlu0 %v785_v39, %s4292_s13  ;;  %v961_v39 = vmul.f32 %v960_v32, %v2361_v29 }
 0x128   :  { %v2664_v41 = vpop.permute.xlu1 %343  ;;  %v2667_v44 = vpop.permute.xlu0 %401 }
 0x12a   :  { %752 = vrot.lane.b32.xlu1 %v747_v43, %s4292_s13  ;;  %802 = vrot.lane.b32.xlu0 %v798_v45, %s4292_s13  ;;  %v923_v45 = vmul.f32 %v921_v5, %v2714_v4  ;;  %v1020_v5 = vstv %s2772_s29  ;;  %s2992_s29 = sld [smem:[#allocation7 + $0x6c]] }
 0x12c   :  { %v2675_v47 = vpop.permute.xlu1 %356  ;;  %v2678_v49 = vpop.permute.xlu0 %414 }
 0x12e   :  { %765 = vrot.lane.b32.xlu1 %v760_v48, %s4292_s13  ;;  %874 = vrot.lane.b32.xlu0 %v870_v50, %s2291_s6  ;;  %v982_v48 = vmul.f32 %v981_v40, %v2361_v29  ;;  %v994_v50 = vstv %s2750_s27  ;;  %s2983_s27 = sld [smem:[#allocation7 + $0x40]] }
 0x12f   :  { %v995_v55 = vmul.f32 %v994_v50, %v2361_v29 }
 0x130   :  { %v2686_v28 = vpop.permute.xlu1 %377  ;;  %v2689_v53 = vpop.permute.xlu0 %427 }
 0x132   :  { %778 = vrot.lane.b32.xlu1 %v773_v52, %s4292_s13  ;;  %887 = vrot.lane.b32.xlu0 %v883_v54, %s2291_s6  ;;  %v936_v52 = vmul.f32 %v934_v13, %v2714_v4 }
 0x134   :  { %v2697_v56 = vpop.permute.xlu1 %390  ;;  %v2700_v59 = vpop.permute.xlu0 %440 }
 0x135   :  { %4315 = vst [vmem:[#allocation11_spill] sm:$0xff] %v2700_v59 }
 0x136   :  { %791 = vrot.lane.b32.xlu1 %v786_v57, %s4292_s13  ;;  %900 = vrot.lane.b32.xlu0 %v896_v60, %s2291_s6  ;;  %v1007_v57 = vstv %s2761_s28  ;;  %s2985_s28 = sld [smem:[#allocation7 + $0x18]] }
 0x138   :  { %v2708_v63 = vpop.permute.xlu1 %403  ;;  %v2711_v1 = vpop.permute.xlu0 %453 }
 0x139   :  { %4316 = vst [vmem:[#allocation12_spill] sm:$0xff] %v2711_v1 }
 0x13a   :  { %804 = vrot.lane.b32.xlu1 %v799_v0, %s4292_s13  ;;  %913 = vrot.lane.b32.xlu0 %v909_v3, %s2291_s6  ;;  %v1008_v3 = vmul.f32 %v1007_v57, %v2361_v29 }
 0x13c   :  { %v2721_v7 = vpop.permute.xlu1 %416  ;;  %v2724_v10 = vpop.permute.xlu0 %466  ;;  %4335 = sst [smem:[#allocation30_spill]] %s2985_s28 }
 0x13e   :  { %876 = vrot.lane.b32.xlu1 %v871_v8, %s2291_s6  ;;  %926 = vrot.lane.b32.xlu0 %v922_v12, %s2291_s6  ;;  %v962_v12 = vmul.f32 %v960_v32, %v2714_v4 }
 0x140   :  { %v2732_v15 = vpop.permute.xlu1 %429  ;;  %v2735_v18 = vpop.permute.xlu0 %487 }
 0x142   :  { %889 = vrot.lane.b32.xlu1 %v884_v17, %s2291_s6  ;;  %939 = vrot.lane.b32.xlu0 %v935_v20, %s2291_s6  ;;  %v1021_v17 = vmul.f32 %v1020_v5, %v2361_v29  ;;  %v1033_v20 = vstv %s2783_s1  ;;  %s3010_s1 = sld [smem:[#allocation7 + $0x52]] }
 0x143   :  { %v1034_v32 = vmul.f32 %v1033_v20, %v2361_v29 }
 0x144   :  { %v2743_v23 = vpop.permute.xlu1 %442  ;;  %v2746_v27 = vpop.permute.xlu0 %500 }
 0x145   :  { %4317 = vst [vmem:[#allocation13_spill] sm:$0xff] %v2746_v27 }
 0x146   :  { %902 = vrot.lane.b32.xlu1 %v897_v25, %s2291_s6  ;;  %952 = vrot.lane.b32.xlu0 %v948_v30, %s2291_s6  ;;  %v983_v25 = vmul.f32 %v981_v40, %v2714_v4 }
 0x148   :  { %v2754_v34 = vpop.permute.xlu1 %455  ;;  %v2757_v37 = vpop.permute.xlu0 %513 }
 0x149   :  { %4318 = vst [vmem:[#allocation14_spill] sm:$0xff] %v2757_v37  ;;  %v4275_v37 = vstv %s2893_s16 }
 0x14a   :  { %915 = vrot.lane.b32.xlu1 %v910_v35, %s2291_s6  ;;  %965 = vrot.lane.b32.xlu0 %v961_v39, %s2291_s6  ;;  %v1046_v35 = vstv %s2794_s4  ;;  %s3013_s4 = sld [smem:[#allocation7 + $0x2a]] }
 0x14b   :  { %v1047_v40 = vmul.f32 %v1046_v35, %v2361_v29 }
 0x14c   :  { %v2765_v43 = vpop.permute.xlu1 %468  ;;  %v2768_v46 = vpop.permute.xlu0 %526 }
 0x14d   :  { %4319 = vst [vmem:[#allocation15_spill] sm:$0xff] %v2768_v46  ;;  %v1145_v46 = vstv %s2871_s12  ;;  %s3103_s12 = sld [smem:[#allocation7 + $0x60]] }
 0x14e   :  { %928 = vrot.lane.b32.xlu1 %v923_v45, %s2291_s6  ;;  %986 = vrot.lane.b32.xlu0 %v982_v48, %s4305_s15  ;;  %v996_v45 = vmul.f32 %v994_v50, %v2714_v4 }
 0x150   :  { %v2776_v51 = vpop.permute.xlu1 %489  ;;  %v2779_v54 = vpop.permute.xlu0 %539  ;;  %4338 = sst [smem:[#allocation32_spill]] %s3013_s4 }
 0x151   :  { %4320 = vst [vmem:[#allocation16_spill] sm:$0xff] %v2779_v54  ;;  %v1132_v54 = vstv %s2860_s11  ;;  %s3100_s11 = sld [smem:[#allocation7 + $0x88]] }
 0x152   :  { %941 = vrot.lane.b32.xlu1 %v936_v52, %s2291_s6  ;;  %999 = vrot.lane.b32.xlu0 %v995_v55, %s4305_s15  ;;  %v1059_v52 = vstv %s2805_s5  ;;  %s3024_s5 = sld [smem:[#allocation7 + $0x7e]] }
 0x153   :  { %v1060_v50 = vmul.f32 %v1059_v52, %v2361_v29  ;;  %4347 = sst [smem:[#allocation37_spill]] %s3103_s12 }
 0x154   :  { %v2787_v60 = vpop.permute.xlu1 %502  ;;  %v2790_v0 = vpop.permute.xlu0 %552 }
 0x155   :  { %4321 = vst [vmem:[#allocation17_spill] sm:$0xff] %v2790_v0  ;;  %v1119_v0 = vstv %s2849_s10  ;;  %s3075_s10 = sld [smem:[#allocation7 + $0x4e]] }
 0x156   :  { %954 = vrot.lane.b32.xlu1 %v949_v61, %s2291_s6  ;;  %1012 = vrot.lane.b32.xlu0 %v1008_v3, %s4305_s15  ;;  %v1009_v61 = vmul.f32 %v1007_v57, %v2714_v4 }
 0x158   :  { %v2798_v8 = vpop.permute.xlu1 %515  ;;  %v2801_v13 = vpop.permute.xlu0 %565 }
 0x159   :  { %4322 = vst [vmem:[#allocation18_spill] sm:$0xff] %v2801_v13  ;;  %v1106_v13 = vstv %s2838_s9  ;;  %s3072_s9 = sld [smem:[#allocation7 + $0x76]] }
 0x15a   :  { %967 = vrot.lane.b32.xlu1 %v962_v12, %s2291_s6  ;;  %1025 = vrot.lane.b32.xlu0 %v1021_v17, %s4305_s15  ;;  %v1072_v12 = vstv %s2816_s7  ;;  %s3043_s7 = sld [smem:[#allocation7 + $0x64]] }
 0x15b   :  { %v1073_v57 = vmul.f32 %v1072_v12, %v2361_v29  ;;  %4345 = sst [smem:[#allocation36_spill]] %s3075_s10 }
 0x15c   :  { %v2809_v22 = vpop.permute.xlu1 %528  ;;  %v2812_v30 = vpop.permute.xlu0 %578 }
 0x15e   :  { %988 = vrot.lane.b32.xlu1 %v983_v25, %s4305_s15  ;;  %1038 = vrot.lane.b32.xlu0 %v1034_v32, %s4305_s15  ;;  %v1022_v25 = vmul.f32 %v1020_v5, %v2714_v4 }
 0x160   :  { %v2820_v39 = vpop.permute.xlu1 %541  ;;  %v2823_v48 = vpop.permute.xlu0 %599 }
 0x162   :  { %1001 = vrot.lane.b32.xlu1 %v996_v45, %s4305_s15  ;;  %1051 = vrot.lane.b32.xlu0 %v1047_v40, %s4305_s15  ;;  %v1093_v45 = vstv %s2827_s8  ;;  %s3046_s8 = sld [smem:[#allocation7 + $0x3c]] }
 0x163   :  { %v1094_v5 = vmul.f32 %v1093_v45, %v2361_v29 }
 0x164   :  { %v2831_v55 = vpop.permute.xlu1 %554  ;;  %v2834_v3 = vpop.permute.xlu0 %612 }
 0x165   :  { %4323 = vst [vmem:[#allocation19_spill] sm:$0xff] %v2834_v3 }
 0x166   :  { %1014 = vrot.lane.b32.xlu1 %v1009_v61, %s4305_s15  ;;  %1064 = vrot.lane.b32.xlu0 %v1060_v50, %s4305_s15  ;;  %v1035_v61 = vmul.f32 %v1033_v20, %v2714_v4  ;;  %v1107_v20 = vmul.f32 %v1106_v13, %v2361_v29 }
 0x168   :  { %v2842_v17 = vpop.permute.xlu1 %567  ;;  %v2845_v32 = vpop.permute.xlu0 %625  ;;  %4342 = sst [smem:[#allocation34_spill]] %s3046_s8 }
 0x169   :  { %4324 = vst [vmem:[#allocation20_spill] sm:$0xff] %v2845_v32 }
 0x16a   :  { %1027 = vrot.lane.b32.xlu1 %v1022_v25, %s4305_s15  ;;  %1077 = vrot.lane.b32.xlu0 %v1073_v57, %s4305_s15  ;;  %v1048_v25 = vmul.f32 %v1046_v35, %v2714_v4  ;;  %v1120_v35 = vmul.f32 %v1119_v0, %v2361_v29 }
 0x16c   :  { %v2853_v40 = vpop.permute.xlu1 %580  ;;  %v2856_v50 = vpop.permute.xlu0 %638 }
 0x16d   :  { %4325 = vst [vmem:[#allocation21_spill] sm:$0xff] %v2856_v50 }
 0x16e   :  { %1040 = vrot.lane.b32.xlu1 %v1035_v61, %s4305_s15  ;;  %1098 = vrot.lane.b32.xlu0 %v1094_v5, %s4296_s22  ;;  %v1061_v61 = vmul.f32 %v1059_v52, %v2714_v4  ;;  %v1133_v52 = vmul.f32 %v1132_v54, %v2361_v29 }
 0x170   :  { %v2864_v32 = vpop.permute.xlu1 %601  ;;  %v2867_v57 = vpop.permute.xlu0 %651 }
 0x171   :  { %4326 = vst [vmem:[#allocation22_spill] sm:$0xff] %v2867_v57 }
 0x172   :  { %1053 = vrot.lane.b32.xlu1 %v1048_v25, %s4305_s15  ;;  %1111 = vrot.lane.b32.xlu0 %v1107_v20, %s4296_s22  ;;  %v1074_v25 = vmul.f32 %v1072_v12, %v2714_v4  ;;  %v1095_v12 = vmul.f32 %v1093_v45, %v2714_v4  ;;  %v1108_v45 = vmul.f32 %v1106_v13, %v2714_v4 }
 0x174   :  { %v2875_v50 = vpop.permute.xlu1 %614  ;;  %v2878_v5 = vpop.permute.xlu0 %664 }
 0x175   :  { %4327 = vst [vmem:[#allocation23_spill] sm:$0xff] %v2878_v5  ;;  %v4273_v5 = vstv %s2882_s14 }
 0x176   :  { %1066 = vrot.lane.b32.xlu1 %v1061_v61, %s4305_s15  ;;  %1124 = vrot.lane.b32.xlu0 %v1120_v35, %s4296_s22  ;;  %v1159_v3 = vmul.f32 %v4273_v5, %v2361_v29 }
 0x178   :  { %v2886_v57 = vpop.permute.xlu1 %627  ;;  %v2889_v20 = vpop.permute.xlu0 %677 }
 0x179   :  { %4328 = vst [vmem:[#allocation24_spill] sm:$0xff] %v2889_v20  ;;  %v1146_v20 = vmul.f32 %v1145_v46, %v2361_v29 }
 0x17a   :  { %1079 = vrot.lane.b32.xlu1 %v1074_v25, %s4305_s15  ;;  %1137 = vrot.lane.b32.xlu0 %v1133_v52, %s4296_s22 }
 0x17c   :  { %v2899_v61 = vpop.permute.xlu1 %640  ;;  %v2902_v35 = vpop.permute.xlu0 %690 }
 0x17d   :  { %4329 = vst [vmem:[#allocation25_spill] sm:$0xff] %v2902_v35  ;;  %v4274_v35 = vstv %s2895_s17 }
 0x17e   :  { %1100 = vrot.lane.b32.xlu1 %v1095_v12, %s4296_s22  ;;  %1150 = vrot.lane.b32.xlu0 %v1146_v20, %s4296_s22  ;;  %v212_v13 = vmul.f32 %v4274_v35, %v2385_v42  ;;  %v1121_v12 = vmul.f32 %v1119_v0, %v2714_v4 }
 0x180   :  { %v2912_v25 = vpop.permute.xlu1 %653  ;;  %v2915_v52 = vpop.permute.xlu0 %711  ;;  %v214_v0 = vadd.f32 0.5, %v212_v13  ;;  %v4278_v13 = vstv %s2921_s19 }
 0x181   :  { %4330 = vst [vmem:[#allocation26_spill] sm:$0xff] %v2915_v52  ;;  %v1172_v52 = vmul.f32 %v4275_v37, %v2361_v29  ;;  %v1134_v37 = vmul.f32 %v1132_v54, %v2714_v4  ;;  %v1206_v59 = vmul.f32 %v4278_v13, %v2361_v29 }
 0x182   :  { %1113 = vrot.lane.b32.xlu1 %v1108_v45, %s4296_s22  ;;  %1163 = vrot.lane.b32.xlu0 %v1159_v3, %s4296_s22  ;;  %v4276_v45 = vstv %s2908_s2 }
 0x183   :  { %v217_v3 = vmul.f32 %v4276_v45, %v2385_v42 }
 0x184   :  { %v2931_v20 = vpop.permute.xlu1 %666  ;;  %v2934_v5 = vpop.permute.xlu0 %724 }
 0x185   :  { %4331 = vst [vmem:[#allocation27_spill] sm:$0xff] %v2934_v5  ;;  %v4333_v5 = vstv %s2906_s18  ;;  %v219_v54 = vadd.f32 0.5, %v217_v3  ;;  %v4279_v3 = vstv %s2943_s21 }
 0x186   :  { %1126 = vrot.lane.b32.xlu1 %v1121_v12, %s4296_s22  ;;  %1176 = vrot.lane.b32.xlu0 %v1172_v52, %s4296_s22  ;;  %v1185_v1 = vmul.f32 %v4333_v5, %v2361_v29  ;;  %v270_v52 = vadd.f32 %v2598_v9, %v214_v0  ;;  %v4277_v12 = vstv %s2924_s0  ;;  %v1147_v9 = vmul.f32 %v1145_v46, %v2714_v4 }
 0x187   :  { %v222_v5 = vmul.f32 %v4277_v12, %v2385_v42  ;;  %v227_v12 = vmul.f32 %v4279_v3, %v2385_v42 }
 0x188   :  { %v2952_v35 = vpop.permute.xlu1 %679  ;;  %v2955_v27 = vpop.permute.xlu0 %737  ;;  %v382_v45 = vadd.f32 %v2686_v28, %v270_v52 }
 0x189   :  { %4332 = vst [vmem:[#allocation28_spill] sm:$0xff] %v2955_v27  ;;  %v224_v52 = vadd.f32 0.5, %v222_v5  ;;  %v4280_v5 = vstv %s2962_s25 }
 0x18a   :  { %1139 = vrot.lane.b32.xlu1 %v1134_v37, %s4296_s22  ;;  %1189 = vrot.lane.b32.xlu0 %v1185_v1, %s4296_s22  ;;  %v283_v1 = vadd.f32 %v2609_v14, %v219_v54  ;;  %v494_v28 = vadd.f32 %v2776_v51, %v382_v45  ;;  %v4281_v37 = vstv %s2940_s20  ;;  %v4336_v54 = vstv %s2882_s14  ;;  %s3128_s14 = sld [smem:[#allocation7 + $0x72]] }
 0x18b   :  { %v1160_v13 = vmul.f32 %v4336_v54, %v2714_v4  ;;  %v4291_v54 = vstv %s2967_s26 }
 0x18c   :  { %v2975_v27 = vpop.permute.xlu1 %692  ;;  %v2978_v0 = vpop.permute.xlu0 %750  ;;  %v395_v14 = vadd.f32 %v2697_v56, %v283_v1  ;;  %v606_v51 = vadd.f32 %v2864_v32, %v494_v28  ;;  %v296_v56 = vadd.f32 %v2620_v19, %v224_v52  ;;  %v823_v28 = vmul.f32 %v4280_v5, %v2714_v4 }
 0x18d   :  { %4334 = vst [vmem:[#allocation29_spill] sm:$0xff] %v2978_v0  ;;  %v229_v19 = vadd.f32 0.5, %v227_v12  ;;  %v1244_v12 = vstv %s2983_s27  ;;  %s3213_s27 = sld [smem:[#allocation7 + $0x53]] }
 0x18e   :  { %1152 = vrot.lane.b32.xlu1 %v1147_v9, %s4296_s22  ;;  %1210 = vrot.lane.b32.xlu0 %v1206_v59, %s4294_s30  ;;  %v1219_v59 = vmul.f32 %v4281_v37, %v2361_v29  ;;  %v1231_v9 = vstv %s2960_s24  ;;  %v507_v32 = vadd.f32 %v2787_v60, %v395_v14  ;;  %v4339_v29 = vstv %s2945_s23  ;;  %v3037_v37 = vld [vmem:[#allocation9 + $0x10] sm:$0xff]  ;;  %s3195_s24 = sld [smem:[#allocation7 + $0x41]] }
 0x18f   :  { %v232_v3 = vmul.f32 %v4339_v29, %v2385_v42  ;;  %v408_v60 = vadd.f32 %v2708_v63, %v296_v56  ;;  %v4282_v63 = vstv %s2985_s28  ;;  %s4401_s28 = smov 126  }
 0x190   :  { %v714_v45 = vpop.permute.xlu1 %713  ;;  %v3004_v46 = vpop.permute.xlu0 %763  ;;  %v619_v52 = vadd.f32 %v2875_v50, %v507_v32  ;;  %v309_v50 = vadd.f32 %v2631_v24, %v229_v19  ;;  %v828_v32 = vmul.f32 %v4282_v63, %v2714_v4  ;;  %4351 = sst [smem:[#allocation40_spill]] %s3128_s14 }
 0x191   :  { %4337 = vst [vmem:[#allocation31_spill] sm:$0xff] %v3004_v46  ;;  %v718_v1 = vadd.f32 %v714_v45, %v606_v51  ;;  %v4340_v45 = vstv %s2893_s16  ;;  %s3132_s16 = sld [smem:[#allocation7 + $0xb]] }
 0x192   :  { %1165 = vrot.lane.b32.xlu1 %v1160_v13, %s4296_s22  ;;  %1223 = vrot.lane.b32.xlu0 %v1219_v59, %s4294_s30  ;;  %v1173_v29 = vmul.f32 %v4340_v45, %v2714_v4  ;;  %v1232_v13 = vmul.f32 %v3037_v37, %v1231_v9  ;;  %v520_v59 = vadd.f32 %v2798_v8, %v408_v60  ;;  %v234_v45 = vadd.f32 0.5, %v232_v3 }
 0x193   :  { %v3030_v14 = vadd.f32 %v823_v28, %v718_v1  ;;  %v4284_v1 = vstv %s2992_s29  ;;  %v237_v28 = vmul.f32 %v4291_v54, %v2385_v42  ;;  %v421_v24 = vadd.f32 %v2721_v7, %v309_v50 }
 0x194   :  { %v727_v51 = vpop.permute.xlu1 %726  ;;  %v3035_v5 = vpop.permute.xlu0 %776  ;;  %v632_v8 = vadd.f32 %v2886_v57, %v520_v59  ;;  %v1245_v42 = vmul.f32 %v3037_v37, %v1244_v12  ;;  %v4283_v3 = vstv %s3013_s4  ;;  %v322_v7 = vadd.f32 %v2642_v31, %v234_v45  ;;  %s3517_s4 = sld [smem:[#allocation7 + $0x42]] }
 0x195   :  { %4341 = vst [vmem:[#allocation33_spill] sm:$0xff] %v3035_v5  ;;  %v731_v56 = vadd.f32 %v727_v51, %v619_v52  ;;  %v4343_v52 = vstv %s2906_s18  ;;  %v533_v57 = vadd.f32 %v2809_v22, %v421_v24  ;;  %v833_v50 = vmul.f32 %v4283_v3, %v2714_v4  ;;  %s3153_s18 = sld [smem:[#allocation7 + $0x84]] }
 0x196   :  { %1178 = vrot.lane.b32.xlu1 %v1173_v29, %s4296_s22  ;;  %1236 = vrot.lane.b32.xlu0 %v1232_v13, %s4294_s30  ;;  %v1186_v51 = vmul.f32 %v4343_v52, %v2714_v4  ;;  %v1257_v29 = vstv %s3010_s1  ;;  %v4290_v59 = vstv %s3024_s5  ;;  %v239_v52 = vadd.f32 0.5, %v237_v28  ;;  %s3226_s1 = sld [smem:[#allocation7 + $0x65]] }
 0x197   :  { %v3061_v19 = vadd.f32 %v828_v32, %v731_v56  ;;  %v2270_v56 = vld [vmem:[#allocation9 + $0x8] sm:$0x3f]  ;;  %v434_v31 = vadd.f32 %v2732_v15, %v322_v7  ;;  %v645_v22 = vadd.f32 %v2899_v61, %v533_v57  ;;  %v4289_v28 = vstv %s3046_s8  ;;  %s3514_s8 = sld [smem:[#allocation7 + $0x30]] }
 0x198   :  { %v740_v60 = vpop.permute.xlu1 %739  ;;  %v3066_v63 = vpop.permute.xlu0 %789  ;;  %v242_v32 = vmul.f32 %v2270_v56, %v4284_v1  ;;  %v1270_v1 = vstv %s3043_s7  ;;  %v335_v15 = vadd.f32 %v2653_v36, %v239_v52  ;;  %v838_v7 = vmul.f32 %v4289_v28, %v2714_v4  ;;  %s3237_s7 = sld [smem:[#allocation7 + $0x77]]  ;;  %v3290_v28 = vld [vmem:[#allocation9 + $0x20] sm:$0xff] }
 0x199   :  { %4344 = vst [vmem:[#allocation35_spill] sm:$0xff] %v3066_v63  ;;  %v744_v13 = vadd.f32 %v740_v60, %v632_v8  ;;  %v4346_v8 = vstv %s2921_s19  ;;  %v546_v61 = vadd.f32 %v2820_v39, %v434_v31  ;;  %v247_v57 = vmul.f32 %v2270_v56, %v4290_v59  ;;  %s3157_s19 = sld [smem:[#allocation7 + $0x1d]]  ;;  %4371 = vst [vmem:[#allocation60_spill] sm:$0xff] %v3290_v28 }
 0x19a   :  { %1191 = vrot.lane.b32.xlu1 %v1186_v51, %s4296_s22  ;;  %1249 = vrot.lane.b32.xlu0 %v1245_v42, %s4294_s30  ;;  %v1207_v60 = vmul.f32 %v4346_v8, %v2714_v4  ;;  %v1258_v51 = vmul.f32 %v3037_v37, %v1257_v29  ;;  %v4349_v39 = vstv %s2940_s20  ;;  %v1271_v56 = vmul.f32 %v3037_v37, %v1270_v1  ;;  %s3177_s20 = sld [smem:[#allocation7 + $0x2f]]  ;;  %s3492_s22 = sld [smem:[#allocation7 + $0x46]] }
 0x19b   :  { %v3089_v45 = vadd.f32 %v833_v50, %v744_v13  ;;  %v244_v13 = vadd.f32 0.5, %v242_v32  ;;  %v447_v50 = vadd.f32 %v2743_v23, %v335_v15  ;;  %v658_v8 = vadd.f32 %v2912_v25, %v546_v61  ;;  %4354 = sst [smem:[#allocation43_spill]] %s3153_s18 }
 0x19c   :  { %v753_v24 = vpop.permute.xlu1 %752  ;;  %v3094_v3 = vpop.permute.xlu0 %802  ;;  %v1220_v31 = vmul.f32 %v4349_v39, %v2714_v4  ;;  %v249_v15 = vadd.f32 0.5, %v247_v57 }
 0x19d   :  { %v757_v42 = vadd.f32 %v753_v24, %v645_v22  ;;  %v1283_v24 = vstv %s3072_s9  ;;  %v348_v23 = vadd.f32 %v2664_v41, %v244_v13  ;;  %v559_v25 = vadd.f32 %v2831_v55, %v447_v50  ;;  %s3248_s9 = sld [smem:[#allocation7 + $0x89]] }
 0x19e   :  { %1212 = vrot.lane.b32.xlu1 %v1207_v60, %s4294_s30  ;;  %1262 = vrot.lane.b32.xlu0 %v1258_v51, %s4294_s30  ;;  %v4288_v60 = vstv %s3075_s10  ;;  %v1233_v55 = vmul.f32 %v1231_v9, %v2714_v4  ;;  %v1284_v50 = vmul.f32 %v3037_v37, %v1283_v24  ;;  %s3502_s10 = sld [smem:[#allocation7 + $0x1e]] }
 0x19f   :  { %v3116_v36 = vadd.f32 %v838_v7, %v757_v42  ;;  %v843_v51 = vmul.f32 %v4288_v60, %v2714_v4  ;;  %v460_v61 = vadd.f32 %v2754_v34, %v348_v23  ;;  %v671_v42 = vadd.f32 %v2931_v20, %v559_v25 }
 0x1a0   :  { %v766_v52 = vpop.permute.xlu1 %765  ;;  %v3121_v22 = vpop.permute.xlu0 %874  ;;  %v361_v34 = vadd.f32 %v2675_v47, %v249_v15 }
 0x1a1   :  { %4348 = vst [vmem:[#allocation38_spill] sm:$0xff] %v3116_v36  ;;  %4350 = vst [vmem:[#allocation39_spill] sm:$0xff] %v3121_v22  ;;  %v770_v32 = vadd.f32 %v766_v52, %v658_v8  ;;  %v1296_v8 = vstv %s3100_s11  ;;  %v4287_v52 = vstv %s3103_s12  ;;  %v572_v20 = vadd.f32 %v2842_v17, %v460_v61  ;;  %s3259_s11 = sld [smem:[#allocation7 + $0xd]]  ;;  %s3500_s12 = sld [smem:[#allocation7 + $0x6a]] }
 0x1a2   :  { %1225 = vrot.lane.b32.xlu1 %v1220_v31, %s4294_s30  ;;  %1275 = vrot.lane.b32.xlu0 %v1271_v56, %s4294_s30  ;;  %v848_v9 = vmul.f32 %v4287_v52, %v2714_v4  ;;  %v473_v39 = vadd.f32 %v2765_v43, %v361_v34  ;;  %v1246_v17 = vmul.f32 %v1244_v12, %v2714_v4  ;;  %v1317_v43 = vstv %s3132_s16  ;;  %s3270_s16 = sld [smem:[#allocation7 + $0x1f]] }
 0x1a3   :  { %v3141_v41 = vadd.f32 %v843_v51, %v770_v32  ;;  %v684_v31 = vadd.f32 %v2952_v35, %v572_v20  ;;  %v1297_v25 = vmul.f32 %v3037_v37, %v1296_v8  ;;  %v4286_v32 = vstv %s3128_s14  ;;  %s3498_s14 = sld [smem:[#allocation7 + $0xc]] }
 0x1a4   :  { %v779_v7 = vpop.permute.xlu1 %778  ;;  %v3146_v13 = vpop.permute.xlu0 %887  ;;  %v585_v51 = vadd.f32 %v2853_v40, %v473_v39  ;;  %v853_v35 = vmul.f32 %v4286_v32, %v2714_v4  ;;  %v1259_v40 = vmul.f32 %v1257_v29, %v2714_v4  ;;  %v1330_v20 = vstv %s3157_s19  ;;  %s3281_s19 = sld [smem:[#allocation7 + $0x31]] }
 0x1a5   :  { %4352 = vst [vmem:[#allocation41_spill] sm:$0xff] %v3141_v41  ;;  %4353 = vst [vmem:[#allocation42_spill] sm:$0xff] %v3146_v13  ;;  %v783_v57 = vadd.f32 %v779_v7, %v671_v42  ;;  %v4407_v41 = vstv %s2924_s0  ;;  %s4416_s0 = sld [smem:[#allocation32_spill]] }
 0x1a6   :  { %1238 = vrot.lane.b32.xlu1 %v1233_v55, %s4294_s30  ;;  %1288 = vrot.lane.b32.xlu0 %v1284_v50, %s4294_s30  ;;  %v697_v12 = vadd.f32 %v2975_v27, %v585_v51  ;;  %v1318_v55 = vmul.f32 %v3037_v37, %v1317_v43  ;;  %v4285_v50 = vstv %s3153_s18  ;;  %s3496_s18 = sld [smem:[#allocation7 + $0x58]] }
 0x1a7   :  { %v3166_v56 = vadd.f32 %v848_v9, %v783_v57  ;;  %v858_v27 = vmul.f32 %v4285_v50, %v2714_v4  ;;  %v1272_v9 = vmul.f32 %v1270_v1, %v2714_v4  ;;  %v1408_v50 = vstv %s3248_s9  ;;  %s3351_s9 = sld [smem:[#allocation7 + $0xe]] }
 0x1a8   :  { %v792_v47 = vpop.permute.xlu1 %791  ;;  %v3171_v23 = vpop.permute.xlu0 %900  ;;  %v1480_v52 = vstv %s3259_s11  ;;  %v1493_v59 = vstv %s3270_s16  ;;  %s3362_s11 = sld [smem:[#allocation7 + $0x20]]  ;;  %s3373_s16 = sld [smem:[#allocation7 + $0x32]] }
 0x1a9   :  { %4355 = vst [vmem:[#allocation44_spill] sm:$0xff] %v3166_v56  ;;  %4356 = vst [vmem:[#allocation45_spill] sm:$0xff] %v3171_v23  ;;  %v796_v15 = vadd.f32 %v792_v47, %v684_v31  ;;  %v1331_v31 = vmul.f32 %v3037_v37, %v1330_v20  ;;  %v1343_v47 = vstv %s3177_s20  ;;  %s3294_s20 = sld [smem:[#allocation7 + $0x43]] }
 0x1aa   :  { %1251 = vrot.lane.b32.xlu1 %v1246_v17, %s4294_s30  ;;  %1301 = vrot.lane.b32.xlu0 %v1297_v25, %s4294_s30  ;;  %v1285_v25 = vmul.f32 %v1283_v24, %v2714_v4  ;;  %v1344_v1 = vmul.f32 %v3037_v37, %v1343_v47 }
 0x1ab   :  { %v3185_v61 = vadd.f32 %v853_v35, %v796_v15  ;;  %v1356_v15 = vstv %s3195_s24  ;;  %s3305_s24 = sld [smem:[#allocation7 + $0x55]] }
 0x1ac   :  { %v805_v42 = vpop.permute.xlu1 %804  ;;  %v3190_v7 = vpop.permute.xlu0 %913  ;;  %v1357_v24 = vmul.f32 %v3037_v37, %v1356_v15 }
 0x1ad   :  { %4357 = vst [vmem:[#allocation46_spill] sm:$0xff] %v3185_v61  ;;  %4358 = vst [vmem:[#allocation47_spill] sm:$0xff] %v3190_v7  ;;  %v809_v34 = vadd.f32 %v805_v42, %v697_v12  ;;  %v1298_v12 = vmul.f32 %v1296_v8, %v2714_v4 }
 0x1ae   :  { %1264 = vrot.lane.b32.xlu1 %v1259_v40, %s4294_s30  ;;  %1322 = vrot.lane.b32.xlu0 %v1318_v55, %s4292_s13  ;;  %v1369_v40 = vstv %s3213_s27  ;;  %s3316_s27 = sld [smem:[#allocation7 + $0x67]] }
 0x1af   :  { %v3202_v57 = vadd.f32 %v858_v27, %v809_v34  ;;  %v1319_v34 = vmul.f32 %v1317_v43, %v2714_v4  ;;  %v1370_v8 = vmul.f32 %v3037_v37, %v1369_v40  ;;  %v1519_v63 = vstv %s3294_s20  ;;  %s3395_s20 = sld [smem:[#allocation7 + $0x56]] }
 0x1b0   :  { %v3204_v29 = vpop.permute.xlu1 %876  ;;  %v3209_v39 = vpop.permute.xlu0 %926 }
 0x1b1   :  { %4359 = vst [vmem:[#allocation48_spill] sm:$0xff] %v3209_v39  ;;  %v3326_v39 = vld [vmem:[#allocation9 + $0x28] sm:$0x3f] }
 0x1b2   :  { %1277 = vrot.lane.b32.xlu1 %v1272_v9, %s4294_s30  ;;  %1335 = vrot.lane.b32.xlu0 %v1331_v31, %s4292_s13  ;;  %v1382_v9 = vstv %s3226_s1  ;;  %s3329_s1 = sld [smem:[#allocation7 + $0x79]] }
 0x1b3   :  { %v1383_v43 = vmul.f32 %v3037_v37, %v1382_v9 }
 0x1b4   :  { %v3217_v17 = vpop.permute.xlu1 %889  ;;  %v3222_v51 = vpop.permute.xlu0 %939 }
 0x1b5   :  { %4360 = vst [vmem:[#allocation49_spill] sm:$0xff] %v3222_v51  ;;  %v1644_v46 = vstv %s3395_s20  ;;  %s3473_s20 = sld [smem:[#allocation7 + $0x7b]] }
 0x1b6   :  { %1290 = vrot.lane.b32.xlu1 %v1285_v25, %s4294_s30  ;;  %1348 = vrot.lane.b32.xlu0 %v1344_v1, %s4292_s13  ;;  %v1332_v25 = vmul.f32 %v1330_v20, %v2714_v4 }
 0x1b8   :  { %v3230_v35 = vpop.permute.xlu1 %902  ;;  %v3233_v42 = vpop.permute.xlu0 %952 }
 0x1b9   :  { %4361 = vst [vmem:[#allocation50_spill] sm:$0xff] %v3233_v42  ;;  %v1506_v42 = vstv %s3281_s19  ;;  %s3384_s19 = sld [smem:[#allocation7 + $0x44]] }
 0x1ba   :  { %1303 = vrot.lane.b32.xlu1 %v1298_v12, %s4294_s30  ;;  %1361 = vrot.lane.b32.xlu0 %v1357_v24, %s4292_s13  ;;  %v1395_v12 = vstv %s3237_s7  ;;  %s3340_s7 = sld [smem:[#allocation7 + $0x8b]]  ;;  %s3490_s30 = sld [smem:[#allocation7 + $0x34]] }
 0x1bb   :  { %v1396_v20 = vmul.f32 %v3037_v37, %v1395_v12 }
 0x1bc   :  { %v3241_v55 = vpop.permute.xlu1 %915  ;;  %v3244_v27 = vpop.permute.xlu0 %965 }
 0x1bd   :  { %4362 = vst [vmem:[#allocation51_spill] sm:$0xff] %v3241_v55  ;;  %4363 = vst [vmem:[#allocation52_spill] sm:$0xff] %v3244_v27 }
 0x1be   :  { %1324 = vrot.lane.b32.xlu1 %v1319_v34, %s4292_s13  ;;  %1374 = vrot.lane.b32.xlu0 %v1370_v8, %s4292_s13  ;;  %v1345_v34 = vmul.f32 %v1343_v47, %v2714_v4  ;;  %v1409_v47 = vmul.f32 %v3037_v37, %v1408_v50 }
 0x1bf   :  { %v1631_v56 = vstv %s3384_s19  ;;  %s3471_s19 = sld [smem:[#allocation7 + $0x69]] }
 0x1c0   :  { %v3252_v31 = vpop.permute.xlu1 %928  ;;  %v3255_v1 = vpop.permute.xlu0 %986  ;;  %v1571_v5 = vstv %s3340_s7  ;;  %s3450_s7 = sld [smem:[#allocation7 + $0x21]] }
 0x1c1   :  { %4364 = vst [vmem:[#allocation53_spill] sm:$0xff] %v3252_v31  ;;  %4365 = vst [vmem:[#allocation54_spill] sm:$0xff] %v3255_v1 }
 0x1c2   :  { %1337 = vrot.lane.b32.xlu1 %v1332_v25, %s4292_s13  ;;  %1387 = vrot.lane.b32.xlu0 %v1383_v43, %s4292_s13  ;;  %v1358_v25 = vmul.f32 %v1356_v15, %v2714_v4  ;;  %v1481_v15 = vmul.f32 %v3290_v28, %v1480_v52 }
 0x1c4   :  { %v3263_v24 = vpop.permute.xlu1 %941  ;;  %v3266_v8 = vpop.permute.xlu0 %999 }
 0x1c5   :  { %4366 = vst [vmem:[#allocation55_spill] sm:$0xff] %v3263_v24  ;;  %4367 = vst [vmem:[#allocation56_spill] sm:$0xff] %v3266_v8  ;;  %v1618_v24 = vstv %s3373_s16  ;;  %s3469_s16 = sld [smem:[#allocation7 + $0x57]] }
 0x1c6   :  { %1350 = vrot.lane.b32.xlu1 %v1345_v34, %s4292_s13  ;;  %1400 = vrot.lane.b32.xlu0 %v1396_v20, %s4292_s13  ;;  %v1371_v34 = vmul.f32 %v1369_v40, %v2714_v4  ;;  %v1494_v40 = vmul.f32 %v3290_v28, %v1493_v59 }
 0x1c8   :  { %v3274_v32 = vpop.permute.xlu1 %954  ;;  %v3277_v43 = vpop.permute.xlu0 %1012 }
 0x1c9   :  { %4368 = vst [vmem:[#allocation57_spill] sm:$0xff] %v3274_v32  ;;  %4369 = vst [vmem:[#allocation58_spill] sm:$0xff] %v3277_v43  ;;  %v1558_v32 = vstv %s3329_s1  ;;  %s3428_s1 = sld [smem:[#allocation7 + $0x8c]] }
 0x1ca   :  { %1363 = vrot.lane.b32.xlu1 %v1358_v25, %s4292_s13  ;;  %1413 = vrot.lane.b32.xlu0 %v1409_v47, %s4292_s13  ;;  %v1384_v47 = vmul.f32 %v1382_v9, %v2714_v4  ;;  %v1507_v9 = vmul.f32 %v3290_v28, %v1506_v42 }
 0x1cc   :  { %v3285_v60 = vpop.permute.xlu1 %967  ;;  %v3288_v20 = vpop.permute.xlu0 %1025 }
 0x1cd   :  { %4370 = vst [vmem:[#allocation59_spill] sm:$0xff] %v3288_v20 }
 0x1ce   :  { %1376 = vrot.lane.b32.xlu1 %v1371_v34, %s4292_s13  ;;  %1485 = vrot.lane.b32.xlu0 %v1481_v15, %s2291_s6  ;;  %v1397_v34 = vmul.f32 %v1395_v12, %v2714_v4  ;;  %v1520_v12 = vmul.f32 %v3290_v28, %v1519_v63 }
 0x1cf   :  { %v4304_v23 = vstv %s3428_s1 }
 0x1d0   :  { %v3298_v25 = vpop.permute.xlu1 %988  ;;  %v3301_v54 = vpop.permute.xlu0 %1038 }
 0x1d1   :  { %4372 = vst [vmem:[#allocation61_spill] sm:$0xff] %v3301_v54 }
 0x1d2   :  { %1389 = vrot.lane.b32.xlu1 %v1384_v47, %s4292_s13  ;;  %1498 = vrot.lane.b32.xlu0 %v1494_v40, %s2291_s6  ;;  %v1410_v47 = vmul.f32 %v1408_v50, %v2714_v4  ;;  %v1545_v50 = vstv %s3316_s27  ;;  %s3417_s27 = sld [smem:[#allocation7 + $0x7a]] }
 0x1d4   :  { %v3309_v51 = vpop.permute.xlu1 %1001  ;;  %v3312_v15 = vpop.permute.xlu0 %1051 }
 0x1d5   :  { %4373 = vst [vmem:[#allocation62_spill] sm:$0xff] %v3312_v15  ;;  %v1532_v15 = vstv %s3305_s24  ;;  %s3406_s24 = sld [smem:[#allocation7 + $0x68]] }
 0x1d6   :  { %1402 = vrot.lane.b32.xlu1 %v1397_v34, %s4292_s13  ;;  %1511 = vrot.lane.b32.xlu0 %v1507_v9, %s2291_s6  ;;  %v1482_v9 = vmul.f32 %v1480_v52, %v3326_v39  ;;  %v1533_v4 = vmul.f32 %v3290_v28, %v1532_v15  ;;  %v1546_v52 = vmul.f32 %v3290_v28, %v1545_v50 }
 0x1d8   :  { %v3320_v54 = vpop.permute.xlu1 %1014  ;;  %v3323_v40 = vpop.permute.xlu0 %1064 }
 0x1d9   :  { %4374 = vst [vmem:[#allocation63_spill] sm:$0xff] %v3320_v54  ;;  %4375 = vst [vmem:[#allocation64_spill] sm:$0xff] %v3323_v40 }
 0x1da   :  { %1415 = vrot.lane.b32.xlu1 %v1410_v47, %s4292_s13  ;;  %1524 = vrot.lane.b32.xlu0 %v1520_v12, %s2291_s6  ;;  %v1495_v47 = vmul.f32 %v1493_v59, %v3326_v39  ;;  %v1559_v59 = vmul.f32 %v3290_v28, %v1558_v32  ;;  %s3487_s13 = sld [smem:[#allocation7 + $0x22]] }
 0x1dc   :  { %v3333_v34 = vpop.permute.xlu1 %1027  ;;  %v3336_v20 = vpop.permute.xlu0 %1077 }
 0x1dd   :  { %4376 = vst [vmem:[#allocation65_spill] sm:$0xff] %v3333_v34  ;;  %4377 = vst [vmem:[#allocation66_spill] sm:$0xff] %v3336_v20  ;;  %v4418_v34 = vstv %s2967_s26  ;;  %s3888_s26 = sld [smem:[#allocation7 + $0x66]] }
 0x1de   :  { %1487 = vrot.lane.b32.xlu1 %v1482_v9, %s2291_s6  ;;  %1537 = vrot.lane.b32.xlu0 %v1533_v4, %s2291_s6  ;;  %v1508_v9 = vmul.f32 %v1506_v42, %v3326_v39  ;;  %v1572_v42 = vmul.f32 %v3290_v28, %v1571_v5 }
 0x1e0   :  { %v3344_v40 = vpop.permute.xlu1 %1040  ;;  %v3347_v12 = vpop.permute.xlu0 %1098  ;;  %v4451_v36 = vstv %s3487_s13 }
 0x1e1   :  { %4378 = vst [vmem:[#allocation67_spill] sm:$0xff] %v3344_v40  ;;  %4379 = vst [vmem:[#allocation68_spill] sm:$0xff] %v3347_v12  ;;  %v1670_v40 = vstv %s3417_s27  ;;  %s3485_s27 = sld [smem:[#allocation7 + $0x10]] }
 0x1e2   :  { %1500 = vrot.lane.b32.xlu1 %v1495_v47, %s2291_s6  ;;  %1550 = vrot.lane.b32.xlu0 %v1546_v52, %s2291_s6  ;;  %v1521_v47 = vmul.f32 %v1519_v63, %v3326_v39 }
 0x1e4   :  { %v3355_v61 = vpop.permute.xlu1 %1053  ;;  %v3358_v4 = vpop.permute.xlu0 %1111 }
 0x1e5   :  { %4380 = vst [vmem:[#allocation69_spill] sm:$0xff] %v3355_v61  ;;  %4381 = vst [vmem:[#allocation70_spill] sm:$0xff] %v3358_v4  ;;  %v1592_v61 = vstv %s3351_s9  ;;  %v1657_v4 = vstv %s3406_s24  ;;  %s3463_s9 = sld [smem:[#allocation7 + $0x33]]  ;;  %s3475_s24 = sld [smem:[#allocation7 + $0x8d]] }
 0x1e6   :  { %1513 = vrot.lane.b32.xlu1 %v1508_v9, %s2291_s6  ;;  %1563 = vrot.lane.b32.xlu0 %v1559_v59, %s2291_s6  ;;  %v1534_v9 = vmul.f32 %v1532_v15, %v3326_v39  ;;  %v1593_v63 = vmul.f32 %v3290_v28, %v1592_v61 }
 0x1e8   :  { %v3366_v7 = vpop.permute.xlu1 %1066  ;;  %v3369_v52 = vpop.permute.xlu0 %1124 }
 0x1e9   :  { %4382 = vst [vmem:[#allocation71_spill] sm:$0xff] %v3366_v7  ;;  %4383 = vst [vmem:[#allocation72_spill] sm:$0xff] %v3369_v52  ;;  %v1605_v7 = vstv %s3362_s11  ;;  %s3465_s11 = sld [smem:[#allocation7 + $0x45]] }
 0x1ea   :  { %1526 = vrot.lane.b32.xlu1 %v1521_v47, %s2291_s6  ;;  %1576 = vrot.lane.b32.xlu0 %v1572_v42, %s2291_s6  ;;  %v1547_v47 = vmul.f32 %v1545_v50, %v3326_v39  ;;  %v1606_v15 = vmul.f32 %v3290_v28, %v1605_v7  ;;  %v1619_v50 = vmul.f32 %v3290_v28, %v1618_v24 }
 0x1ec   :  { %v3377_v43 = vpop.permute.xlu1 %1079  ;;  %v3380_v59 = vpop.permute.xlu0 %1137 }
 0x1ed   :  { %4384 = vst [vmem:[#allocation73_spill] sm:$0xff] %v3380_v59 }
 0x1ee   :  { %1539 = vrot.lane.b32.xlu1 %v1534_v9, %s2291_s6  ;;  %1597 = vrot.lane.b32.xlu0 %v1593_v63, %s4305_s15  ;;  %v1560_v9 = vmul.f32 %v1558_v32, %v3326_v39  ;;  %v1632_v32 = vmul.f32 %v3290_v28, %v1631_v56 }
 0x1ef   :  { %v4413_v20 = vstv %s3465_s11 }
 0x1f0   :  { %v3388_v52 = vpop.permute.xlu1 %1100  ;;  %v3391_v42 = vpop.permute.xlu0 %1150 }
 0x1f1   :  { %4385 = vst [vmem:[#allocation74_spill] sm:$0xff] %v3391_v42 }
 0x1f2   :  { %1552 = vrot.lane.b32.xlu1 %v1547_v47, %s2291_s6  ;;  %1610 = vrot.lane.b32.xlu0 %v1606_v15, %s4305_s15  ;;  %v1573_v47 = vmul.f32 %v1571_v5, %v3326_v39  ;;  %v1645_v5 = vmul.f32 %v3290_v28, %v1644_v46 }
 0x1f4   :  { %v3399_v59 = vpop.permute.xlu1 %1113  ;;  %v3402_v63 = vpop.permute.xlu0 %1163 }
 0x1f5   :  { %4386 = vst [vmem:[#allocation75_spill] sm:$0xff] %v3402_v63 }
 0x1f6   :  { %1565 = vrot.lane.b32.xlu1 %v1560_v9, %s2291_s6  ;;  %1623 = vrot.lane.b32.xlu0 %v1619_v50, %s4305_s15  ;;  %v1594_v9 = vmul.f32 %v1592_v61, %v3326_v39  ;;  %v1658_v61 = vmul.f32 %v3290_v28, %v1657_v4 }
 0x1f8   :  { %v3410_v42 = vpop.permute.xlu1 %1126  ;;  %v3413_v15 = vpop.permute.xlu0 %1176 }
 0x1f9   :  { %4387 = vst [vmem:[#allocation76_spill] sm:$0xff] %v3410_v42  ;;  %4388 = vst [vmem:[#allocation77_spill] sm:$0xff] %v3413_v15 }
 0x1fa   :  { %1578 = vrot.lane.b32.xlu1 %v1573_v47, %s2291_s6  ;;  %1636 = vrot.lane.b32.xlu0 %v1632_v32, %s4305_s15  ;;  %v1607_v47 = vmul.f32 %v1605_v7, %v3326_v39  ;;  %s3439_s6 = sld [smem:[#allocation7 + $0xf]]  ;;  %v1671_v7 = vmul.f32 %v3290_v28, %v1670_v40 }
 0x1fc   :  { %v3421_v63 = vpop.permute.xlu1 %1139  ;;  %v3424_v50 = vpop.permute.xlu0 %1189 }
 0x1fd   :  { %4389 = vst [vmem:[#allocation78_spill] sm:$0xff] %v3421_v63  ;;  %4390 = vst [vmem:[#allocation79_spill] sm:$0xff] %v3424_v50  ;;  %v2272_v63 = vld [vmem:[#allocation9] sm:$0xff] }
 0x1fe   :  { %1599 = vrot.lane.b32.xlu1 %v1594_v9, %s4305_s15  ;;  %1649 = vrot.lane.b32.xlu0 %v1645_v5, %s4305_s15  ;;  %v1620_v5 = vmul.f32 %v1618_v24, %v3326_v39  ;;  %v1684_v24 = vmul.f32 %v3290_v28, %v4304_v23 }
 0x200   :  { %v3432_v15 = vpop.permute.xlu1 %1152  ;;  %v3435_v32 = vpop.permute.xlu0 %1210  ;;  %4393 = sst [smem:[#allocation82_spill]] %s3439_s6 }
 0x201   :  { %4391 = vst [vmem:[#allocation80_spill] sm:$0xff] %v3432_v15  ;;  %4392 = vst [vmem:[#allocation81_spill] sm:$0xff] %v3435_v32 }
 0x202   :  { %1612 = vrot.lane.b32.xlu1 %v1607_v47, %s4305_s15  ;;  %1662 = vrot.lane.b32.xlu0 %v1658_v61, %s4305_s15  ;;  %v1633_v47 = vmul.f32 %v1631_v56, %v3326_v39 }
 0x204   :  { %v3443_v9 = vpop.permute.xlu1 %1165  ;;  %v3446_v15 = vpop.permute.xlu0 %1223 }
 0x205   :  { %4394 = vst [vmem:[#allocation83_spill] sm:$0xff] %v3443_v9  ;;  %4395 = vst [vmem:[#allocation84_spill] sm:$0xff] %v3446_v15  ;;  %v4303_v9 = vstv %s3439_s6  ;;  %s3519_s6 = sld [smem:[#allocation7 + $0x54]] }
 0x206   :  { %1625 = vrot.lane.b32.xlu1 %v1620_v5, %s4305_s15  ;;  %1675 = vrot.lane.b32.xlu0 %v1671_v7, %s4305_s15  ;;  %v1646_v5 = vmul.f32 %v1644_v46, %v3326_v39 }
 0x208   :  { %v3454_v32 = vpop.permute.xlu1 %1178  ;;  %v3457_v61 = vpop.permute.xlu0 %1236 }
 0x209   :  { %4396 = vst [vmem:[#allocation85_spill] sm:$0xff] %v3454_v32  ;;  %4397 = vst [vmem:[#allocation86_spill] sm:$0xff] %v3457_v61  ;;  %v4404_v32 = vstv %s3463_s9 }
 0x20a   :  { %1638 = vrot.lane.b32.xlu1 %v1633_v47, %s4305_s15  ;;  %1688 = vrot.lane.b32.xlu0 %v1684_v24, %s4305_s15  ;;  %v1705_v47 = vmul.f32 %v3290_v28, %v4303_v9  ;;  %v4311_v24 = vstv %s3450_s7  ;;  %v1659_v9 = vmul.f32 %v1657_v4, %v3326_v39  ;;  %v1731_v61 = vmul.f32 %v3290_v28, %v4404_v32 }
 0x20b   :  { %v221_v32 = vmul.f32 %v2272_v63, %v4407_v41  ;;  %v4408_v4 = vstv %s2943_s21  ;;  %s4417_s21 = sld [smem:[#allocation34_spill]] }
 0x20c   :  { %v3477_v56 = vpop.permute.xlu1 %1191  ;;  %v3480_v7 = vpop.permute.xlu0 %1249  ;;  %v226_v50 = vmul.f32 %v2272_v63, %v4408_v4  ;;  %v1437_v4 = vstv %s3502_s10  ;;  %s4421_s10 = sld [smem:[#allocation40_spill]] }
 0x20d   :  { %4398 = vst [vmem:[#allocation87_spill] sm:$0xff] %v3480_v7  ;;  %v1672_v7 = vmul.f32 %v1670_v40, %v3326_v39  ;;  %v4405_v40 = vstv %s2895_s17  ;;  %s4414_s17 = sld [smem:[#allocation30_spill]] }
 0x20e   :  { %1651 = vrot.lane.b32.xlu1 %v1646_v5, %s4305_s15  ;;  %1709 = vrot.lane.b32.xlu0 %v1705_v47, %s4399_s3  ;;  %v1718_v5 = vmul.f32 %v3290_v28, %v4311_v24  ;;  %s3512_s15 = sld [smem:[#allocation7 + $0x7c]]  ;;  %v211_v8 = vmul.f32 %v2272_v63, %v4405_v40  ;;  %v1442_v24 = vstv %s3514_s8  ;;  %s4422_s8 = sld [smem:[#allocation43_spill]] }
 0x210   :  { %v3504_v46 = vpop.permute.xlu1 %1212  ;;  %v3507_v23 = vpop.permute.xlu0 %1262 }
 0x211   :  { %4400 = vst [vmem:[#allocation88_spill] sm:$0xff] %v3507_v23  ;;  %v4434_v1 = vstv %s4417_s21 }
 0x212   :  { %1664 = vrot.lane.b32.xlu1 %v1659_v9, %s4401_s28  ;;  %1722 = vrot.lane.b32.xlu0 %v1718_v5, %s4399_s3  ;;  %v4409_v5 = vstv %s2945_s23  ;;  %s4419_s23 = sld [smem:[#allocation36_spill]]  ;;  %v4423_v9 = vstv %s2992_s29  ;;  %s3940_s29 = sld [smem:[#allocation7 + $0x8a]] }
 0x213   :  { %v231_v15 = vmul.f32 %v2272_v63, %v4409_v5  ;;  %v228_v5 = vadd.f32 0.5, %v226_v50  ;;  %v4440_v55 = vstv %s4421_s10 }
 0x214   :  { %v3525_v23 = vpop.permute.xlu1 %1225  ;;  %v3528_v47 = vpop.permute.xlu0 %1275 }
 0x215   :  { %4402 = vst [vmem:[#allocation89_spill] sm:$0xff] %v3525_v23  ;;  %4403 = vst [vmem:[#allocation90_spill] sm:$0xff] %v3528_v47  ;;  %v4406_v47 = vstv %s2908_s2  ;;  %s4415_s2 = sld [smem:[#allocation82_spill]]  ;;  %v3576_v40 = vadd.f32 0.5, %v231_v15 }
 0x216   :  { %v216_v31 = vmul.f32 %v2272_v63, %v4406_v47  ;;  %1677 = vrot.lane.b32.xlu1 %v1672_v7, %s4401_s28  ;;  %1735 = vrot.lane.b32.xlu0 %v1731_v61, %s4399_s3  ;;  %v4411_v47 = vstv %s3428_s1  ;;  %v1744_v7 = vmul.f32 %v3290_v28, %v4413_v20  ;;  %v236_v20 = vmul.f32 %v2272_v63, %v4418_v34  ;;  %s4420_s1 = sld [smem:[#allocation37_spill]] }
 0x217   :  { %v1685_v12 = vmul.f32 %v4411_v47, %v3326_v39  ;;  %v4424_v61 = vstv %s3024_s5  ;;  %v4426_v34 = vstv %s4414_s17  ;;  %s3981_s5 = sld [smem:[#allocation7 + $0x35]] }
 0x218   :  { %v3554_v0 = vpop.permute.xlu1 %1238  ;;  %v3559_v41 = vpop.permute.xlu0 %1288  ;;  %v218_v47 = vadd.f32 0.5, %v216_v31  ;;  %v246_v31 = vmul.f32 %v2272_v63, %v4424_v61 }
 0x219   :  { %4410 = vst [vmem:[#allocation91_spill] sm:$0xff] %v3554_v0  ;;  %4412 = vst [vmem:[#allocation92_spill] sm:$0xff] %v3559_v41  ;;  %v213_v0 = vadd.f32 0.5, %v211_v8  ;;  %v3570_v41 = vadd.f32 0.5, %v221_v32  ;;  %v241_v8 = vmul.f32 %v2272_v63, %v4423_v9  ;;  %v4425_v32 = vstv %s2962_s25  ;;  %s3862_s25 = sld [smem:[#allocation7 + $0x11]] }
 0x21a   :  { %1690 = vrot.lane.b32.xlu1 %v1685_v12, %s4401_s28  ;;  %1748 = vrot.lane.b32.xlu0 %v1744_v7, %s4399_s3  ;;  %v3585_v13 = vmul.f32 %v3037_v37, %v4425_v32  ;;  %v3590_v12 = vmul.f32 %v3037_v37, %v4426_v34  ;;  %v4431_v63 = vstv %s3469_s16  ;;  %v4432_v32 = vstv %s4416_s0  ;;  %s3937_s28 = sld [smem:[#allocation7 + $0x23]] }
 0x21b   :  { %v4429_v15 = vstv %s4415_s2  ;;  %v1757_v61 = vmul.f32 %v3290_v28, %v4431_v63  ;;  %v3605_v42 = vmul.f32 %v3037_v37, %v4432_v32  ;;  %v3610_v34 = vmul.f32 %v3037_v37, %v4434_v1 }
 0x21c   :  { %4427 = vst [vmem:[#allocation93_spill] sm:$0xff] %v3590_v12  ;;  %v3592_v7 = vpop.permute.xlu1 %1251  ;;  %v1706_v50 = vmul.f32 %v4429_v15, %v3326_v39  ;;  %v3597_v9 = vpop.permute.xlu0 %1301  ;;  %v4438_v15 = vstv %s4420_s1  ;;  %v238_v63 = vadd.f32 0.5, %v236_v20  ;;  %v3625_v32 = vmul.f32 %v3037_v37, %v4440_v55 }
 0x21d   :  { %4428 = vst [vmem:[#allocation94_spill] sm:$0xff] %v3592_v7  ;;  %4430 = vst [vmem:[#allocation95_spill] sm:$0xff] %v3597_v9  ;;  %v4436_v7 = vstv %s4419_s23  ;;  %v3620_v9 = vmul.f32 %v3037_v37, %v4438_v15  ;;  %v4444_v20 = vstv %s3463_s9  ;;  %s4591_s9 = sld [smem:[#allocation118_spill]] }
 0x21e   :  { %4433 = vst [vmem:[#allocation96_spill] sm:$0xff] %v3605_v42  ;;  %4435 = vst [vmem:[#allocation97_spill] sm:$0xff] %v3610_v34  ;;  %v3615_v27 = vmul.f32 %v3037_v37, %v4436_v7  ;;  %v4442_v42 = vstv %s4422_s8  ;;  %1711 = vrot.lane.b32.xlu1 %v1706_v50, %s4399_s3  ;;  %v4443_v7 = vstv %s3450_s7  ;;  %1761 = vrot.lane.b32.xlu0 %v1757_v61, %s4399_s3 }
 0x21f   :  { %4439 = vst [vmem:[#allocation99_spill] sm:$0xff] %v3620_v9  ;;  %4441 = vst [vmem:[#allocation100_spill] sm:$0xff] %v3625_v32  ;;  %v3630_v1 = vmul.f32 %v3037_v37, %v4442_v42  ;;  %v1732_v15 = vmul.f32 %v4444_v20, %v3326_v39  ;;  %v4445_v9 = vstv %s3471_s19  ;;  %v4446_v32 = vstv %s3473_s20 }
 0x220   :  { %4437 = vst [vmem:[#allocation98_spill] sm:$0xff] %v3615_v27  ;;  %v1719_v27 = vmul.f32 %v4443_v7, %v3326_v39  ;;  %v1770_v55 = vmul.f32 %v3290_v28, %v4445_v9  ;;  %v1783_v34 = vmul.f32 %v3290_v28, %v4446_v32  ;;  %v4447_v37 = vstv %s3475_s24  ;;  %v3649_v50 = vpop.permute.xlu1 %1264  ;;  %v3651_v7 = vpop.permute.xlu0 %1322 }
 0x221   :  { %v1796_v42 = vmul.f32 %v3290_v28, %v4447_v37  ;;  %4448 = vst [vmem:[#allocation101_spill] sm:$0xff] %v3649_v50  ;;  %4449 = vst [vmem:[#allocation102_spill] sm:$0xff] %v3651_v7  ;;  %v4450_v61 = vstv %s3485_s27  ;;  %v3661_v9 = vmul.f32 %v3290_v28, %v4451_v36  ;;  %v4452_v32 = vstv %s3490_s30 }
 0x222   :  { %v3656_v20 = vmul.f32 %v3290_v28, %v4450_v61  ;;  %v3666_v12 = vmul.f32 %v3290_v28, %v4452_v32  ;;  %v4454_v37 = vstv %s3492_s22  ;;  %v4456_v7 = vstv %s3496_s18  ;;  %1724 = vrot.lane.b32.xlu1 %v1719_v27, %s4399_s3  ;;  %1774 = vrot.lane.b32.xlu0 %v1770_v55, %s4399_s3 }
 0x223   :  { %v3671_v50 = vmul.f32 %v3290_v28, %v4454_v37  ;;  %v3676_v23 = vmul.f32 %v3290_v28, %v4456_v7  ;;  %v4458_v61 = vstv %s3498_s14  ;;  %v4460_v36 = vstv %s3500_s12 }
 0x224   :  { %4453 = vst [vmem:[#allocation103_spill] sm:$0xff] %v3666_v12  ;;  %v3681_v54 = vmul.f32 %v3290_v28, %v4458_v61  ;;  %v3686_v22 = vmul.f32 %v3290_v28, %v4460_v36  ;;  %v3689_v32 = vmul.f32 %v3290_v28, %v1437_v4  ;;  %v248_v37 = vadd.f32 0.5, %v246_v31 }
 0x225   :  { %4455 = vst [vmem:[#allocation104_spill] sm:$0xff] %v3671_v50  ;;  %4457 = vst [vmem:[#allocation105_spill] sm:$0xff] %v3676_v23  ;;  %v4463_v7 = vstv %s3465_s11  ;;  %v4464_v61 = vstv %s3512_s15  ;;  %v3702_v36 = vmul.f32 %v3290_v28, %v1442_v24  ;;  %v4468_v31 = vstv %s3471_s19 }
 0x226   :  { %4459 = vst [vmem:[#allocation106_spill] sm:$0xff] %v3681_v54  ;;  %4461 = vst [vmem:[#allocation107_spill] sm:$0xff] %v3686_v22  ;;  %v1745_v23 = vmul.f32 %v4463_v7, %v3326_v39  ;;  %v3699_v54 = vmul.f32 %v3290_v28, %v4464_v61  ;;  %v4467_v22 = vstv %s3469_s16  ;;  %v3710_v50 = vmul.f32 %v4468_v31, %v3326_v39  ;;  %v3722_v61 = vpop.permute.xlu1 %1277  ;;  %v3724_v28 = vpop.permute.xlu0 %1335 }
 0x227   :  { %4462 = vst [vmem:[#allocation108_spill] sm:$0xff] %v3689_v32  ;;  %4466 = vst [vmem:[#allocation110_spill] sm:$0xff] %v3702_v36  ;;  %v1758_v32 = vmul.f32 %v4467_v22, %v3326_v39  ;;  %v4469_v27 = vstv %s3473_s20  ;;  %v4471_v55 = vstv %s3475_s24  ;;  %v4475_v36 = vstv %s3485_s27  ;;  %1737 = vrot.lane.b32.xlu1 %v1732_v15, %s4399_s3 }
 0x228   :  { %4465 = vst [vmem:[#allocation109_spill] sm:$0xff] %v3699_v54  ;;  %v3715_v7 = vmul.f32 %v4469_v27, %v3326_v39  ;;  %v3720_v12 = vmul.f32 %v4471_v55, %v3326_v39  ;;  %4473 = vst [vmem:[#allocation113_spill] sm:$0xff] %v3722_v61  ;;  %v3729_v22 = vmul.f32 %v4475_v36, %v3326_v39  ;;  %v4477_v31 = vstv %s3487_s13  ;;  %s3835_s13 = sld [smem:[#allocation7 + $0x8e]] }
 0x229   :  { %4474 = vst [vmem:[#allocation114_spill] sm:$0xff] %v3724_v28  ;;  %v3734_v54 = vmul.f32 %v4477_v31, %v3326_v39  ;;  %v4479_v27 = vstv %s3490_s30  ;;  %v4481_v55 = vstv %s3498_s14  ;;  %v269_v61 = vadd.f32 %v2563_v58, %v213_v0  ;;  %1787 = vrot.lane.b32.xlu0 %v1783_v34, %s4399_s3  ;;  %s4491_s30 = smov 124   ;;  %s4036_s14 = sld [smem:[#allocation7 + $0x59]] }
 0x22a   :  { %4470 = vst [vmem:[#allocation111_spill] sm:$0xff] %v3715_v7  ;;  %4472 = vst [vmem:[#allocation112_spill] sm:$0xff] %v3720_v12  ;;  %v3739_v7 = vmul.f32 %v4479_v27, %v3326_v39  ;;  %v3744_v12 = vmul.f32 %v4481_v55, %v3326_v39  ;;  %v3748_v28 = vmul.f32 %v1437_v4, %v3326_v39  ;;  %v243_v27 = vadd.f32 0.5, %v241_v8  ;;  %v3778_v15 = vpop.permute.xlu1 %1290 }
 0x22b   :  { %4476 = vst [vmem:[#allocation115_spill] sm:$0xff] %v3729_v22  ;;  %4478 = vst [vmem:[#allocation116_spill] sm:$0xff] %v3734_v54  ;;  %v3751_v36 = vmul.f32 %v1442_v24, %v3326_v39  ;;  %v4482_v22 = vstv %s3517_s4  ;;  %v282_v54 = vadd.f32 %v2572_v62, %v218_v47  ;;  %v4483_v58 = vstv %s3519_s6  ;;  %1750 = vrot.lane.b32.xlu1 %v1745_v23, %s4399_s3 }
 0x22c   :  { %4480 = vst [vmem:[#allocation117_spill] sm:$0xff] %v3739_v7  ;;  %v3756_v31 = vmul.f32 %v4482_v22, %v3326_v39  ;;  %v360_v7 = vadd.f32 %v2634_v26, %v248_v37  ;;  %v3765_v0 = vmul.f32 %v4483_v58, %v3326_v39  ;;  %v295_v24 = vadd.f32 %v2581_v2, %v3570_v41  ;;  %v3780_v37 = vpop.permute.xlu0 %1348 }
 0x22d   :  { %v308_v4 = vadd.f32 %v2590_v6, %v228_v5  ;;  %v381_v22 = vadd.f32 %v2645_v33, %v269_v61  ;;  %v972_v62 = vadd.f32 %v3285_v60, %v3202_v57  ;;  %v321_v26 = vadd.f32 %v2601_v11, %v3576_v40  ;;  %1800 = vrot.lane.b32.xlu0 %v1796_v42, %s4399_s3  ;;  %v4487_v40 = vld [vmem:[#allocation25_spill] sm:$0xff]  ;;  %v4488_v5 = vld [vmem:[#allocation26_spill] sm:$0xff] }
 0x22e   :  { %v334_v47 = vadd.f32 %v2612_v16, %v238_v63  ;;  %v347_v8 = vadd.f32 %v2623_v21, %v243_v27  ;;  %v472_v34 = vadd.f32 %v2724_v10, %v360_v7  ;;  %v394_v2 = vadd.f32 %v2656_v38, %v282_v54  ;;  %v1304_v41 = vpop.permute.xlu1 %1303  ;;  %v4490_v7 = vld [vmem:[#allocation19_spill] sm:$0xff] }
 0x22f   :  { %v493_v6 = vadd.f32 %v2735_v18, %v381_v22  ;;  %v881_v33 = vadd.f32 %v3204_v29, %v3030_v14  ;;  %v1084_v60 = vadd.f32 %v3377_v43, %v972_v62  ;;  %v407_v11 = vadd.f32 %v2667_v44, %v295_v24  ;;  %v4484_v14 = vld [vmem:[#allocation11_spill] sm:$0xff]  ;;  %v4485_v29 = vld [vmem:[#allocation12_spill] sm:$0xff]  ;;  %v4486_v43 = vld [vmem:[#allocation13_spill] sm:$0xff]  ;;  %1763 = vrot.lane.b32.xlu1 %v1758_v32, %s4399_s3 }
 0x230   :  { %v420_v16 = vadd.f32 %v2678_v49, %v308_v4  ;;  %v584_v21 = vadd.f32 %v2812_v30, %v472_v34  ;;  %v433_v10 = vadd.f32 %v2689_v53, %v321_v26  ;;  %v446_v57 = vadd.f32 %v4484_v14, %v334_v47  ;;  %v3800_v23 = vpop.permute.xlu0 %1361  ;;  %v4492_v27 = vld [vmem:[#allocation15_spill] sm:$0xff]  ;;  %v4493_v24 = vld [vmem:[#allocation16_spill] sm:$0xff]  ;;  %v4495_v62 = vld [vmem:[#allocation18_spill] sm:$0xff] }
 0x231   :  { %v605_v38 = vadd.f32 %v2823_v48, %v493_v6  ;;  %v993_v18 = vadd.f32 %v3298_v25, %v881_v33  ;;  %v1196_v54 = vadd.f32 %v3477_v56, %v1084_v60  ;;  %v459_v44 = vadd.f32 %v4485_v29, %v347_v8  ;;  %v4489_v56 = vld [vmem:[#allocation14_spill] sm:$0xff]  ;;  %1821 = vrot.lane.b32.xlu0 %v3656_v20, %s4491_s30  ;;  %v4496_v47 = vld [vmem:[#allocation20_spill] sm:$0xff]  ;;  %v4505_v29 = vld [vmem:[#allocation93_spill] sm:$0xff] }
 0x232   :  { %v506_v49 = vadd.f32 %v4486_v43, %v394_v2  ;;  %v696_v30 = vadd.f32 %v4487_v40, %v584_v21  ;;  %v894_v53 = vadd.f32 %v3217_v17, %v3061_v19  ;;  %v519_v42 = vadd.f32 %v4489_v56, %v407_v11  ;;  %v1325_v32 = vpop.permute.xlu1 %1324  ;;  %v4499_v11 = vld [vmem:[#allocation22_spill] sm:$0xff]  ;;  %v4507_v43 = vld [vmem:[#allocation51_spill] sm:$0xff] }
 0x233   :  { %v717_v63 = vadd.f32 %v4488_v5, %v605_v38  ;;  %v1105_v48 = vadd.f32 %v3388_v52, %v993_v18  ;;  %v3806_v25 = vadd.f32 %v1304_v41, %v1196_v54  ;;  %v532_v58 = vadd.f32 %v4492_v27, %v420_v16  ;;  %v4494_v52 = vld [vmem:[#allocation17_spill] sm:$0xff]  ;;  %1776 = vrot.lane.b32.xlu1 %v3710_v50, %s4399_s3  ;;  %v4503_v54 = vld [vmem:[#allocation23_spill] sm:$0xff]  ;;  %v4511_v56 = vld [vmem:[#allocation24_spill] sm:$0xff] }
 0x234   :  { %v618_v61 = vadd.f32 %v4490_v7, %v506_v49  ;;  %v808_v55 = vadd.f32 %v3094_v3, %v696_v30  ;;  %v545_v4 = vadd.f32 %v4493_v24, %v433_v10  ;;  %v1006_v19 = vadd.f32 %v3309_v51, %v894_v53  ;;  %v4497_v3 = vld [vmem:[#allocation27_spill] sm:$0xff]  ;;  %v3822_v2 = vpop.permute.xlu0 %1374  ;;  %v4508_v30 = vld [vmem:[#allocation52_spill] sm:$0xff]  ;;  %v4512_v7 = vld [vmem:[#allocation42_spill] sm:$0xff] }
 0x235   :  { %v1217_v17 = vadd.f32 %v3504_v46, %v1105_v48  ;;  %v558_v22 = vadd.f32 %v4494_v52, %v446_v57  ;;  %v571_v26 = vadd.f32 %v4495_v62, %v459_v44  ;;  %v631_v8 = vadd.f32 %v4496_v47, %v519_v42  ;;  %v4498_v46 = vld [vmem:[#allocation21_spill] sm:$0xff]  ;;  %1834 = vrot.lane.b32.xlu0 %v3661_v9, %s4491_s30  ;;  %v4509_v5 = vld [vmem:[#allocation54_spill] sm:$0xff] }
 0x236   :  { %v730_v34 = vadd.f32 %v4497_v3, %v618_v61  ;;  %v824_v20 = vadd.f32 %v3585_v13, %v717_v63  ;;  %v907_v6 = vadd.f32 %v3230_v35, %v3089_v45  ;;  %v1118_v51 = vadd.f32 %v3399_v59, %v1006_v19  ;;  %v4500_v13 = vld [vmem:[#allocation39_spill] sm:$0xff]  ;;  %v4501_v45 = vld [vmem:[#allocation63_spill] sm:$0xff]  ;;  %v4502_v59 = vld [vmem:[#allocation89_spill] sm:$0xff]  ;;  %v1338_v49 = vpop.permute.xlu1 %1337 }
 0x237   :  { %v1329_v33 = vadd.f32 %v1325_v32, %v1217_v17  ;;  %v644_v60 = vadd.f32 %v4498_v46, %v532_v58  ;;  %v657_v16 = vadd.f32 %v4499_v11, %v545_v4  ;;  %v859_v21 = vadd.f32 %v3630_v1, %v808_v55  ;;  %v4504_v1 = vld [vmem:[#allocation28_spill] sm:$0xff]  ;;  %v4506_v44 = vld [vmem:[#allocation38_spill] sm:$0xff]  ;;  %v4513_v55 = vld [vmem:[#allocation65_spill] sm:$0xff] }
 0x238   :  { %v880_v10 = vadd.f32 %v4500_v13, %v824_v20  ;;  %v1019_v35 = vadd.f32 %v4501_v45, %v907_v6  ;;  %v1230_v38 = vadd.f32 %v4502_v59, %v1118_v51  ;;  %v670_v14 = vadd.f32 %v4503_v54, %v558_v22  ;;  %v3848_v40 = vpop.permute.xlu0 %1387  ;;  %v4510_v53 = vld [vmem:[#allocation76_spill] sm:$0xff]  ;;  %v4514_v58 = vld [vmem:[#allocation111_spill] sm:$0xff]  ;;  %v4520_v3 = vld [vmem:[#allocation96_spill] sm:$0xff] }
 0x239   :  { %v3841_v18 = vadd.f32 %v3744_v12, %v1329_v33  ;;  %v743_v57 = vadd.f32 %v4504_v1, %v631_v8  ;;  %v829_v50 = vadd.f32 %v4505_v29, %v730_v34  ;;  %v920_v9 = vadd.f32 %v4507_v43, %v4506_v44  ;;  %1789 = vrot.lane.b32.xlu1 %v4514_v58, %s4399_s3  ;;  %v4515_v24 = vld [vmem:[#allocation103_spill] sm:$0xff]  ;;  %v4517_v17 = vld [vmem:[#allocation68_spill] sm:$0xff]  ;;  %v4522_v20 = vld [vmem:[#allocation53_spill] sm:$0xff] }
 0x23a   :  { %v971_v41 = vadd.f32 %v4508_v30, %v859_v21  ;;  %v992_v63 = vadd.f32 %v4509_v5, %v880_v10  ;;  %v1131_v48 = vadd.f32 %v4510_v53, %v1019_v35  ;;  %v1342_v12 = vadd.f32 %v1338_v49, %v1230_v38  ;;  %1847 = vrot.lane.b32.xlu0 %v4515_v24, %s4491_s30  ;;  %v4516_v4 = vld [vmem:[#allocation66_spill] sm:$0xff]  ;;  %v4519_v47 = vld [vmem:[#allocation29_spill] sm:$0xff]  ;;  %v1351_v46 = vpop.permute.xlu1 %1350  ;;  %v4525_v10 = vld [vmem:[#allocation79_spill] sm:$0xff] }
 0x23b   :  { %v3854_v42 = vadd.f32 %v4511_v56, %v571_v26  ;;  %v893_v61 = vadd.f32 %v4512_v7, %v829_v50  ;;  %v1032_v27 = vadd.f32 %v4513_v55, %v920_v9  ;;  %v4518_v22 = vld [vmem:[#allocation91_spill] sm:$0xff]  ;;  %v756_v8 = vadd.f32 %v4519_v47, %v644_v60  ;;  %v4523_v51 = vld [vmem:[#allocation56_spill] sm:$0xff]  ;;  %v4526_v35 = vld [vmem:[#allocation81_spill] sm:$0xff] }
 0x23c   :  { %v1083_v19 = vadd.f32 %v4516_v4, %v971_v41  ;;  %v1104_v52 = vadd.f32 %v4517_v17, %v992_v63  ;;  %v1243_v62 = vadd.f32 %v4518_v22, %v1131_v48  ;;  %v3868_v26 = vadd.f32 %v3748_v28, %v1342_v12  ;;  %v4521_v32 = vld [vmem:[#allocation41_spill] sm:$0xff]  ;;  %v3875_v11 = vpop.permute.xlu0 %1400  ;;  %v4527_v38 = vld [vmem:[#allocation45_spill] sm:$0xff]  ;;  %v4528_v60 = vld [vmem:[#allocation67_spill] sm:$0xff] }
 0x23d   :  { %v834_v34 = vadd.f32 %v4520_v3, %v743_v57  ;;  %v933_v6 = vadd.f32 %v4522_v20, %v4521_v32  ;;  %v1005_v33 = vadd.f32 %v4523_v51, %v893_v61  ;;  %v4524_v21 = vld [vmem:[#allocation78_spill] sm:$0xff]  ;;  %v4530_v50 = vld [vmem:[#allocation112_spill] sm:$0xff]  ;;  %v1907_v43 = vstv %s3835_s13  ;;  %v4532_v9 = vld [vmem:[#allocation94_spill] sm:$0xff] }
 0x23e   :  { %v1144_v13 = vadd.f32 %v4524_v21, %v1032_v27  ;;  %v1195_v45 = vadd.f32 %v4525_v10, %v1083_v19  ;;  %v1216_v28 = vadd.f32 %v4526_v35, %v1104_v52  ;;  %v1355_v59 = vadd.f32 %v1351_v46, %v1243_v62  ;;  %v4529_v57 = vld [vmem:[#allocation70_spill] sm:$0xff]  ;;  %1802 = vrot.lane.b32.xlu1 %v4530_v50, %s4399_s3  ;;  %v4531_v44 = vld [vmem:[#allocation104_spill] sm:$0xff]  ;;  %v4534_v5 = vld [vmem:[#allocation102_spill] sm:$0xff]  ;;  %v1364_v4 = vpop.permute.xlu1 %1363  ;;  %s3913_s3 = sld [smem:[#allocation7 + $0x78]] }
 0x23f   :  { %v906_v54 = vadd.f32 %v4527_v38, %v834_v34  ;;  %v1045_v1 = vadd.f32 %v4528_v60, %v933_v6  ;;  %v1117_v29 = vadd.f32 %v4529_v57, %v1005_v33  ;;  %1860 = vrot.lane.b32.xlu0 %v4531_v44, %s4491_s30  ;;  %v4533_v30 = vld [vmem:[#allocation95_spill] sm:$0xff]  ;;  %v4535_v48 = vld [vmem:[#allocation31_spill] sm:$0xff]  ;;  %v4536_v56 = vld [vmem:[#allocation97_spill] sm:$0xff]  ;;  %v1928_v33 = vstv %s3862_s25 }
 0x240   :  { %v1256_v49 = vadd.f32 %v4532_v9, %v1144_v13  ;;  %v1307_v41 = vadd.f32 %v4533_v30, %v1195_v45  ;;  %v1328_v63 = vadd.f32 %v4534_v5, %v1216_v28  ;;  %v3894_v53 = vadd.f32 %v3751_v36, %v1355_v59  ;;  %v4537_v61 = vld [vmem:[#allocation44_spill] sm:$0xff]  ;;  %v4538_v55 = vld [vmem:[#allocation55_spill] sm:$0xff]  ;;  %v4539_v58 = vld [vmem:[#allocation58_spill] sm:$0xff]  ;;  %v1414_v19 = vpop.permute.xlu0 %1413 }
 0x241   :  { %v769_v12 = vadd.f32 %v4535_v48, %v657_v16  ;;  %v839_v7 = vadd.f32 %v4536_v56, %v756_v8  ;;  %v946_v27 = vadd.f32 %v4538_v55, %v4537_v61  ;;  %v1018_v24 = vadd.f32 %v4539_v58, %v906_v54  ;;  %v4540_v17 = vld [vmem:[#allocation80_spill] sm:$0xff]  ;;  %v4541_v22 = vld [vmem:[#allocation84_spill] sm:$0xff]  ;;  %v4543_v32 = vld [vmem:[#allocation69_spill] sm:$0xff] }
 0x242   :  { %v1157_v52 = vadd.f32 %v4540_v17, %v1045_v1  ;;  %v1229_v62 = vadd.f32 %v4541_v22, %v1117_v29  ;;  %v1368_v47 = vadd.f32 %v1364_v4, %v1256_v49  ;;  %v3903_v3 = vadd.f32 %v1414_v19, %v1307_v41  ;;  %v4542_v36 = vld [vmem:[#allocation47_spill] sm:$0xff]  ;;  %v4544_v20 = vld [vmem:[#allocation72_spill] sm:$0xff]  ;;  %v4545_v6 = vld [vmem:[#allocation115_spill] sm:$0xff]  ;;  %v1377_v9 = vpop.permute.xlu1 %1376 }
 0x243   :  { %v919_v34 = vadd.f32 %v4542_v36, %v839_v7  ;;  %v1058_v16 = vadd.f32 %v4543_v32, %v946_v27  ;;  %v1130_v8 = vadd.f32 %v4544_v20, %v1018_v24  ;;  %1823 = vrot.lane.b32.xlu1 %v4545_v6, %s4491_s30  ;;  %v4546_v51 = vld [vmem:[#allocation105_spill] sm:$0xff]  ;;  %v4548_v13 = vld [vmem:[#allocation114_spill] sm:$0xff]  ;;  %v4550_v59 = vld [vmem:[#allocation33_spill] sm:$0xff]  ;;  %v1457_v24 = vstv %s3888_s26 }
 0x244   :  { %1873 = vrot.lane.b32.xlu0 %v4546_v51, %s4491_s30  ;;  %v4547_v46 = vld [vmem:[#allocation101_spill] sm:$0xff]  ;;  %v1341_v10 = vadd.f32 %v4548_v13, %v1229_v62  ;;  %v4549_v45 = vld [vmem:[#allocation106_spill] sm:$0xff]  ;;  %v3919_v28 = vadd.f32 %v3756_v31, %v1368_v47  ;;  %v782_v38 = vadd.f32 %v4550_v59, %v670_v14  ;;  %v4552_v1 = vld [vmem:[#allocation46_spill] sm:$0xff]  ;;  %v1486_v49 = vpop.permute.xlu0 %1485  ;;  %v1459_v51 = vmul.f32 %v1457_v24, %v3326_v39 }
 0x245   :  { %v1269_v21 = vadd.f32 %v4547_v46, %v1157_v52  ;;  %v1435_v35 = vadd.f32 %v4549_v45, %v1328_v63  ;;  %v4551_v54 = vld [vmem:[#allocation98_spill] sm:$0xff]  ;;  %v4554_v50 = vld [vmem:[#allocation59_spill] sm:$0xff]  ;;  %v4555_v30 = vld [vmem:[#allocation83_spill] sm:$0xff] }
 0x246   :  { %v844_v60 = vadd.f32 %v4551_v54, %v769_v12  ;;  %v4553_v57 = vld [vmem:[#allocation57_spill] sm:$0xff]  ;;  %v1031_v44 = vadd.f32 %v4554_v50, %v919_v34  ;;  %v1170_v41 = vadd.f32 %v4555_v30, %v1058_v16  ;;  %v4557_v31 = vld [vmem:[#allocation48_spill] sm:$0xff]  ;;  %v4558_v14 = vld [vmem:[#allocation71_spill] sm:$0xff] }
 0x247   :  { %v959_v29 = vadd.f32 %v4553_v57, %v4552_v1  ;;  %v4556_v5 = vld [vmem:[#allocation86_spill] sm:$0xff]  ;;  %v1381_v63 = vadd.f32 %v1377_v9, %v1269_v21  ;;  %v3928_v56 = vadd.f32 %v1486_v49, %v1435_v35  ;;  %v4560_v27 = vld [vmem:[#allocation116_spill] sm:$0xff]  ;;  %v4561_v58 = vld [vmem:[#allocation107_spill] sm:$0xff]  ;;  %v1462_v57 = vstv %s3913_s3 }
 0x248   :  { %v1242_v48 = vadd.f32 %v4556_v5, %v1130_v8  ;;  %v932_v7 = vadd.f32 %v4557_v31, %v844_v60  ;;  %v4559_v55 = vld [vmem:[#allocation73_spill] sm:$0xff]  ;;  %1836 = vrot.lane.b32.xlu1 %v4560_v27, %s4491_s30  ;;  %1886 = vrot.lane.b32.xlu0 %v4561_v58, %s4491_s30  ;;  %v4562_v4 = vld [vmem:[#allocation113_spill] sm:$0xff]  ;;  %v4563_v52 = vld [vmem:[#allocation108_spill] sm:$0xff]  ;;  %v1390_v8 = vpop.permute.xlu1 %1389  ;;  %v1499_v6 = vpop.permute.xlu0 %1498 }
 0x249   :  { %v1071_v61 = vadd.f32 %v4558_v14, %v959_v29  ;;  %v1143_v12 = vadd.f32 %v4559_v55, %v1031_v44  ;;  %v1282_v19 = vadd.f32 %v4562_v4, %v1170_v41  ;;  %v1440_v22 = vadd.f32 %v4563_v52, %v1341_v10  ;;  %v4564_v47 = vld [vmem:[#allocation35_spill] sm:$0xff]  ;;  %v4565_v34 = vld [vmem:[#allocation99_spill] sm:$0xff]  ;;  %v4566_v16 = vld [vmem:[#allocation61_spill] sm:$0xff] }
 0x24a   :  { %v1354_v17 = vadd.f32 %v3780_v37, %v1242_v48  ;;  %v3946_v62 = vadd.f32 %v3765_v0, %v1381_v63  ;;  %v795_v36 = vadd.f32 %v4564_v47, %v3854_v42  ;;  %v849_v32 = vadd.f32 %v4565_v34, %v782_v38  ;;  %v4567_v37 = vld [vmem:[#allocation85_spill] sm:$0xff]  ;;  %v4568_v21 = vld [vmem:[#allocation87_spill] sm:$0xff]  ;;  %v4569_v45 = vld [vmem:[#allocation49_spill] sm:$0xff] }
 0x24b   :  { %v1044_v20 = vadd.f32 %v4566_v16, %v932_v7  ;;  %v1183_v46 = vadd.f32 %v4567_v37, %v1071_v61  ;;  %v1255_v13 = vadd.f32 %v4568_v21, %v1143_v12  ;;  %v1394_v0 = vadd.f32 %v1390_v8, %v1282_v19  ;;  %v4570_v35 = vld [vmem:[#allocation74_spill] sm:$0xff]  ;;  %v4571_v38 = vld [vmem:[#allocation117_spill] sm:$0xff]  ;;  %v4574_v44 = vld [vmem:[#allocation110_spill] sm:$0xff] }
 0x24c   :  { %v3957_v10 = vadd.f32 %v1499_v6, %v1440_v22  ;;  %v945_v42 = vadd.f32 %v4569_v45, %v849_v32  ;;  %1849 = vrot.lane.b32.xlu1 %v4571_v38, %s4491_s30  ;;  %v4572_v54 = vld [vmem:[#allocation109_spill] sm:$0xff]  ;;  %v1445_v9 = vadd.f32 %v4574_v44, %v1354_v17  ;;  %v4575_v30 = vld [vmem:[#allocation100_spill] sm:$0xff]  ;;  %v1403_v5 = vpop.permute.xlu1 %1402  ;;  %v4576_v48 = vstv %s3492_s22  ;;  %v1512_v31 = vpop.permute.xlu0 %1511  ;;  %v4580_v4 = vld [vmem:[#allocation50_spill] sm:$0xff]  ;;  %s4012_s22 = sld [smem:[#allocation7 + $0x47]] }
 0x24d   :  { %v1156_v59 = vadd.f32 %v4570_v35, %v1044_v20  ;;  %1899 = vrot.lane.b32.xlu0 %v4572_v54, %s4491_s30  ;;  %v4573_v60 = vld [vmem:[#allocation60_spill] sm:$0xff]  ;;  %v1295_v29 = vadd.f32 %v3778_v15, %v1183_v46  ;;  %v1367_v50 = vadd.f32 %v3800_v23, %v1255_v13  ;;  %v3972_v49 = vadd.f32 %v1459_v51, %v1394_v0  ;;  %v4578_v23 = vld [vmem:[#allocation62_spill] sm:$0xff]  ;;  %v4579_v55 = vld [vmem:[#allocation88_spill] sm:$0xff] }
 0x24e   :  { %v1908_v1 = vmul.f32 %v4573_v60, %v1907_v43  ;;  %v854_v41 = vadd.f32 %v4575_v30, %v795_v36  ;;  %v1857_v63 = vmul.f32 %v4576_v48, %v3326_v39  ;;  %v4577_v7 = vstv %s3517_s4  ;;  %v4581_v22 = vld [vmem:[#allocation75_spill] sm:$0xff]  ;;  %v4584_v13 = vld [vmem:[#allocation64_spill] sm:$0xff]  ;;  %v4585_v0 = vld [vmem:[#allocation90_spill] sm:$0xff]  ;;  %s4586_s4 = smov 123  }
 0x24f   :  { %v1448_v14 = vmul.f32 %v4573_v60, %v4577_v7  ;;  %v1464_v15 = vmul.f32 %v1462_v57, %v3326_v39  ;;  %v1057_v61 = vadd.f32 %v4578_v23, %v945_v42  ;;  %v1268_v12 = vadd.f32 %v4579_v55, %v1156_v59  ;;  %v4587_v59 = vld [vmem:[#allocation77_spill] sm:$0xff] }
 0x250   :  { %v1407_v27 = vadd.f32 %v1403_v5, %v1295_v29  ;;  %v3986_v58 = vadd.f32 %v1512_v31, %v1445_v9  ;;  %v958_v19 = vadd.f32 %v4580_v4, %v854_v41  ;;  %1862 = vrot.lane.b32.xlu1 %v1857_v63, %s4491_s30  ;;  %v1941_v17 = vstv %s3937_s28  ;;  %v1416_v16 = vpop.permute.xlu1 %1415  ;;  %v1525_v6 = vpop.permute.xlu0 %1524  ;;  %v4589_v5 = vld [vmem:[#allocation92_spill] sm:$0xff] }
 0x251   :  { %1912 = vrot.lane.b32.xlu0 %v1908_v1, %s4491_s30  ;;  %v1467_v52 = vstv %s3940_s29  ;;  %v1169_v47 = vadd.f32 %v4581_v22, %v1057_v61  ;;  %v1380_v36 = vadd.f32 %v3822_v2, %v1268_v12  ;;  %v1450_v34 = vadd.f32 %v1448_v14, %v1367_v50 }
 0x252   :  { %v3995_v32 = vadd.f32 %v1464_v15, %v1407_v27  ;;  %v4582_v20 = vstv %s3496_s18  ;;  %v1929_v51 = vmul.f32 %v4573_v60, %v1928_v33  ;;  %v4583_v37 = vstv %s3519_s6  ;;  %s4078_s18 = sld [smem:[#allocation7 + $0x8f]] }
 0x253   :  { %v1870_v8 = vmul.f32 %v4582_v20, %v3326_v39  ;;  %v1453_v46 = vmul.f32 %v4573_v60, %v4583_v37  ;;  %v1469_v21 = vmul.f32 %v1467_v52, %v3326_v39  ;;  %v1070_v2 = vadd.f32 %v4584_v13, %v958_v19 }
 0x254   :  { %v1281_v45 = vadd.f32 %v4585_v0, %v1169_v47  ;;  %v1420_v42 = vadd.f32 %v1416_v16, %v3806_v25  ;;  %v4010_v35 = vadd.f32 %v1525_v6, %v1450_v34  ;;  %v1488_v50 = vpop.permute.xlu1 %1487  ;;  %v4588_v25 = vstv %s3500_s12  ;;  %v1538_v9 = vpop.permute.xlu0 %1537  ;;  %s4052_s12 = sld [smem:[#allocation7 + $0x6b]] }
 0x255   :  { %1875 = vrot.lane.b32.xlu1 %v1870_v8, %s4491_s30  ;;  %1933 = vrot.lane.b32.xlu0 %v1929_v51, %s4586_s4  ;;  %v1182_v38 = vadd.f32 %v4587_v59, %v1070_v2  ;;  %v1455_v1 = vadd.f32 %v1453_v46, %v1380_v36  ;;  %v1883_v44 = vmul.f32 %v4588_v25, %v3326_v39  ;;  %v1954_v41 = vstv %s3981_s5  ;;  %v2273_v59 = vld [vmem:[#allocation9 + $0x20] sm:$0xff] }
 0x256   :  { %v1393_v54 = vadd.f32 %v3848_v40, %v1281_v45  ;;  %v4018_v29 = vadd.f32 %v1469_v21, %v1420_v42  ;;  %v1942_v30 = vmul.f32 %v4573_v60, %v1941_v17  ;;  %v4029_v63 = vadd.f32 %v1488_v50, %v3841_v18 }
 0x257   :  { %v1294_v48 = vadd.f32 %v4589_v5, %v1182_v38  ;;  %v4031_v40 = vadd.f32 %v1538_v9, %v1455_v1  ;;  %v1458_v31 = vmul.f32 %v4573_v60, %v1457_v24  ;;  %v4590_v23 = vstv %s3512_s15  ;;  %s4067_s15 = sld [smem:[#allocation7 + $0x7d]] }
 0x258   :  { %v1501_v15 = vpop.permute.xlu1 %1500  ;;  %v1896_v18 = vmul.f32 %v4590_v23, %v3326_v39  ;;  %v1551_v61 = vpop.permute.xlu0 %1550  ;;  %v1955_v55 = vmul.f32 %v4573_v60, %v1954_v41  ;;  %v1463_v27 = vmul.f32 %v4573_v60, %v1462_v57  ;;  %v1967_v4 = vstv %s4012_s22 }
 0x259   :  { %1888 = vrot.lane.b32.xlu1 %v1883_v44, %s4491_s30  ;;  %1946 = vrot.lane.b32.xlu0 %v1942_v30, %s4586_s4  ;;  %v1406_v7 = vadd.f32 %v3875_v11, %v1294_v48  ;;  %v1460_v14 = vadd.f32 %v1458_v31, %v1393_v54  ;;  %v4046_v24 = vadd.f32 %v1501_v15, %v3868_v26  ;;  %v1980_v16 = vstv %s4036_s14 }
 0x25a   :  { %v1909_v22 = vmul.f32 %v1907_v43, %v3326_v39  ;;  %v1968_v26 = vmul.f32 %v4573_v60, %v1967_v4  ;;  %v1468_v34 = vmul.f32 %v4573_v60, %v1467_v52  ;;  %v1981_v6 = vmul.f32 %v4573_v60, %v1980_v16 }
 0x25b   :  { %v4048_v12 = vadd.f32 %v1551_v61, %v1460_v14  ;;  %v1465_v11 = vadd.f32 %v1463_v27, %v1406_v7  ;;  %v1993_v37 = vstv %s4052_s12  ;;  %v1956_v45 = vmul.f32 %v1954_v41, %v3326_v39 }
 0x25c   :  { %v1514_v19 = vpop.permute.xlu1 %1513  ;;  %v1564_v47 = vpop.permute.xlu0 %1563  ;;  %v1470_v43 = vadd.f32 %v1468_v34, %v3903_v3  ;;  %v1943_v3 = vmul.f32 %v1941_v17, %v3326_v39  ;;  %v1969_v54 = vmul.f32 %v1967_v4, %v3326_v39 }
 0x25d   :  { %1901 = vrot.lane.b32.xlu1 %v1896_v18, %s4491_s30  ;;  %1959 = vrot.lane.b32.xlu0 %v1955_v55, %s4586_s4  ;;  %v4061_v36 = vadd.f32 %v1514_v19, %v3894_v53  ;;  %v4063_v57 = vadd.f32 %v1564_v47, %v1465_v11  ;;  %v1930_v53 = vmul.f32 %v1928_v33, %v3326_v39  ;;  %v2006_v2 = vstv %s4067_s15 }
 0x25e   :  { %v1994_v33 = vmul.f32 %v4573_v60, %v1993_v37  ;;  %v2007_v38 = vmul.f32 %v2273_v59, %v2006_v2 }
 0x260   :  { %v1527_v20 = vpop.permute.xlu1 %1526  ;;  %v1577_v8 = vpop.permute.xlu0 %1576 }
 0x261   :  { %1914 = vrot.lane.b32.xlu1 %v1909_v22, %s4491_s30  ;;  %1972 = vrot.lane.b32.xlu0 %v1968_v26, %s4586_s4  ;;  %v1531_v52 = vadd.f32 %v1527_v20, %v3919_v28  ;;  %v1582_v51 = vadd.f32 %v1577_v8, %v1470_v43 }
 0x264   :  { %v1540_v46 = vpop.permute.xlu1 %1539  ;;  %v1598_v21 = vpop.permute.xlu0 %1597 }
 0x265   :  { %1935 = vrot.lane.b32.xlu1 %v1930_v53, %s4586_s4  ;;  %1985 = vrot.lane.b32.xlu0 %v1981_v6, %s4586_s4  ;;  %v1544_v13 = vadd.f32 %v1540_v46, %v3946_v62  ;;  %v4088_v28 = vadd.f32 %v1598_v21, %v3928_v56  ;;  %v2019_v62 = vstv %s4078_s18 }
 0x266   :  { %v2020_v50 = vmul.f32 %v2273_v59, %v2019_v62 }
 0x268   :  { %v1553_v0 = vpop.permute.xlu1 %1552  ;;  %v1611_v42 = vpop.permute.xlu0 %1610 }
 0x269   :  { %1948 = vrot.lane.b32.xlu1 %v1943_v3, %s4586_s4  ;;  %1998 = vrot.lane.b32.xlu0 %v1994_v33, %s4586_s4  ;;  %v1557_v17 = vadd.f32 %v1553_v0, %v3972_v49  ;;  %v4096_v60 = vadd.f32 %v1611_v42, %v3957_v10  ;;  %v1982_v49 = vmul.f32 %v1980_v16, %v3326_v39 }
 0x26c   :  { %v1566_v56 = vpop.permute.xlu1 %1565  ;;  %v1624_v1 = vpop.permute.xlu0 %1623 }
 0x26d   :  { %1961 = vrot.lane.b32.xlu1 %v1956_v45, %s4586_s4  ;;  %2011 = vrot.lane.b32.xlu0 %v2007_v38, %s4586_s4  ;;  %v1570_v25 = vadd.f32 %v1566_v56, %v3995_v32  ;;  %v4104_v44 = vadd.f32 %v1624_v1, %v3986_v58  ;;  %v2274_v32 = vld [vmem:[#allocation9 + $0x28] sm:$0x3f] }
 0x26e   :  { %v1995_v48 = vmul.f32 %v2274_v32, %v1993_v37  ;;  %v2008_v14 = vmul.f32 %v2274_v32, %v2006_v2  ;;  %v2021_v18 = vmul.f32 %v2274_v32, %v2019_v62 }
 0x270   :  { %v1579_v10 = vpop.permute.xlu1 %1578  ;;  %v1637_v9 = vpop.permute.xlu0 %1636 }
 0x271   :  { %1974 = vrot.lane.b32.xlu1 %v1969_v54, %s4586_s4  ;;  %2024 = vrot.lane.b32.xlu0 %v2020_v50, %s4586_s4  ;;  %v1583_v30 = vadd.f32 %v1579_v10, %v4018_v29  ;;  %v4111_v41 = vadd.f32 %v1637_v9, %v4010_v35 }
 0x274   :  { %v1600_v5 = vpop.permute.xlu1 %1599  ;;  %v1650_v58 = vpop.permute.xlu0 %1649 }
 0x275   :  { %1987 = vrot.lane.b32.xlu1 %v1982_v49, %s4586_s4  ;;  %v4115_v31 = vadd.f32 %v1600_v5, %v4029_v63  ;;  %v4118_v7 = vadd.f32 %v1650_v58, %v4031_v40 }
 0x278   :  { %v1613_v39 = vpop.permute.xlu1 %1612  ;;  %v1663_v29 = vpop.permute.xlu0 %1662 }
 0x279   :  { %2000 = vrot.lane.b32.xlu1 %v1995_v48, %s4586_s4  ;;  %v4122_v35 = vadd.f32 %v1613_v39, %v4046_v24  ;;  %v4125_v15 = vadd.f32 %v1663_v29, %v4048_v12 }
 0x27c   :  { %v1626_v23 = vpop.permute.xlu1 %1625  ;;  %v1676_v63 = vpop.permute.xlu0 %1675 }
 0x27d   :  { %2013 = vrot.lane.b32.xlu1 %v2008_v14, %s4586_s4  ;;  %v4129_v61 = vadd.f32 %v1626_v23, %v4061_v36  ;;  %v4132_v40 = vadd.f32 %v1676_v63, %v4063_v57 }
 0x280   :  { %v1639_v55 = vpop.permute.xlu1 %1638  ;;  %v1689_v27 = vpop.permute.xlu0 %1688 }
 0x281   :  { %2026 = vrot.lane.b32.xlu1 %v2021_v18, %s4586_s4  ;;  %v4135_v24 = vadd.f32 %v1639_v55, %v1531_v52  ;;  %v4137_v4 = vadd.f32 %v1689_v27, %v1582_v51 }
 0x284   :  { %v1652_v12 = vpop.permute.xlu1 %1651  ;;  %v1710_v11 = vpop.permute.xlu0 %1709 }
 0x285   :  { %v4139_v19 = vadd.f32 %v1652_v12, %v1544_v13  ;;  %v1715_v10 = vadd.f32 %v1710_v11, %v4088_v28 }
 0x288   :  { %v1665_v22 = vpop.permute.xlu1 %1664  ;;  %v1723_v47 = vpop.permute.xlu0 %1722 }
 0x289   :  { %v4141_v26 = vadd.f32 %v1665_v22, %v1557_v17  ;;  %v1728_v5 = vadd.f32 %v1723_v47, %v4096_v60 }
 0x28c   :  { %v1678_v36 = vpop.permute.xlu1 %1677  ;;  %v1736_v34 = vpop.permute.xlu0 %1735 }
 0x28d   :  { %v4143_v57 = vadd.f32 %v1678_v36, %v1570_v25  ;;  %v1741_v29 = vadd.f32 %v1736_v34, %v4104_v44 }
 0x290   :  { %v1691_v16 = vpop.permute.xlu1 %1690  ;;  %v1749_v43 = vpop.permute.xlu0 %1748 }
 0x291   :  { %v4145_v20 = vadd.f32 %v1691_v16, %v1583_v30  ;;  %v1754_v27 = vadd.f32 %v1749_v43, %v4111_v41 }
 0x294   :  { %v1712_v53 = vpop.permute.xlu1 %1711  ;;  %v1762_v8 = vpop.permute.xlu0 %1761 }
 0x295   :  { %v1716_v34 = vadd.f32 %v1712_v53, %v4115_v31  ;;  %v1767_v16 = vadd.f32 %v1762_v8, %v4118_v7 }
 0x298   :  { %v1725_v6 = vpop.permute.xlu1 %1724  ;;  %v1775_v52 = vpop.permute.xlu0 %1774 }
 0x29c   :  { %v4147_v51 = vpop.permute.xlu1 %1737  ;;  %v4149_v37 = vpop.permute.xlu0 %1787 }
 0x2a0   :  { %v4151_v46 = vpop.permute.xlu1 %1750  ;;  %v4153_v3 = vpop.permute.xlu0 %1800 }
 0x2a4   :  { %v4155_v21 = vpop.permute.xlu1 %1763  ;;  %v1822_v33 = vpop.permute.xlu0 %1821 }
 0x2a5   :  { %v1827_v49 = vadd.f32 %v1822_v33, %v1715_v10 }
 0x2a8   :  { %v4157_v13 = vpop.permute.xlu1 %1776  ;;  %v1835_v2 = vpop.permute.xlu0 %1834 }
 0x2a9   :  { %v1840_v48 = vadd.f32 %v1835_v2, %v1728_v5 }
 0x2ac   :  { %v4159_v0 = vpop.permute.xlu1 %1789  ;;  %v1848_v45 = vpop.permute.xlu0 %1847 }
 0x2ad   :  { %v1853_v63 = vadd.f32 %v1848_v45, %v1741_v29 }
 0x2b0   :  { %v4161_v42 = vpop.permute.xlu1 %1802 }
 0x2b1   :  { %v1861_v59 = vpop.permute.xlu0 %1860 }
 0x2b2   :  { %v1866_v22 = vadd.f32 %v1861_v59, %v1754_v27  ;;  %v1729_v59 = vadd.f32 %v1725_v6, %v4122_v35  ;;  %v1793_v35 = vadd.f32 %v4149_v37, %v4132_v40  ;;  %v1755_v40 = vadd.f32 %v4151_v46, %v4135_v24 }
 0x2b5   :  { %v1824_v38 = vpop.permute.xlu1 %1823 }
 0x2b6   :  { %v1874_v17 = vpop.permute.xlu0 %1873  ;;  %v1828_v45 = vadd.f32 %v1824_v38, %v1716_v34 }
 0x2b7   :  { %v1879_v41 = vadd.f32 %v1874_v17, %v1767_v16  ;;  %v1742_v17 = vadd.f32 %v4147_v51, %v4129_v61  ;;  %v1806_v51 = vadd.f32 %v4153_v3, %v4137_v4  ;;  %v1768_v4 = vadd.f32 %v4155_v21, %v4139_v19 }
 0x2ba   :  { %v1837_v62 = vpop.permute.xlu1 %1836  ;;  %v1887_v56 = vpop.permute.xlu0 %1886 }
 0x2bb   :  { %v1841_v7 = vadd.f32 %v1837_v62, %v1729_v59 }
 0x2be   :  { %v1850_v54 = vpop.permute.xlu1 %1849 }
 0x2bf   :  { %v1900_v1 = vpop.permute.xlu0 %1899 }
 0x2c2   :  { %v4163_v50 = vpop.permute.xlu1 %1862 }
 0x2c3   :  { %v4165_v25 = vpop.permute.xlu0 %1912 }
 0x2c7   :  { %v4168_v9 = vpop.permute.xlu1 %1875  ;;  %v1934_v30 = vpop.permute.xlu0 %1933 }
 0x2c8   :  { %v1939_v32 = vadd.f32 %v1934_v30, %v1827_v49  ;;  %v1780_v30 = vadd.f32 %v1775_v52, %v4125_v15 }
 0x2ca   :  { %v2032_v58 = vmax.f32 %v1939_v32, 0.0  ;;  %v1892_v8 = vadd.f32 %v1887_v56, %v1780_v30 }
 0x2cb   :  { %v4171_v39 = vpop.permute.xlu1 %1888  ;;  %v1947_v14 = vpop.permute.xlu0 %1946 }
 0x2cc   :  { %v2034_v23 = vmin.f32 %v2032_v58, 1.0  ;;  %v1952_v18 = vadd.f32 %v1947_v14, %v1840_v48  ;;  %v1854_v58 = vadd.f32 %v1850_v54, %v1742_v17  ;;  %v1905_v14 = vadd.f32 %v1900_v1, %v1793_v35 }
 0x2ce   :  { %2037 = vst.msk [vmem:[%s4591_s9] sm:$0xff] %vm2036_vm3, %v2034_v23  ;;  %v2040_v28 = vmax.f32 %v1952_v18, 0.0 }
 0x2cf   :  { %v4178_v55 = vpop.permute.xlu1 %1901  ;;  %v1960_v60 = vpop.permute.xlu0 %1959 }
 0x2d0   :  { %v2042_v12 = vmin.f32 %v2040_v28, 1.0  ;;  %v1965_v11 = vadd.f32 %v1960_v60, %v1853_v63  ;;  %v1867_v28 = vadd.f32 %v4163_v50, %v1755_v40  ;;  %v1918_v60 = vadd.f32 %v4165_v25, %v1806_v51 }
 0x2d2   :  { %2248 = vst.msk [vmem:[%s4591_s9 + $0x10] sm:$0xff] %vm2036_vm3, %v2042_v12  ;;  %v2047_v44 = vmax.f32 %v1965_v11, 0.0 }
 0x2d3   :  { %v4185_v47 = vpop.permute.xlu1 %1914  ;;  %v1973_v36 = vpop.permute.xlu0 %1972 }
 0x2d4   :  { %v2049_v33 = vmin.f32 %v2047_v44, 1.0  ;;  %v1978_v2 = vadd.f32 %v1973_v36, %v1866_v22  ;;  %v1880_v22 = vadd.f32 %v4168_v9, %v1768_v4  ;;  %v1781_v36 = vadd.f32 %v4157_v13, %v4141_v26 }
 0x2d5   :  { %v1794_v26 = vadd.f32 %v4159_v0, %v4143_v57 }
 0x2d6   :  { %2250 = vst.msk [vmem:[%s4591_s9 + $0x20] sm:$0xff] %vm2036_vm3, %v2049_v33  ;;  %v2054_v43 = vmax.f32 %v1978_v2, 0.0  ;;  %v1893_v9 = vadd.f32 %v4171_v39, %v1781_v36 }
 0x2d7   :  { %v1936_v10 = vpop.permute.xlu1 %1935  ;;  %v1986_v49 = vpop.permute.xlu0 %1985 }
 0x2d8   :  { %v1940_v5 = vadd.f32 %v1936_v10, %v1828_v45  ;;  %v2056_v31 = vmin.f32 %v2054_v43, 1.0  ;;  %v1991_v53 = vadd.f32 %v1986_v49, %v1879_v41  ;;  %v1906_v43 = vadd.f32 %v4178_v55, %v1794_v26 }
 0x2d9   :  { %v1807_v10 = vadd.f32 %v4161_v42, %v4145_v20 }
 0x2da   :  { %v2033_v32 = vmax.f32 %v1940_v5, 0.0  ;;  %2252 = vst.msk [vmem:[%s4591_s9 + $0x30] sm:$0xff] %vm2036_vm3, %v2056_v31  ;;  %v2061_v38 = vmax.f32 %v1991_v53, 0.0 }
 0x2db   :  { %v1949_v15 = vpop.permute.xlu1 %1948  ;;  %v1999_v6 = vpop.permute.xlu0 %1998  ;;  %v1919_v5 = vadd.f32 %v4185_v47, %v1807_v10 }
 0x2dc   :  { %v2035_v52 = vmin.f32 %v2033_v32, 1.0  ;;  %v1953_v48 = vadd.f32 %v1949_v15, %v1841_v7  ;;  %v2063_v62 = vmin.f32 %v2061_v38, 1.0  ;;  %v2004_v56 = vadd.f32 %v1999_v6, %v1892_v8 }
 0x2de   :  { %2039 = vst.msk [vmem:[%s4591_s9 + $0x8] sm:$0x3f] %vm2038_vm4, %v2035_v52  ;;  %v2041_v29 = vmax.f32 %v1953_v48, 0.0  ;;  %v2068_v61 = vmax.f32 %v2004_v56, 0.0 }
 0x2df   :  { %2254 = vst.msk [vmem:[%s4591_s9 + $0x40] sm:$0xff] %vm2036_vm3, %v2063_v62  ;;  %v1962_v37 = vpop.permute.xlu1 %1961  ;;  %v2012_v54 = vpop.permute.xlu0 %2011 }
 0x2e0   :  { %v2043_v1 = vmin.f32 %v2041_v29, 1.0  ;;  %v1966_v23 = vadd.f32 %v1962_v37, %v1854_v58  ;;  %v2070_v18 = vmin.f32 %v2068_v61, 1.0  ;;  %v2017_v63 = vadd.f32 %v2012_v54, %v1905_v14 }
 0x2e2   :  { %2249 = vst.msk [vmem:[%s4591_s9 + $0x18] sm:$0x3f] %vm2038_vm4, %v2043_v1  ;;  %v2048_v27 = vmax.f32 %v1966_v23, 0.0  ;;  %v2075_v24 = vmax.f32 %v2017_v63, 0.0 }
 0x2e3   :  { %2256 = vst.msk [vmem:[%s4591_s9 + $0x50] sm:$0xff] %vm2036_vm3, %v2070_v18  ;;  %v1975_v46 = vpop.permute.xlu1 %1974  ;;  %v2025_v3 = vpop.permute.xlu0 %2024 }
 0x2e4   :  { %v2050_v50 = vmin.f32 %v2048_v27, 1.0  ;;  %v1979_v12 = vadd.f32 %v1975_v46, %v1867_v28  ;;  %v2077_v25 = vmin.f32 %v2075_v24, 1.0  ;;  %v2030_v11 = vadd.f32 %v2025_v3, %v1918_v60 }
 0x2e6   :  { %2251 = vst.msk [vmem:[%s4591_s9 + $0x28] sm:$0x3f] %vm2038_vm4, %v2050_v50  ;;  %v2055_v44 = vmax.f32 %v1979_v12, 0.0  ;;  %v2082_v19 = vmax.f32 %v2030_v11, 0.0 }
 0x2e7   :  { %2258 = vst.msk [vmem:[%s4591_s9 + $0x60] sm:$0xff] %vm2036_vm3, %v2077_v25  ;;  %v1988_v21 = vpop.permute.xlu1 %1987 }
 0x2e8   :  { %v2057_v34 = vmin.f32 %v2055_v44, 1.0  ;;  %v1992_v16 = vadd.f32 %v1988_v21, %v1880_v22  ;;  %v2084_v33 = vmin.f32 %v2082_v19, 1.0 }
 0x2ea   :  { %2253 = vst.msk [vmem:[%s4591_s9 + $0x38] sm:$0x3f] %vm2038_vm4, %v2057_v34  ;;  %v2062_v2 = vmax.f32 %v1992_v16, 0.0 }
 0x2eb   :  { %2260 = vst.msk [vmem:[%s4591_s9 + $0x70] sm:$0xff] %vm2036_vm3, %v2084_v33  ;;  %v2001_v45 = vpop.permute.xlu1 %2000 }
 0x2ec   :  { %v2064_v13 = vmin.f32 %v2062_v2, 1.0  ;;  %v2005_v41 = vadd.f32 %v2001_v45, %v1893_v9 }
 0x2ee   :  { %2255 = vst.msk [vmem:[%s4591_s9 + $0x48] sm:$0x3f] %vm2038_vm4, %v2064_v13  ;;  %v2069_v39 = vmax.f32 %v2005_v41, 0.0 }
 0x2ef   :  { %v2014_v59 = vpop.permute.xlu1 %2013 }
 0x2f0   :  { %v2071_v49 = vmin.f32 %v2069_v39, 1.0  ;;  %v2018_v30 = vadd.f32 %v2014_v59, %v1906_v43 }
 0x2f2   :  { %2257 = vst.msk [vmem:[%s4591_s9 + $0x58] sm:$0x3f] %vm2038_vm4, %v2071_v49  ;;  %v2076_v57 = vmax.f32 %v2018_v30, 0.0 }
 0x2f3   :  { %v2027_v0 = vpop.permute.xlu1 %2026 }
 0x2f4   :  { %v2078_v55 = vmin.f32 %v2076_v57, 1.0  ;;  %v2031_v31 = vadd.f32 %v2027_v0, %v1919_v5 }
 0x2f6   :  { %2259 = vst.msk [vmem:[%s4591_s9 + $0x68] sm:$0x3f] %vm2038_vm4, %v2078_v55  ;;  %v2083_v53 = vmax.f32 %v2031_v31, 0.0 }
 0x2f8   :  { %v2085_v20 = vmin.f32 %v2083_v53, 1.0 }
 0x2fa   :  { %2261 = vst.msk [vmem:[%s4591_s9 + $0x78] sm:$0x3f] %vm2038_vm4, %v2085_v20 }
 0x2fb   :  { %2093 = vsyncpa [#allocation8], 1 }

</bundles_post_ra>
